<compile_context>
chip_gen: v7x
topology: tpu7x:2x2x1
jax: 0.10.0
libtpu: 0.0.40
codegen_flags: <defaults>
</compile_context>

<pallas_src>
import functools
import math

import jax
import jax.numpy as jnp
from jax.experimental import pallas as pl
from jax.experimental.pallas import tpu as pltpu


# ----------------------------- small helpers -----------------------------

def _mosaic(dim_sems, vmem_limit_bytes=None):
    kwargs = dict(dimension_semantics=tuple(dim_sems))
    if vmem_limit_bytes is not None:
        kwargs["vmem_limit_bytes"] = int(vmem_limit_bytes)
    return pltpu.CompilerParams(**kwargs)


def _reciprocal(x):
    # EUP approximate reciprocal (free slot next to VPU/MXU work).
    if hasattr(pl, "reciprocal"):
        return pl.reciprocal(x, approx=True)
    return 1.0 / x


def _pick_tile(size, cap):
    """Largest tile <= cap that divides `size` and is a multiple of 8 (or the
    full size when it already fits / no aligned divisor exists).
    TODO(synk): for sizes with no aligned divisor this falls back to the full
    dimension (one big block); pad inputs or switch to a cdiv grid + masking
    before using with very large, prime-ish N/M."""
    if size <= cap:
        return size
    for t in range(cap - cap % 8, 7, -8):
        if size % t == 0:
            return t
    return size


# ----------------------------- Pallas kernels -----------------------------

def _linear_kernel(x_ref, w_ref, b_ref, o_ref):
    # x: (TR, K) f32, w: (K, N) bf16, b: (1, N) f32 -> (TR, N) f32
    o_ref[...] = (jnp.dot(x_ref[...].astype(jnp.bfloat16), w_ref[...],
                          preferred_element_type=jnp.float32) + b_ref[...])


def _ffn_layer_kernel(x_ref, w1_ref, b1_ref, w2_ref, b2_ref, g_ref, bb_ref,
                      o_ref):
    """Fused feed-forward sub-layer: expand + ReLU + squeeze + residual + LN."""
    bf16 = jnp.bfloat16
    x = x_ref[...]                                     # (TR, D) f32 residual
    h = jnp.dot(x.astype(bf16), w1_ref[...],
                preferred_element_type=jnp.float32) + b1_ref[...]
    h = jnp.maximum(h, 0.0)                            # ReLU
    y = jnp.dot(h.astype(bf16), w2_ref[...],           # h in bf16 for 2nd matmul
                preferred_element_type=jnp.float32) + b2_ref[...]
    r = x + y                                          # residual add (f32)
    mean = jnp.mean(r, axis=-1, keepdims=True)
    var = jnp.mean(jnp.square(r - mean), axis=-1, keepdims=True)
    o_ref[...] = ((r - mean) * jax.lax.rsqrt(var + 1e-5)) * g_ref[...] + bb_ref[...]


def _attn_layer_kernel(*refs, num_heads, has_rpe):
    """Fused attention sub-layer (optionally with geometric RPE term).

    Grid = (batch, q_tiles, kv_tiles); kv is the (last, "arbitrary") reduction
    axis with a flash-style online softmax held in VMEM scratch.
    """
    if has_rpe:
        (xq_ref, xkv_ref, geo_ref, wq_ref, bq_ref, wkv_ref, bkv_ref,
         wpT_ref, bp_ref, wo_ref, bo_ref, g_ref, b_ref,
         o_ref, m_sc, l_sc, acc_sc, q_sc, qp_sc) = refs
    else:
        (xq_ref, xkv_ref, wq_ref, bq_ref, wkv_ref, bkv_ref,
         wo_ref, bo_ref, g_ref, b_ref,
         o_ref, m_sc, l_sc, acc_sc, q_sc) = refs

    kv_idx = pl.program_id(2)
    num_kv = pl.num_programs(2)
    bf16 = jnp.bfloat16

    H = num_heads
    TN, D = q_sc.shape
    C = D // H
    scale = 1.0 / math.sqrt(C)

    @pl.when(kv_idx == 0)
    def _init():
        m_sc[...] = jnp.full_like(m_sc, -jnp.inf)
        l_sc[...] = jnp.zeros_like(l_sc)
        acc_sc[...] = jnp.zeros_like(acc_sc)
        # Q projection hoisted out of the kv loop: computed once per
        # (batch, q-tile) instead of once per kv step; 1/sqrt(C) folded in.
        q = jnp.dot(xq_ref[0].astype(bf16), wq_ref[...],
                    preferred_element_type=jnp.float32) + bq_ref[...]
        qs = q * scale
        q_sc[...] = qs
        if has_rpe:
            # Reassociated RPE: qp_h = q_h @ Wp_h^T (TN, D), also hoisted.
            # Contracted against the streamed geo tile on the VPU per kv step.
            for h in range(H):
                qp_sc[h] = jnp.dot(qs[:, h * C:(h + 1) * C].astype(bf16),
                                   wpT_ref[h],
                                   preferred_element_type=jnp.float32)

    x_kv = xkv_ref[0]                    # (TM, D) f32
    TM = x_kv.shape[0]

    # Fused K|V projection via a single concatenated-weight MXU matmul.
    kv = jnp.dot(x_kv.astype(bf16), wkv_ref[...],
                 preferred_element_type=jnp.float32) + bkv_ref[...]
    kb = kv[:, :D].astype(bf16)          # (TM, D)
    vb = kv[:, D:].astype(bf16)          # (TM, D)

    if has_rpe:
        geo = geo_ref[0]                 # (TN, TM, D) bf16

    qs_all = q_sc[...]                   # (TN, D) f32, scaled q

    alphas = []
    pvs = []
    for h in range(H):
        sl = slice(h * C, (h + 1) * C)
        q_h32 = qs_all[:, sl]            # (TN, C) f32
        q_h = q_h32.astype(bf16)
        k_h = kb[:, sl]                  # (TM, C)
        v_h = vb[:, sl]                  # (TM, C)

        s_h = jax.lax.dot_general(       # (TN, TM) = q_h @ k_h^T   (MXU)
            q_h, k_h, (((1,), (1,)), ((), ())),
            preferred_element_type=jnp.float32)

        if has_rpe:
            # VPU multiply + lane reduce replaces the old (TN*TM,D)@(D,D)
            # projection + unit-row batched MXU matmuls.
            qp_h = qp_sc[h]                                   # (TN, D) f32
            sp = jnp.sum(geo * qp_h[:, None, :], axis=-1)     # (TN, TM) f32
            # Bias term of the geo projection (per-row constant; kept for
            # exact parity with the reference formulation).
            sp = sp + jnp.sum(q_h32 * bp_ref[:, sl], axis=-1, keepdims=True)
            s_h = s_h + sp

        m_prev = m_sc[h]                 # (TN, 1)
        m_new = jnp.maximum(m_prev, jnp.max(s_h, axis=-1, keepdims=True))
        alpha = jnp.exp(m_prev - m_new)
        p_exp = jnp.exp(s_h - m_new)     # (TN, TM) f32
        l_sc[h] = alpha * l_sc[h] + jnp.sum(p_exp, axis=-1, keepdims=True)
        m_sc[h] = m_new

        alphas.append(jnp.broadcast_to(alpha, (TN, C)))
        pvs.append(jnp.dot(p_exp.astype(bf16), v_h,
                           preferred_element_type=jnp.float32))

    # Single lane-dense accumulator update per kv step (heads packed along
    # lanes of one (TN, D) buffer -> no per-head masked partial stores).
    acc_sc[...] = (jnp.concatenate(alphas, axis=-1) * acc_sc[...]
                   + jnp.concatenate(pvs, axis=-1))

    # Finalize once per (batch, q-tile): normalize, ONE full-D out-projection,
    # residual, LayerNorm.
    @pl.when(kv_idx == num_kv - 1)
    def _finalize():
        invs = []
        for h in range(H):
            invs.append(jnp.broadcast_to(_reciprocal(l_sc[h]), (TN, C)))
        o_n = (acc_sc[...] * jnp.concatenate(invs, axis=-1)).astype(bf16)
        hidden = jnp.dot(o_n, wo_ref[...],
                         preferred_element_type=jnp.float32) + bo_ref[...]
        r = hidden + xq_ref[0]                           # residual add (f32)
        mean = jnp.mean(r, axis=-1, keepdims=True)
        var = jnp.mean(jnp.square(r - mean), axis=-1, keepdims=True)
        o_ref[0] = ((r - mean) * jax.lax.rsqrt(var + 1e-5)) * g_ref[...] + b_ref[...]


# ----------------------------- kernel wrappers -----------------------------

def pallas_linear(x, w, b):
    """Row-tiled linear: (..., K) @ (K, Nout) + b (bf16 matmul, f32 accumulate).
    `w` is pre-cast bf16, `b` is pre-shaped (1, Nout)."""
    shp = x.shape
    K = shp[-1]
    Nout = w.shape[1]
    x2 = x.reshape(-1, K)
    R = x2.shape[0]
    tr = _pick_tile(R, 256)
    const = lambda i: (0, 0)
    out = pl.pallas_call(
        _linear_kernel,
        out_shape=jax.ShapeDtypeStruct((R, Nout), jnp.float32),
        grid=(R // tr,),
        in_specs=[pl.BlockSpec((tr, K), lambda i: (i, 0)),
                  pl.BlockSpec((K, Nout), const),
                  pl.BlockSpec((1, Nout), const)],
        out_specs=pl.BlockSpec((tr, Nout), lambda i: (i, 0)),
        compiler_params=_mosaic(("parallel",)),
    )(x2, w, b)
    return out.reshape(shp[:-1] + (Nout,))


def fused_ffn_layer(x, bp):
    """One pallas_call: FFN expand + ReLU + squeeze + residual + LayerNorm."""
    G, N, D = x.shape
    Dff = bp['w1'].shape[1]
    x2 = x.reshape(G * N, D)
    R = G * N
    # Cap 256: keeps the live f32 hidden activation small enough to avoid
    # guaranteed vreg spill on v7x; FFN weights stay resident so the extra
    # grid steps only cost ~0.35us each.
    tr = _pick_tile(R, 256)
    const = lambda i: (0, 0)
    out = pl.pallas_call(
        _ffn_layer_kernel,
        out_shape=jax.ShapeDtypeStruct((R, D), jnp.float32),
        grid=(R // tr,),
        in_specs=[pl.BlockSpec((tr, D), lambda i: (i, 0)),
                  pl.BlockSpec((D, Dff), const), pl.BlockSpec((1, Dff), const),
                  pl.BlockSpec((Dff, D), const), pl.BlockSpec((1, D), const),
                  pl.BlockSpec((1, D), const), pl.BlockSpec((1, D), const)],
        out_specs=pl.BlockSpec((tr, D), lambda i: (i, 0)),
        compiler_params=_mosaic(("parallel",)),
    )(x2, bp['w1'], bp['bf1'], bp['w2'], bp['bf2'], bp['g2'], bp['b2n'])
    return out.reshape(G, N, D)


def _attn_vmem_bytes(tile_n, tile_m, D, H, has_rpe):
    db = 2  # double-buffered pipeline blocks
    b = db * tile_n * D * 4                       # x_q block
    b += db * tile_m * D * 4                      # x_kv block
    if has_rpe:
        b += db * tile_n * tile_m * D * 2         # geo block (bf16)
        b += db * (D * D * 2 + D * 4)             # wpT + bp
        b += H * tile_n * D * 4                   # qp scratch
    b += db * (D * D * 2 + D * 4)                 # wq + bq
    b += db * (D * 2 * D * 2 + 2 * D * 4)         # wkv + bkv
    b += db * (D * D * 2 + 3 * D * 4)             # wo + bo + norm g/b
    b += db * tile_n * D * 4                      # output block
    b += 2 * H * tile_n * 128 * 4                 # m, l scratch (lane-padded)
    b += 2 * tile_n * D * 4                       # acc + q scratch
    return b


def fused_attention_layer(x_q, x_kv, geo, bp, num_heads):
    """One pallas_call: Q/KV proj + multi-head (RPE) attention with online
    softmax over key tiles + out-proj + residual + LayerNorm."""
    G, N, D = x_q.shape
    M = x_kv.shape[1]
    H = num_heads
    C = D // H
    has_rpe = geo is not None

    # Tile caps: the RPE path streams the big (N, M, D) geo tensor -> keep the
    # kv tile at 128 so the double-buffered geo block stays within scoped VMEM
    # across v5e/v6e/v7x.  The cross path has no geo -> bigger kv tiles to
    # fill the 256-wide MXUs on v6e/v7x.
    cap_n, cap_m = (128, 128) if has_rpe else (128, 256)
    tile_n = _pick_tile(N, cap_n)
    tile_m = _pick_tile(M, cap_m)
    nq = N // tile_n
    # Megacore: make sure the 'parallel' grid axes give >= 2 units of work
    # (v7x has 2 TensorCores) whenever the problem can be split.
    if G * nq < 2:
        smaller = _pick_tile(N, max(8, tile_n // 2))
        if smaller < tile_n and N % smaller == 0:
            tile_n = smaller
            nq = N // tile_n
    nk = M // tile_m

    vmem_limit = int(min(max(2 * _attn_vmem_bytes(tile_n, tile_m, D, H, has_rpe),
                             32 << 20), 64 << 20))

    const2 = lambda g, q, k: (0, 0)
    const3 = lambda g, q, k: (0, 0, 0)

    in_specs = [pl.BlockSpec((1, tile_n, D), lambda g, q, k: (g, q, 0)),     # x_q
                pl.BlockSpec((1, tile_m, D), lambda g, q, k: (g, k, 0))]     # x_kv
    args = [x_q, x_kv]
    if has_rpe:
        in_specs.append(pl.BlockSpec((1, tile_n, tile_m, D),
                                     lambda g, q, k: (g, q, k, 0)))          # geo
        args.append(geo)
    in_specs += [pl.BlockSpec((D, D), const2), pl.BlockSpec((1, D), const2),
                 pl.BlockSpec((D, 2 * D), const2), pl.BlockSpec((1, 2 * D), const2)]
    args += [bp['wq'], bp['bq'], bp['wkv'], bp['bkv']]
    if has_rpe:
        in_specs += [pl.BlockSpec((H, C, D), const3), pl.BlockSpec((1, D), const2)]
        args += [bp['wpT'], bp['bp']]
    in_specs += [pl.BlockSpec((D, D), const2), pl.BlockSpec((1, D), const2),
                 pl.BlockSpec((1, D), const2), pl.BlockSpec((1, D), const2)]
    args += [bp['wo'], bp['bo'], bp['g1'], bp['b1n']]

    scratch = [pltpu.VMEM((H, tile_n, 1), jnp.float32),   # running max (per head)
               pltpu.VMEM((H, tile_n, 1), jnp.float32),   # running sum (per head)
               pltpu.VMEM((tile_n, D), jnp.float32),      # lane-dense accumulator
               pltpu.VMEM((tile_n, D), jnp.float32)]      # hoisted scaled Q
    if has_rpe:
        scratch.append(pltpu.VMEM((H, tile_n, D), jnp.float32))  # hoisted q@Wp_h^T

    kern = functools.partial(_attn_layer_kernel, num_heads=H, has_rpe=has_rpe)
    return pl.pallas_call(
        kern,
        out_shape=jax.ShapeDtypeStruct((G, N, D), jnp.float32),
        grid=(G, nq, nk),
        in_specs=in_specs,
        out_specs=pl.BlockSpec((1, tile_n, D), lambda g, q, k: (g, q, 0)),
        scratch_shapes=scratch,
        compiler_params=_mosaic(("parallel", "parallel", "arbitrary"),
                                vmem_limit_bytes=vmem_limit),
    )(*args)


# ----------------------------- JAX glue (model) -----------------------------

def transformer_module_forward(prepped, src_feats, ref_feats, src_geo, ref_geo,
                               *, num_heads, blocks):
    # TODO(synk): src_masks / ref_masks (key masking) and dropout are not
    # implemented; this reproduces the masks=None / dropout=None path.
    B = src_feats.shape[0]
    bf16 = jnp.bfloat16

    # in_proj: src & ref share weights -> one stacked call.
    feats = pallas_linear(jnp.concatenate([src_feats, ref_feats], axis=0),
                          prepped['in_proj']['w'], prepped['in_proj']['b'])
    src, ref = feats[:B], feats[B:]

    # Geometric embeddings only feed the score contraction -> ship to the
    # kernels in bf16 (halves DMA bytes for the largest tensor in the module).
    geo_stacked = jnp.concatenate([src_geo, ref_geo], axis=0).astype(bf16)

    for name, bp in zip(blocks, prepped['layers']):
        if name == 'self':
            # src & ref self-attention are independent -> one stacked call for
            # each fused sub-layer (the batch grid axis is 'parallel' so v7x
            # can split it across its two TensorCores).
            x = jnp.concatenate([src, ref], axis=0)
            y = fused_attention_layer(x, x, geo_stacked, bp, num_heads)
            y = fused_ffn_layer(y, bp)
            src, ref = y[:B], y[B:]
        else:  # 'cross': sequential — ref attends to the *updated* src.
            src = fused_ffn_layer(
                fused_attention_layer(src, ref, None, bp, num_heads), bp)
            ref = fused_ffn_layer(
                fused_attention_layer(ref, src, None, bp, num_heads), bp)

    out = pallas_linear(jnp.concatenate([src, ref], axis=0),
                        prepped['out_proj']['w'], prepped['out_proj']['b'])
    return out[:B], out[B:]


# ----------------------------- parameter init / prep -----------------------------

def init_linear(key, din, dout):
    kw, kb = jax.random.split(key)
    bound = 1.0 / math.sqrt(din)                      # PyTorch nn.Linear default
    w = jax.random.uniform(kw, (din, dout), jnp.float32, -bound, bound)
    b = jax.random.uniform(kb, (dout,), jnp.float32, -bound, bound)
    return {'w': w, 'b': b}


def init_block(key, d, with_rpe):
    keys = jax.random.split(key, 7)
    p = {
        'q': init_linear(keys[0], d, d),
        'k': init_linear(keys[1], d, d),
        'v': init_linear(keys[2], d, d),
        'out': init_linear(keys[3], d, d),
        'norm1_g': jnp.ones((d,), jnp.float32),
        'norm1_b': jnp.zeros((d,), jnp.float32),
        'ffn1': init_linear(keys[4], d, 2 * d),
        'ffn2': init_linear(keys[5], 2 * d, d),
        'norm2_g': jnp.ones((d,), jnp.float32),
        'norm2_b': jnp.zeros((d,), jnp.float32),
    }
    if with_rpe:
        p['p'] = init_linear(keys[6], d, d)
    return p


def init_params(key, input_dim, output_dim, hidden_dim, blocks):
    keys = jax.random.split(key, 2 + len(blocks))
    return {
        'in_proj': init_linear(keys[0], input_dim, hidden_dim),
        'out_proj': init_linear(keys[1], hidden_dim, output_dim),
        'layers': [init_block(keys[2 + i], hidden_dim, name == 'self')
                   for i, name in enumerate(blocks)],
    }


def preprocess_params(params, num_heads, blocks):
    """One-time weight preprocessing (bf16 casts, K|V concat, Wp^T per-head
    reshape, 2-D biases) hoisted out of the per-forward critical path."""
    bf16 = jnp.bfloat16

    def lin(p):
        return {'w': p['w'].astype(bf16), 'b': p['b'][None, :]}

    prepped = {'in_proj': lin(params['in_proj']),
               'out_proj': lin(params['out_proj']),
               'layers': []}
    for name, lp in zip(blocks, params['layers']):
        D = lp['q']['w'].shape[0]
        H = num_heads
        C = D // H
        d = {
            'wq': lp['q']['w'].astype(bf16), 'bq': lp['q']['b'][None, :],
            'wkv': jnp.concatenate([lp['k']['w'], lp['v']['w']],
                                   axis=1).astype(bf16),
            'bkv': jnp.concatenate([lp['k']['b'], lp['v']['b']],
                                   axis=0)[None, :],
            'wo': lp['out']['w'].astype(bf16), 'bo': lp['out']['b'][None, :],
            'g1': lp['norm1_g'][None, :], 'b1n': lp['norm1_b'][None, :],
            'w1': lp['ffn1']['w'].astype(bf16), 'bf1': lp['ffn1']['b'][None, :],
            'w2': lp['ffn2']['w'].astype(bf16), 'bf2': lp['ffn2']['b'][None, :],
            'g2': lp['norm2_g'][None, :], 'b2n': lp['norm2_b'][None, :],
        }
        if name == 'self':
            # wpT[h] = Wp[:, h*C:(h+1)*C]^T  -> (C, D) per-head slices.
            d['wpT'] = jnp.transpose(lp['p']['w']).reshape(H, C, D).astype(bf16)
            d['bp'] = lp['p']['b'][None, :]
        prepped['layers'].append(d)
    return prepped


# ----------------------------- main -----------------------------

if __name__ == "__main__":
    B, N = 2, 8
    input_dim, hidden_dim, output_dim, num_head = 16, 32, 16, 4
    blocks = ('self', 'cross')

    key = jax.random.PRNGKey(0)
    pkey, dkey = jax.random.split(key)
    params = init_params(pkey, input_dim, output_dim, hidden_dim, blocks)
    prepped = preprocess_params(params, num_head, blocks)   # one-time, outside jit

    d1, d2, d3, d4 = jax.random.split(dkey, 4)
    src_feats = jax.random.normal(d1, (B, N, input_dim), jnp.float32)
    ref_feats = jax.random.normal(d2, (B, N, input_dim), jnp.float32)
    src_geo = jax.random.normal(d3, (B, N, N, hidden_dim), jnp.float32)
    ref_geo = jax.random.normal(d4, (B, N, N, hidden_dim), jnp.float32)

    fwd = jax.jit(functools.partial(transformer_module_forward,
                                    num_heads=num_head, blocks=blocks))
    src_out, ref_out = fwd(prepped, src_feats, ref_feats, src_geo, ref_geo)
    jax.block_until_ready((src_out, ref_out))

    assert src_out.shape == (B, N, output_dim)
    assert ref_out.shape == (B, N, output_dim)
    assert jnp.all(jnp.isfinite(src_out)) and jnp.all(jnp.isfinite(ref_out))
    print("KERNEL_OK")
</pallas_src>

<mosaic_0001>
module attributes {stable_mosaic.version = 11 : i64} {
  func.func @_linear_kernel(%arg0: i32, %arg1: memref<32x16xf32, #tpu.memory_space<vmem>>, %arg2: memref<16x32xbf16, #tpu.memory_space<vmem>>, %arg3: memref<1x32xf32, #tpu.memory_space<vmem>>, %arg4: memref<32x32xf32, #tpu.memory_space<vmem>>) attributes {dimension_semantics = [#tpu.dimension_semantics<parallel>], iteration_bounds = array<i64: 1>, scalar_prefetch = 0 : i64, scratch_operands = 0 : i64, tpu.core_type = #tpu.core_type<tc>, window_params = [{transform_indices = @transform_0, window_bounds = array<i64: 32, 16>}, {pipeline_mode = #tpu.pipeline_mode<synchronous>, transform_indices = @transform_1, window_bounds = array<i64: 16, 32>}, {pipeline_mode = #tpu.pipeline_mode<synchronous>, transform_indices = @transform_2, window_bounds = array<i64: 1, 32>}, {transform_indices = @transform_3, window_bounds = array<i64: 32, 32>}]} {
    %c0 = arith.constant 0 : index
    %c0_0 = arith.constant 0 : index
    %0 = vector.load %arg1[%c0, %c0_0] : memref<32x16xf32, #tpu.memory_space<vmem>>, vector<32x16xf32>
    %1 = arith.truncf %0 : vector<32x16xf32> to vector<32x16xbf16>
    %c0_1 = arith.constant 0 : index
    %c0_2 = arith.constant 0 : index
    %2 = vector.load %arg2[%c0_1, %c0_2] : memref<16x32xbf16, #tpu.memory_space<vmem>>, vector<16x32xbf16>
    %cst = arith.constant dense<0.000000e+00> : vector<32x32xf32>
    %3 = tpu.matmul %1, %2, %cst {dimension_numbers = #tpu.dot_dimension_numbers<[1], [0], [0], [1], [0, 0, 1, 1], [], []>} : vector<32x16xbf16>, vector<16x32xbf16>, vector<32x32xf32> -> vector<32x32xf32>
    %c0_3 = arith.constant 0 : index
    %c0_4 = arith.constant 0 : index
    %4 = vector.load %arg3[%c0_3, %c0_4] : memref<1x32xf32, #tpu.memory_space<vmem>>, vector<1x32xf32>
    %5 = vector.broadcast %4 : vector<1x32xf32> to vector<32x32xf32>
    %6 = arith.addf %3, %5 : vector<32x32xf32>
    %c0_5 = arith.constant 0 : index
    %c0_6 = arith.constant 0 : index
    %7 = vector.load %arg4[%c0_5, %c0_6] : memref<32x32xf32, #tpu.memory_space<vmem>>, vector<32x32xf32>
    tpu.vector_store %arg4[%c0_5, %c0_6], %6 {strides = array<i32>} : memref<32x32xf32, #tpu.memory_space<vmem>>, vector<32x32xf32>,
    return
  }
  func.func @transform_0(%arg0: i32) -> (i32, i32) {
    %c0_i32 = arith.constant 0 : i32
    %c0_i32_0 = arith.constant 0 : i32
    return %arg0, %c0_i32 : i32, i32
  }
  func.func @transform_1(%arg0: i32) -> (i32, i32) {
    %c0_i32 = arith.constant 0 : i32
    %c0_i32_0 = arith.constant 0 : i32
    %c0_i32_1 = arith.constant 0 : i32
    return %c0_i32, %c0_i32_0 : i32, i32
  }
  func.func @transform_2(%arg0: i32) -> (i32, i32) {
    %c0_i32 = arith.constant 0 : i32
    %c0_i32_0 = arith.constant 0 : i32
    %c0_i32_1 = arith.constant 0 : i32
    return %c0_i32, %c0_i32_0 : i32, i32
  }
  func.func @transform_3(%arg0: i32) -> (i32, i32) {
    %c0_i32 = arith.constant 0 : i32
    %c0_i32_0 = arith.constant 0 : i32
    return %arg0, %c0_i32 : i32, i32
  }
}

module attributes {stable_mosaic.version = 11 : i64} {
  func.func @_ffn_layer_kernel(%arg0: i32, %arg1: memref<32x32xf32, #tpu.memory_space<vmem>>, %arg2: memref<32x64xbf16, #tpu.memory_space<vmem>>, %arg3: memref<1x64xf32, #tpu.memory_space<vmem>>, %arg4: memref<64x32xbf16, #tpu.memory_space<vmem>>, %arg5: memref<1x32xf32, #tpu.memory_space<vmem>>, %arg6: memref<1x32xf32, #tpu.memory_space<vmem>>, %arg7: memref<1x32xf32, #tpu.memory_space<vmem>>, %arg8: memref<32x32xf32, #tpu.memory_space<vmem>>) attributes {dimension_semantics = [#tpu.dimension_semantics<parallel>], iteration_bounds = array<i64: 1>, scalar_prefetch = 0 : i64, scratch_operands = 0 : i64, tpu.core_type = #tpu.core_type<tc>, window_params = [{transform_indices = @transform_0, window_bounds = array<i64: 32, 32>}, {pipeline_mode = #tpu.pipeline_mode<synchronous>, transform_indices = @transform_1, window_bounds = array<i64: 32, 64>}, {pipeline_mode = #tpu.pipeline_mode<synchronous>, transform_indices = @transform_2, window_bounds = array<i64: 1, 64>}, {pipeline_mode = #tpu.pipeline_mode<synchronous>, transform_indices = @transform_3, window_bounds = array<i64: 64, 32>}, {pipeline_mode = #tpu.pipeline_mode<synchronous>, transform_indices = @transform_4, window_bounds = array<i64: 1, 32>}, {pipeline_mode = #tpu.pipeline_mode<synchronous>, transform_indices = @transform_5, window_bounds = array<i64: 1, 32>}, {pipeline_mode = #tpu.pipeline_mode<synchronous>, transform_indices = @transform_6, window_bounds = array<i64: 1, 32>}, {transform_indices = @transform_7, window_bounds = array<i64: 32, 32>}]} {
    %c0 = arith.constant 0 : index
    %c0_0 = arith.constant 0 : index
    %0 = vector.load %arg1[%c0, %c0_0] : memref<32x32xf32, #tpu.memory_space<vmem>>, vector<32x32xf32>
    %1 = arith.truncf %0 : vector<32x32xf32> to vector<32x32xbf16>
    %c0_1 = arith.constant 0 : index
    %c0_2 = arith.constant 0 : index
    %2 = vector.load %arg2[%c0_1, %c0_2] : memref<32x64xbf16, #tpu.memory_space<vmem>>, vector<32x64xbf16>
    %cst = arith.constant dense<0.000000e+00> : vector<32x64xf32>
    %3 = tpu.matmul %1, %2, %cst {dimension_numbers = #tpu.dot_dimension_numbers<[1], [0], [0], [1], [0, 0, 1, 1], [], []>} : vector<32x32xbf16>, vector<32x64xbf16>, vector<32x64xf32> -> vector<32x64xf32>
    %c0_3 = arith.constant 0 : index
    %c0_4 = arith.constant 0 : index
    %4 = vector.load %arg3[%c0_3, %c0_4] : memref<1x64xf32, #tpu.memory_space<vmem>>, vector<1x64xf32>
    %5 = vector.broadcast %4 : vector<1x64xf32> to vector<32x64xf32>
    %6 = arith.addf %3, %5 : vector<32x64xf32>
    %cst_5 = arith.constant 0.000000e+00 : f32
    %7 = vector.broadcast %cst_5 : f32 to vector<32x64xf32>
    %8 = arith.maximumf %6, %7 : vector<32x64xf32>
    %9 = arith.truncf %8 : vector<32x64xf32> to vector<32x64xbf16>
    %c0_6 = arith.constant 0 : index
    %c0_7 = arith.constant 0 : index
    %10 = vector.load %arg4[%c0_6, %c0_7] : memref<64x32xbf16, #tpu.memory_space<vmem>>, vector<64x32xbf16>
    %cst_8 = arith.constant dense<0.000000e+00> : vector<32x32xf32>
    %11 = tpu.matmul %9, %10, %cst_8 {dimension_numbers = #tpu.dot_dimension_numbers<[1], [0], [0], [1], [0, 0, 1, 1], [], []>} : vector<32x64xbf16>, vector<64x32xbf16>, vector<32x32xf32> -> vector<32x32xf32>
    %c0_9 = arith.constant 0 : index
    %c0_10 = arith.constant 0 : index
    %12 = vector.load %arg5[%c0_9, %c0_10] : memref<1x32xf32, #tpu.memory_space<vmem>>, vector<1x32xf32>
    %13 = vector.broadcast %12 : vector<1x32xf32> to vector<32x32xf32>
    %14 = arith.addf %11, %13 : vector<32x32xf32>
    %15 = arith.addf %0, %14 : vector<32x32xf32>
    %cst_11 = arith.constant dense<0.000000e+00> : vector<32xf32>
    %16 = vector.multi_reduction <add>, %15, %cst_11 [1] : vector<32x32xf32> to vector<32xf32>
    %17 = vector.shape_cast %16 : vector<32xf32> to vector<32x1xf32>
    %cst_12 = arith.constant 3.200000e+01 : f32
    %18 = vector.broadcast %cst_12 : f32 to vector<32x1xf32>
    %19 = arith.divf %17, %18 : vector<32x1xf32>
    %20 = vector.broadcast %19 : vector<32x1xf32> to vector<32x32xf32>
    %21 = arith.subf %15, %20 : vector<32x32xf32>
    %22 = arith.mulf %21, %21 : vector<32x32xf32>
    %cst_13 = arith.constant dense<0.000000e+00> : vector<32xf32>
    %23 = vector.multi_reduction <add>, %22, %cst_13 [1] : vector<32x32xf32> to vector<32xf32>
    %24 = vector.shape_cast %23 : vector<32xf32> to vector<32x1xf32>
    %cst_14 = arith.constant 3.200000e+01 : f32
    %25 = vector.broadcast %cst_14 : f32 to vector<32x1xf32>
    %26 = arith.divf %24, %25 : vector<32x1xf32>
    %27 = vector.broadcast %19 : vector<32x1xf32> to vector<32x32xf32>
    %28 = arith.subf %15, %27 : vector<32x32xf32>
    %cst_15 = arith.constant 9.99999974E-6 : f32
    %29 = vector.broadcast %cst_15 : f32 to vector<32x1xf32>
    %30 = arith.addf %26, %29 : vector<32x1xf32>
    %31 = math.rsqrt %30 : vector<32x1xf32>
    %32 = vector.broadcast %31 : vector<32x1xf32> to vector<32x32xf32>
    %33 = arith.mulf %28, %32 : vector<32x32xf32>
    %c0_16 = arith.constant 0 : index
    %c0_17 = arith.constant 0 : index
    %34 = vector.load %arg6[%c0_16, %c0_17] : memref<1x32xf32, #tpu.memory_space<vmem>>, vector<1x32xf32>
    %35 = vector.broadcast %34 : vector<1x32xf32> to vector<32x32xf32>
    %36 = arith.mulf %33, %35 : vector<32x32xf32>
    %c0_18 = arith.constant 0 : index
    %c0_19 = arith.constant 0 : index
    %37 = vector.load %arg7[%c0_18, %c0_19] : memref<1x32xf32, #tpu.memory_space<vmem>>, vector<1x32xf32>
    %38 = vector.broadcast %37 : vector<1x32xf32> to vector<32x32xf32>
    %39 = arith.addf %36, %38 : vector<32x32xf32>
    %c0_20 = arith.constant 0 : index
    %c0_21 = arith.constant 0 : index
    %40 = vector.load %arg8[%c0_20, %c0_21] : memref<32x32xf32, #tpu.memory_space<vmem>>, vector<32x32xf32>
    tpu.vector_store %arg8[%c0_20, %c0_21], %39 {strides = array<i32>} : memref<32x32xf32, #tpu.memory_space<vmem>>, vector<32x32xf32>,
    return
  }
  func.func @transform_0(%arg0: i32) -> (i32, i32) {
    %c0_i32 = arith.constant 0 : i32
    %c0_i32_0 = arith.constant 0 : i32
    return %arg0, %c0_i32 : i32, i32
  }
  func.func @transform_1(%arg0: i32) -> (i32, i32) {
    %c0_i32 = arith.constant 0 : i32
    %c0_i32_0 = arith.constant 0 : i32
    %c0_i32_1 = arith.constant 0 : i32
    return %c0_i32, %c0_i32_0 : i32, i32
  }
  func.func @transform_2(%arg0: i32) -> (i32, i32) {
    %c0_i32 = arith.constant 0 : i32
    %c0_i32_0 = arith.constant 0 : i32
    %c0_i32_1 = arith.constant 0 : i32
    return %c0_i32, %c0_i32_0 : i32, i32
  }
  func.func @transform_3(%arg0: i32) -> (i32, i32) {
    %c0_i32 = arith.constant 0 : i32
    %c0_i32_0 = arith.constant 0 : i32
    %c0_i32_1 = arith.constant 0 : i32
    return %c0_i32, %c0_i32_0 : i32, i32
  }
  func.func @transform_4(%arg0: i32) -> (i32, i32) {
    %c0_i32 = arith.constant 0 : i32
    %c0_i32_0 = arith.constant 0 : i32
    %c0_i32_1 = arith.constant 0 : i32
    return %c0_i32, %c0_i32_0 : i32, i32
  }
  func.func @transform_5(%arg0: i32) -> (i32, i32) {
    %c0_i32 = arith.constant 0 : i32
    %c0_i32_0 = arith.constant 0 : i32
    %c0_i32_1 = arith.constant 0 : i32
    return %c0_i32, %c0_i32_0 : i32, i32
  }
  func.func @transform_6(%arg0: i32) -> (i32, i32) {
    %c0_i32 = arith.constant 0 : i32
    %c0_i32_0 = arith.constant 0 : i32
    %c0_i32_1 = arith.constant 0 : i32
    return %c0_i32, %c0_i32_0 : i32, i32
  }
  func.func @transform_7(%arg0: i32) -> (i32, i32) {
    %c0_i32 = arith.constant 0 : i32
    %c0_i32_0 = arith.constant 0 : i32
    return %arg0, %c0_i32 : i32, i32
  }
}

module attributes {stable_mosaic.version = 11 : i64} {
  func.func @_attn_layer_kernel(%arg0: i32, %arg1: i32, %arg2: i32, %arg3: memref<1x8x32xf32, #tpu.memory_space<vmem>>, %arg4: memref<1x8x32xf32, #tpu.memory_space<vmem>>, %arg5: memref<1x8x8x32xbf16, #tpu.memory_space<vmem>>, %arg6: memref<32x32xbf16, #tpu.memory_space<vmem>>, %arg7: memref<1x32xf32, #tpu.memory_space<vmem>>, %arg8: memref<32x64xbf16, #tpu.memory_space<vmem>>, %arg9: memref<1x64xf32, #tpu.memory_space<vmem>>, %arg10: memref<4x8x32xbf16, #tpu.memory_space<vmem>>, %arg11: memref<1x32xf32, #tpu.memory_space<vmem>>, %arg12: memref<32x32xbf16, #tpu.memory_space<vmem>>, %arg13: memref<1x32xf32, #tpu.memory_space<vmem>>, %arg14: memref<1x32xf32, #tpu.memory_space<vmem>>, %arg15: memref<1x32xf32, #tpu.memory_space<vmem>>, %arg16: memref<1x8x32xf32, #tpu.memory_space<vmem>>, %arg17: memref<4x8x1xf32, #tpu.memory_space<vmem>>, %arg18: memref<4x8x1xf32, #tpu.memory_space<vmem>>, %arg19: memref<8x32xf32, #tpu.memory_space<vmem>>, %arg20: memref<8x32xf32, #tpu.memory_space<vmem>>, %arg21: memref<4x8x32xf32, #tpu.memory_space<vmem>>) attributes {dimension_semantics = [#tpu.dimension_semantics<parallel>, #tpu.dimension_semantics<parallel>, #tpu.dimension_semantics<arbitrary>], iteration_bounds = array<i64: 4, 1, 1>, scalar_prefetch = 0 : i64, scratch_operands = 5 : i64, tpu.core_type = #tpu.core_type<tc>, window_params = [{transform_indices = @transform_0, window_bounds = array<i64: 1, 8, 32>}, {transform_indices = @transform_1, window_bounds = array<i64: 1, 8, 32>}, {transform_indices = @transform_2, window_bounds = array<i64: 1, 8, 8, 32>}, {pipeline_mode = #tpu.pipeline_mode<synchronous>, transform_indices = @transform_3, window_bounds = array<i64: 32, 32>}, {pipeline_mode = #tpu.pipeline_mode<synchronous>, transform_indices = @transform_4, window_bounds = array<i64: 1, 32>}, {pipeline_mode = #tpu.pipeline_mode<synchronous>, transform_indices = @transform_5, window_bounds = array<i64: 32, 64>}, {pipeline_mode = #tpu.pipeline_mode<synchronous>, transform_indices = @transform_6, window_bounds = array<i64: 1, 64>}, {pipeline_mode = #tpu.pipeline_mode<synchronous>, transform_indices = @transform_7, window_bounds = array<i64: 4, 8, 32>}, {pipeline_mode = #tpu.pipeline_mode<synchronous>, transform_indices = @transform_8, window_bounds = array<i64: 1, 32>}, {pipeline_mode = #tpu.pipeline_mode<synchronous>, transform_indices = @transform_9, window_bounds = array<i64: 32, 32>}, {pipeline_mode = #tpu.pipeline_mode<synchronous>, transform_indices = @transform_10, window_bounds = array<i64: 1, 32>}, {pipeline_mode = #tpu.pipeline_mode<synchronous>, transform_indices = @transform_11, window_bounds = array<i64: 1, 32>}, {pipeline_mode = #tpu.pipeline_mode<synchronous>, transform_indices = @transform_12, window_bounds = array<i64: 1, 32>}, {transform_indices = @transform_13, window_bounds = array<i64: 1, 8, 32>}]} {
    %c0_i32 = arith.constant 0 : i32
    %0 = arith.cmpi eq, %arg2, %c0_i32 : i32
    %1 = arith.extui %0 : i1 to i32
    %c0_i32_0 = arith.constant 0 : i32
    %2 = arith.cmpi ne, %1, %c0_i32_0 : i32
    scf.if %2 {
      %cst_105 = arith.constant 0xFF800000 : f32
      %211 = vector.broadcast %cst_105 : f32 to vector<4x8x1xf32>
      %c0_106 = arith.constant 0 : index
      %c0_107 = arith.constant 0 : index
      %c0_108 = arith.constant 0 : index
      %212 = vector.load %arg17[%c0_106, %c0_107, %c0_108] : memref<4x8x1xf32, #tpu.memory_space<vmem>>, vector<4x8x1xf32>
      tpu.vector_store %arg17[%c0_106, %c0_107, %c0_108], %211 {strides = array<i32>} : memref<4x8x1xf32, #tpu.memory_space<vmem>>, vector<4x8x1xf32>,
      %cst_109 = arith.constant 0.000000e+00 : f32
      %213 = vector.broadcast %cst_109 : f32 to vector<4x8x1xf32>
      %c0_110 = arith.constant 0 : index
      %c0_111 = arith.constant 0 : index
      %c0_112 = arith.constant 0 : index
      %214 = vector.load %arg18[%c0_110, %c0_111, %c0_112] : memref<4x8x1xf32, #tpu.memory_space<vmem>>, vector<4x8x1xf32>
      tpu.vector_store %arg18[%c0_110, %c0_111, %c0_112], %213 {strides = array<i32>} : memref<4x8x1xf32, #tpu.memory_space<vmem>>, vector<4x8x1xf32>,
      %cst_113 = arith.constant 0.000000e+00 : f32
      %215 = vector.broadcast %cst_113 : f32 to vector<8x32xf32>
      %c0_114 = arith.constant 0 : index
      %c0_115 = arith.constant 0 : index
      %216 = vector.load %arg19[%c0_114, %c0_115] : memref<8x32xf32, #tpu.memory_space<vmem>>, vector<8x32xf32>
      tpu.vector_store %arg19[%c0_114, %c0_115], %215 {strides = array<i32>} : memref<8x32xf32, #tpu.memory_space<vmem>>, vector<8x32xf32>,
      %c0_116 = arith.constant 0 : index
      %c0_117 = arith.constant 0 : index
      %c0_118 = arith.constant 0 : index
      %217 = vector.load %arg3[%c0_116, %c0_117, %c0_118] : memref<1x8x32xf32, #tpu.memory_space<vmem>>, vector<1x8x32xf32>
      %218 = vector.shape_cast %217 : vector<1x8x32xf32> to vector<8x32xf32>
      %219 = arith.truncf %218 : vector<8x32xf32> to vector<8x32xbf16>
      %c0_119 = arith.constant 0 : index
      %c0_120 = arith.constant 0 : index
      %220 = vector.load %arg6[%c0_119, %c0_120] : memref<32x32xbf16, #tpu.memory_space<vmem>>, vector<32x32xbf16>
      %cst_121 = arith.constant dense<0.000000e+00> : vector<8x32xf32>
      %221 = tpu.matmul %219, %220, %cst_121 {dimension_numbers = #tpu.dot_dimension_numbers<[1], [0], [0], [1], [0, 0, 1, 1], [], []>} : vector<8x32xbf16>, vector<32x32xbf16>, vector<8x32xf32> -> vector<8x32xf32>
      %c0_122 = arith.constant 0 : index
      %c0_123 = arith.constant 0 : index
      %222 = vector.load %arg7[%c0_122, %c0_123] : memref<1x32xf32, #tpu.memory_space<vmem>>, vector<1x32xf32>
      %223 = vector.broadcast %222 : vector<1x32xf32> to vector<8x32xf32>
      %224 = arith.addf %221, %223 : vector<8x32xf32>
      %cst_124 = arith.constant 0.353553385 : f32
      %225 = vector.broadcast %cst_124 : f32 to vector<8x32xf32>
      %226 = arith.mulf %224, %225 : vector<8x32xf32>
      %c0_125 = arith.constant 0 : index
      %c0_126 = arith.constant 0 : index
      %227 = vector.load %arg20[%c0_125, %c0_126] : memref<8x32xf32, #tpu.memory_space<vmem>>, vector<8x32xf32>
      tpu.vector_store %arg20[%c0_125, %c0_126], %226 {strides = array<i32>} : memref<8x32xf32, #tpu.memory_space<vmem>>, vector<8x32xf32>,
      %228 = vector.extract_strided_slice %226 {offsets = [0, 0], sizes = [8, 8], strides = [1, 1]} : vector<8x32xf32> to vector<8x8xf32>
      %229 = arith.truncf %228 : vector<8x8xf32> to vector<8x8xbf16>
      %c0_127 = arith.constant 0 : index
      %c0_128 = arith.constant 0 : index
      %c0_129 = arith.constant 0 : index
      %230 = vector.load %arg10[%c0_127, %c0_128, %c0_129] : memref<4x8x32xbf16, #tpu.memory_space<vmem>>, vector<1x8x32xbf16>
      %231 = vector.shape_cast %230 : vector<1x8x32xbf16> to vector<8x32xbf16>
      %cst_130 = arith.constant dense<0.000000e+00> : vector<8x32xf32>
      %232 = tpu.matmul %229, %231, %cst_130 {dimension_numbers = #tpu.dot_dimension_numbers<[1], [0], [0], [1], [0, 0, 1, 1], [], []>} : vector<8x8xbf16>, vector<8x32xbf16>, vector<8x32xf32> -> vector<8x32xf32>
      %c0_131 = arith.constant 0 : index
      %c0_132 = arith.constant 0 : index
      %c0_133 = arith.constant 0 : index
      %233 = vector.load %arg21[%c0_131, %c0_132, %c0_133] : memref<4x8x32xf32, #tpu.memory_space<vmem>>, vector<1x8x32xf32>
      %234 = vector.shape_cast %233 : vector<1x8x32xf32> to vector<8x32xf32>
      %235 = vector.shape_cast %232 : vector<8x32xf32> to vector<1x8x32xf32>
      tpu.vector_store %arg21[%c0_131, %c0_132, %c0_133], %235 {strides = array<i32>} : memref<4x8x32xf32, #tpu.memory_space<vmem>>, vector<1x8x32xf32>,
      %236 = vector.extract_strided_slice %226 {offsets = [0, 8], sizes = [8, 8], strides = [1, 1]} : vector<8x32xf32> to vector<8x8xf32>
      %237 = arith.truncf %236 : vector<8x8xf32> to vector<8x8xbf16>
      %c1_134 = arith.constant 1 : index
      %c0_135 = arith.constant 0 : index
      %c0_136 = arith.constant 0 : index
      %238 = vector.load %arg10[%c1_134, %c0_135, %c0_136] : memref<4x8x32xbf16, #tpu.memory_space<vmem>>, vector<1x8x32xbf16>
      %239 = vector.shape_cast %238 : vector<1x8x32xbf16> to vector<8x32xbf16>
      %cst_137 = arith.constant dense<0.000000e+00> : vector<8x32xf32>
      %240 = tpu.matmul %237, %239, %cst_137 {dimension_numbers = #tpu.dot_dimension_numbers<[1], [0], [0], [1], [0, 0, 1, 1], [], []>} : vector<8x8xbf16>, vector<8x32xbf16>, vector<8x32xf32> -> vector<8x32xf32>
      %c1_138 = arith.constant 1 : index
      %c0_139 = arith.constant 0 : index
      %c0_140 = arith.constant 0 : index
      %241 = vector.load %arg21[%c1_138, %c0_139, %c0_140] : memref<4x8x32xf32, #tpu.memory_space<vmem>>, vector<1x8x32xf32>
      %242 = vector.shape_cast %241 : vector<1x8x32xf32> to vector<8x32xf32>
      %243 = vector.shape_cast %240 : vector<8x32xf32> to vector<1x8x32xf32>
      tpu.vector_store %arg21[%c1_138, %c0_139, %c0_140], %243 {strides = array<i32>} : memref<4x8x32xf32, #tpu.memory_space<vmem>>, vector<1x8x32xf32>,
      %244 = vector.extract_strided_slice %226 {offsets = [0, 16], sizes = [8, 8], strides = [1, 1]} : vector<8x32xf32> to vector<8x8xf32>
      %245 = arith.truncf %244 : vector<8x8xf32> to vector<8x8xbf16>
      %c2_141 = arith.constant 2 : index
      %c0_142 = arith.constant 0 : index
      %c0_143 = arith.constant 0 : index
      %246 = vector.load %arg10[%c2_141, %c0_142, %c0_143] : memref<4x8x32xbf16, #tpu.memory_space<vmem>>, vector<1x8x32xbf16>
      %247 = vector.shape_cast %246 : vector<1x8x32xbf16> to vector<8x32xbf16>
      %cst_144 = arith.constant dense<0.000000e+00> : vector<8x32xf32>
      %248 = tpu.matmul %245, %247, %cst_144 {dimension_numbers = #tpu.dot_dimension_numbers<[1], [0], [0], [1], [0, 0, 1, 1], [], []>} : vector<8x8xbf16>, vector<8x32xbf16>, vector<8x32xf32> -> vector<8x32xf32>
      %c2_145 = arith.constant 2 : index
      %c0_146 = arith.constant 0 : index
      %c0_147 = arith.constant 0 : index
      %249 = vector.load %arg21[%c2_145, %c0_146, %c0_147] : memref<4x8x32xf32, #tpu.memory_space<vmem>>, vector<1x8x32xf32>
      %250 = vector.shape_cast %249 : vector<1x8x32xf32> to vector<8x32xf32>
      %251 = vector.shape_cast %248 : vector<8x32xf32> to vector<1x8x32xf32>
      tpu.vector_store %arg21[%c2_145, %c0_146, %c0_147], %251 {strides = array<i32>} : memref<4x8x32xf32, #tpu.memory_space<vmem>>, vector<1x8x32xf32>,
      %252 = vector.extract_strided_slice %226 {offsets = [0, 24], sizes = [8, 8], strides = [1, 1]} : vector<8x32xf32> to vector<8x8xf32>
      %253 = arith.truncf %252 : vector<8x8xf32> to vector<8x8xbf16>
      %c3_148 = arith.constant 3 : index
      %c0_149 = arith.constant 0 : index
      %c0_150 = arith.constant 0 : index
      %254 = vector.load %arg10[%c3_148, %c0_149, %c0_150] : memref<4x8x32xbf16, #tpu.memory_space<vmem>>, vector<1x8x32xbf16>
      %255 = vector.shape_cast %254 : vector<1x8x32xbf16> to vector<8x32xbf16>
      %cst_151 = arith.constant dense<0.000000e+00> : vector<8x32xf32>
      %256 = tpu.matmul %253, %255, %cst_151 {dimension_numbers = #tpu.dot_dimension_numbers<[1], [0], [0], [1], [0, 0, 1, 1], [], []>} : vector<8x8xbf16>, vector<8x32xbf16>, vector<8x32xf32> -> vector<8x32xf32>
      %c3_152 = arith.constant 3 : index
      %c0_153 = arith.constant 0 : index
      %c0_154 = arith.constant 0 : index
      %257 = vector.load %arg21[%c3_152, %c0_153, %c0_154] : memref<4x8x32xf32, #tpu.memory_space<vmem>>, vector<1x8x32xf32>
      %258 = vector.shape_cast %257 : vector<1x8x32xf32> to vector<8x32xf32>
      %259 = vector.shape_cast %256 : vector<8x32xf32> to vector<1x8x32xf32>
      tpu.vector_store %arg21[%c3_152, %c0_153, %c0_154], %259 {strides = array<i32>} : memref<4x8x32xf32, #tpu.memory_space<vmem>>, vector<1x8x32xf32>,
    } else {
    }
    %c0 = arith.constant 0 : index
    %c0_1 = arith.constant 0 : index
    %c0_2 = arith.constant 0 : index
    %3 = vector.load %arg4[%c0, %c0_1, %c0_2] : memref<1x8x32xf32, #tpu.memory_space<vmem>>, vector<1x8x32xf32>
    %4 = vector.shape_cast %3 : vector<1x8x32xf32> to vector<8x32xf32>
    %5 = arith.truncf %4 : vector<8x32xf32> to vector<8x32xbf16>
    %c0_3 = arith.constant 0 : index
    %c0_4 = arith.constant 0 : index
    %6 = vector.load %arg8[%c0_3, %c0_4] : memref<32x64xbf16, #tpu.memory_space<vmem>>, vector<32x64xbf16>
    %cst = arith.constant dense<0.000000e+00> : vector<8x64xf32>
    %7 = tpu.matmul %5, %6, %cst {dimension_numbers = #tpu.dot_dimension_numbers<[1], [0], [0], [1], [0, 0, 1, 1], [], []>} : vector<8x32xbf16>, vector<32x64xbf16>, vector<8x64xf32> -> vector<8x64xf32>
    %c0_5 = arith.constant 0 : index
    %c0_6 = arith.constant 0 : index
    %8 = vector.load %arg9[%c0_5, %c0_6] : memref<1x64xf32, #tpu.memory_space<vmem>>, vector<1x64xf32>
    %9 = vector.broadcast %8 : vector<1x64xf32> to vector<8x64xf32>
    %10 = arith.addf %7, %9 : vector<8x64xf32>
    %11 = vector.extract_strided_slice %10 {offsets = [0, 0], sizes = [8, 32], strides = [1, 1]} : vector<8x64xf32> to vector<8x32xf32>
    %12 = arith.truncf %11 : vector<8x32xf32> to vector<8x32xbf16>
    %13 = vector.extract_strided_slice %10 {offsets = [0, 32], sizes = [8, 32], strides = [1, 1]} : vector<8x64xf32> to vector<8x32xf32>
    %14 = arith.truncf %13 : vector<8x32xf32> to vector<8x32xbf16>
    %c0_7 = arith.constant 0 : index
    %c0_8 = arith.constant 0 : index
    %c0_9 = arith.constant 0 : index
    %c0_10 = arith.constant 0 : index
    %15 = vector.load %arg5[%c0_7, %c0_8, %c0_9, %c0_10] : memref<1x8x8x32xbf16, #tpu.memory_space<vmem>>, vector<1x8x8x32xbf16>
    %16 = vector.shape_cast %15 : vector<1x8x8x32xbf16> to vector<8x8x32xbf16>
    %c0_11 = arith.constant 0 : index
    %c0_12 = arith.constant 0 : index
    %17 = vector.load %arg20[%c0_11, %c0_12] : memref<8x32xf32, #tpu.memory_space<vmem>>, vector<8x32xf32>
    %18 = vector.extract_strided_slice %17 {offsets = [0, 0], sizes = [8, 8], strides = [1, 1]} : vector<8x32xf32> to vector<8x8xf32>
    %19 = arith.truncf %18 : vector<8x8xf32> to vector<8x8xbf16>
    %20 = vector.extract_strided_slice %12 {offsets = [0, 0], sizes = [8, 8], strides = [1, 1]} : vector<8x32xbf16> to vector<8x8xbf16>
    %21 = vector.extract_strided_slice %14 {offsets = [0, 0], sizes = [8, 8], strides = [1, 1]} : vector<8x32xbf16> to vector<8x8xbf16>
    %cst_13 = arith.constant dense<0.000000e+00> : vector<8x8xf32>
    %22 = tpu.matmul %19, %20, %cst_13 {dimension_numbers = #tpu.dot_dimension_numbers<[1], [1], [0], [0], [0, 0, 1, 0], [], []>} : vector<8x8xbf16>, vector<8x8xbf16>, vector<8x8xf32> -> vector<8x8xf32>
    %c0_14 = arith.constant 0 : index
    %c0_15 = arith.constant 0 : index
    %c0_16 = arith.constant 0 : index
    %23 = vector.load %arg21[%c0_14, %c0_15, %c0_16] : memref<4x8x32xf32, #tpu.memory_space<vmem>>, vector<1x8x32xf32>
    %24 = vector.shape_cast %23 : vector<1x8x32xf32> to vector<8x32xf32>
    %25 = vector.shape_cast %24 : vector<8x32xf32> to vector<8x1x32xf32>
    %26 = arith.extf %16 : vector<8x8x32xbf16> to vector<8x8x32xf32>
    %27 = vector.broadcast %25 : vector<8x1x32xf32> to vector<8x8x32xf32>
    %28 = arith.mulf %26, %27 : vector<8x8x32xf32>
    %cst_17 = arith.constant dense<0.000000e+00> : vector<8x8xf32>
    %29 = vector.multi_reduction <add>, %28, %cst_17 [2] : vector<8x8x32xf32> to vector<8x8xf32>
    %c0_18 = arith.constant 0 : index
    %c0_19 = arith.constant 0 : index
    %30 = vector.load %arg11[%c0_18, %c0_19] : memref<1x32xf32, #tpu.memory_space<vmem>>, vector<1x8xf32>
    %31 = vector.broadcast %30 : vector<1x8xf32> to vector<8x8xf32>
    %32 = arith.mulf %18, %31 : vector<8x8xf32>
    %cst_20 = arith.constant dense<0.000000e+00> : vector<8xf32>
    %33 = vector.multi_reduction <add>, %32, %cst_20 [1] : vector<8x8xf32> to vector<8xf32>
    %34 = vector.shape_cast %33 : vector<8xf32> to vector<8x1xf32>
    %35 = vector.broadcast %34 : vector<8x1xf32> to vector<8x8xf32>
    %36 = arith.addf %29, %35 : vector<8x8xf32>
    %37 = arith.addf %22, %36 : vector<8x8xf32>
    %c0_21 = arith.constant 0 : index
    %c0_22 = arith.constant 0 : index
    %c0_23 = arith.constant 0 : index
    %38 = vector.load %arg17[%c0_21, %c0_22, %c0_23] : memref<4x8x1xf32, #tpu.memory_space<vmem>>, vector<1x8x1xf32>
    %39 = vector.shape_cast %38 : vector<1x8x1xf32> to vector<8x1xf32>
    %cst_24 = arith.constant dense<0xFF800000> : vector<8xf32>
    %40 = vector.multi_reduction <maximumf>, %37, %cst_24 [1] : vector<8x8xf32> to vector<8xf32>
    %41 = vector.shape_cast %40 : vector<8xf32> to vector<8x1xf32>
    %42 = arith.maximumf %39, %41 : vector<8x1xf32>
    %43 = arith.subf %39, %42 : vector<8x1xf32>
    %44 = math.exp %43 : vector<8x1xf32>
    %45 = vector.broadcast %42 : vector<8x1xf32> to vector<8x8xf32>
    %46 = arith.subf %37, %45 : vector<8x8xf32>
    %47 = math.exp %46 : vector<8x8xf32>
    %c0_25 = arith.constant 0 : index
    %c0_26 = arith.constant 0 : index
    %c0_27 = arith.constant 0 : index
    %48 = vector.load %arg18[%c0_25, %c0_26, %c0_27] : memref<4x8x1xf32, #tpu.memory_space<vmem>>, vector<1x8x1xf32>
    %49 = vector.shape_cast %48 : vector<1x8x1xf32> to vector<8x1xf32>
    %50 = arith.mulf %44, %49 : vector<8x1xf32>
    %cst_28 = arith.constant dense<0.000000e+00> : vector<8xf32>
    %51 = vector.multi_reduction <add>, %47, %cst_28 [1] : vector<8x8xf32> to vector<8xf32>
    %52 = vector.shape_cast %51 : vector<8xf32> to vector<8x1xf32>
    %53 = arith.addf %50, %52 : vector<8x1xf32>
    %c0_29 = arith.constant 0 : index
    %c0_30 = arith.constant 0 : index
    %c0_31 = arith.constant 0 : index
    %54 = vector.load %arg18[%c0_29, %c0_30, %c0_31] : memref<4x8x1xf32, #tpu.memory_space<vmem>>, vector<1x8x1xf32>
    %55 = vector.shape_cast %54 : vector<1x8x1xf32> to vector<8x1xf32>
    %56 = vector.shape_cast %53 : vector<8x1xf32> to vector<1x8x1xf32>
    tpu.vector_store %arg18[%c0_29, %c0_30, %c0_31], %56 {strides = array<i32>} : memref<4x8x1xf32, #tpu.memory_space<vmem>>, vector<1x8x1xf32>,
    %c0_32 = arith.constant 0 : index
    %c0_33 = arith.constant 0 : index
    %c0_34 = arith.constant 0 : index
    %57 = vector.load %arg17[%c0_32, %c0_33, %c0_34] : memref<4x8x1xf32, #tpu.memory_space<vmem>>, vector<1x8x1xf32>
    %58 = vector.shape_cast %57 : vector<1x8x1xf32> to vector<8x1xf32>
    %59 = vector.shape_cast %42 : vector<8x1xf32> to vector<1x8x1xf32>
    tpu.vector_store %arg17[%c0_32, %c0_33, %c0_34], %59 {strides = array<i32>} : memref<4x8x1xf32, #tpu.memory_space<vmem>>, vector<1x8x1xf32>,
    %60 = vector.shape_cast %44 : vector<8x1xf32> to vector<8x1xf32>
    %61 = vector.broadcast %60 : vector<8x1xf32> to vector<8x8xf32>
    %62 = arith.truncf %47 : vector<8x8xf32> to vector<8x8xbf16>
    %cst_35 = arith.constant dense<0.000000e+00> : vector<8x8xf32>
    %63 = tpu.matmul %62, %21, %cst_35 {dimension_numbers = #tpu.dot_dimension_numbers<[1], [0], [0], [1], [0, 0, 1, 1], [], []>} : vector<8x8xbf16>, vector<8x8xbf16>, vector<8x8xf32> -> vector<8x8xf32>
    %64 = vector.extract_strided_slice %17 {offsets = [0, 8], sizes = [8, 8], strides = [1, 1]} : vector<8x32xf32> to vector<8x8xf32>
    %65 = arith.truncf %64 : vector<8x8xf32> to vector<8x8xbf16>
    %66 = vector.extract_strided_slice %12 {offsets = [0, 8], sizes = [8, 8], strides = [1, 1]} : vector<8x32xbf16> to vector<8x8xbf16>
    %67 = vector.extract_strided_slice %14 {offsets = [0, 8], sizes = [8, 8], strides = [1, 1]} : vector<8x32xbf16> to vector<8x8xbf16>
    %cst_36 = arith.constant dense<0.000000e+00> : vector<8x8xf32>
    %68 = tpu.matmul %65, %66, %cst_36 {dimension_numbers = #tpu.dot_dimension_numbers<[1], [1], [0], [0], [0, 0, 1, 0], [], []>} : vector<8x8xbf16>, vector<8x8xbf16>, vector<8x8xf32> -> vector<8x8xf32>
    %c1 = arith.constant 1 : index
    %c0_37 = arith.constant 0 : index
    %c0_38 = arith.constant 0 : index
    %69 = vector.load %arg21[%c1, %c0_37, %c0_38] : memref<4x8x32xf32, #tpu.memory_space<vmem>>, vector<1x8x32xf32>
    %70 = vector.shape_cast %69 : vector<1x8x32xf32> to vector<8x32xf32>
    %71 = vector.shape_cast %70 : vector<8x32xf32> to vector<8x1x32xf32>
    %72 = arith.extf %16 : vector<8x8x32xbf16> to vector<8x8x32xf32>
    %73 = vector.broadcast %71 : vector<8x1x32xf32> to vector<8x8x32xf32>
    %74 = arith.mulf %72, %73 : vector<8x8x32xf32>
    %cst_39 = arith.constant dense<0.000000e+00> : vector<8x8xf32>
    %75 = vector.multi_reduction <add>, %74, %cst_39 [2] : vector<8x8x32xf32> to vector<8x8xf32>
    %c0_40 = arith.constant 0 : index
    %c8 = arith.constant 8 : index
    %76 = vector.load %arg11[%c0_40, %c8] : memref<1x32xf32, #tpu.memory_space<vmem>>, vector<1x8xf32>
    %77 = vector.broadcast %76 : vector<1x8xf32> to vector<8x8xf32>
    %78 = arith.mulf %64, %77 : vector<8x8xf32>
    %cst_41 = arith.constant dense<0.000000e+00> : vector<8xf32>
    %79 = vector.multi_reduction <add>, %78, %cst_41 [1] : vector<8x8xf32> to vector<8xf32>
    %80 = vector.shape_cast %79 : vector<8xf32> to vector<8x1xf32>
    %81 = vector.broadcast %80 : vector<8x1xf32> to vector<8x8xf32>
    %82 = arith.addf %75, %81 : vector<8x8xf32>
    %83 = arith.addf %68, %82 : vector<8x8xf32>
    %c1_42 = arith.constant 1 : index
    %c0_43 = arith.constant 0 : index
    %c0_44 = arith.constant 0 : index
    %84 = vector.load %arg17[%c1_42, %c0_43, %c0_44] : memref<4x8x1xf32, #tpu.memory_space<vmem>>, vector<1x8x1xf32>
    %85 = vector.shape_cast %84 : vector<1x8x1xf32> to vector<8x1xf32>
    %cst_45 = arith.constant dense<0xFF800000> : vector<8xf32>
    %86 = vector.multi_reduction <maximumf>, %83, %cst_45 [1] : vector<8x8xf32> to vector<8xf32>
    %87 = vector.shape_cast %86 : vector<8xf32> to vector<8x1xf32>
    %88 = arith.maximumf %85, %87 : vector<8x1xf32>
    %89 = arith.subf %85, %88 : vector<8x1xf32>
    %90 = math.exp %89 : vector<8x1xf32>
    %91 = vector.broadcast %88 : vector<8x1xf32> to vector<8x8xf32>
    %92 = arith.subf %83, %91 : vector<8x8xf32>
    %93 = math.exp %92 : vector<8x8xf32>
    %c1_46 = arith.constant 1 : index
    %c0_47 = arith.constant 0 : index
    %c0_48 = arith.constant 0 : index
    %94 = vector.load %arg18[%c1_46, %c0_47, %c0_48] : memref<4x8x1xf32, #tpu.memory_space<vmem>>, vector<1x8x1xf32>
    %95 = vector.shape_cast %94 : vector<1x8x1xf32> to vector<8x1xf32>
    %96 = arith.mulf %90, %95 : vector<8x1xf32>
    %cst_49 = arith.constant dense<0.000000e+00> : vector<8xf32>
    %97 = vector.multi_reduction <add>, %93, %cst_49 [1] : vector<8x8xf32> to vector<8xf32>
    %98 = vector.shape_cast %97 : vector<8xf32> to vector<8x1xf32>
    %99 = arith.addf %96, %98 : vector<8x1xf32>
    %c1_50 = arith.constant 1 : index
    %c0_51 = arith.constant 0 : index
    %c0_52 = arith.constant 0 : index
    %100 = vector.load %arg18[%c1_50, %c0_51, %c0_52] : memref<4x8x1xf32, #tpu.memory_space<vmem>>, vector<1x8x1xf32>
    %101 = vector.shape_cast %100 : vector<1x8x1xf32> to vector<8x1xf32>
    %102 = vector.shape_cast %99 : vector<8x1xf32> to vector<1x8x1xf32>
    tpu.vector_store %arg18[%c1_50, %c0_51, %c0_52], %102 {strides = array<i32>} : memref<4x8x1xf32, #tpu.memory_space<vmem>>, vector<1x8x1xf32>,
    %c1_53 = arith.constant 1 : index
    %c0_54 = arith.constant 0 : index
    %c0_55 = arith.constant 0 : index
    %103 = vector.load %arg17[%c1_53, %c0_54, %c0_55] : memref<4x8x1xf32, #tpu.memory_space<vmem>>, vector<1x8x1xf32>
    %104 = vector.shape_cast %103 : vector<1x8x1xf32> to vector<8x1xf32>
    %105 = vector.shape_cast %88 : vector<8x1xf32> to vector<1x8x1xf32>
    tpu.vector_store %arg17[%c1_53, %c0_54, %c0_55], %105 {strides = array<i32>} : memref<4x8x1xf32, #tpu.memory_space<vmem>>, vector<1x8x1xf32>,
    %106 = vector.shape_cast %90 : vector<8x1xf32> to vector<8x1xf32>
    %107 = vector.broadcast %106 : vector<8x1xf32> to vector<8x8xf32>
    %108 = arith.truncf %93 : vector<8x8xf32> to vector<8x8xbf16>
    %cst_56 = arith.constant dense<0.000000e+00> : vector<8x8xf32>
    %109 = tpu.matmul %108, %67, %cst_56 {dimension_numbers = #tpu.dot_dimension_numbers<[1], [0], [0], [1], [0, 0, 1, 1], [], []>} : vector<8x8xbf16>, vector<8x8xbf16>, vector<8x8xf32> -> vector<8x8xf32>
    %110 = vector.extract_strided_slice %17 {offsets = [0, 16], sizes = [8, 8], strides = [1, 1]} : vector<8x32xf32> to vector<8x8xf32>
    %111 = arith.truncf %110 : vector<8x8xf32> to vector<8x8xbf16>
    %112 = vector.extract_strided_slice %12 {offsets = [0, 16], sizes = [8, 8], strides = [1, 1]} : vector<8x32xbf16> to vector<8x8xbf16>
    %113 = vector.extract_strided_slice %14 {offsets = [0, 16], sizes = [8, 8], strides = [1, 1]} : vector<8x32xbf16> to vector<8x8xbf16>
    %cst_57 = arith.constant dense<0.000000e+00> : vector<8x8xf32>
    %114 = tpu.matmul %111, %112, %cst_57 {dimension_numbers = #tpu.dot_dimension_numbers<[1], [1], [0], [0], [0, 0, 1, 0], [], []>} : vector<8x8xbf16>, vector<8x8xbf16>, vector<8x8xf32> -> vector<8x8xf32>
    %c2 = arith.constant 2 : index
    %c0_58 = arith.constant 0 : index
    %c0_59 = arith.constant 0 : index
    %115 = vector.load %arg21[%c2, %c0_58, %c0_59] : memref<4x8x32xf32, #tpu.memory_space<vmem>>, vector<1x8x32xf32>
    %116 = vector.shape_cast %115 : vector<1x8x32xf32> to vector<8x32xf32>
    %117 = vector.shape_cast %116 : vector<8x32xf32> to vector<8x1x32xf32>
    %118 = arith.extf %16 : vector<8x8x32xbf16> to vector<8x8x32xf32>
    %119 = vector.broadcast %117 : vector<8x1x32xf32> to vector<8x8x32xf32>
    %120 = arith.mulf %118, %119 : vector<8x8x32xf32>
    %cst_60 = arith.constant dense<0.000000e+00> : vector<8x8xf32>
    %121 = vector.multi_reduction <add>, %120, %cst_60 [2] : vector<8x8x32xf32> to vector<8x8xf32>
    %c0_61 = arith.constant 0 : index
    %c16 = arith.constant 16 : index
    %122 = vector.load %arg11[%c0_61, %c16] : memref<1x32xf32, #tpu.memory_space<vmem>>, vector<1x8xf32>
    %123 = vector.broadcast %122 : vector<1x8xf32> to vector<8x8xf32>
    %124 = arith.mulf %110, %123 : vector<8x8xf32>
    %cst_62 = arith.constant dense<0.000000e+00> : vector<8xf32>
    %125 = vector.multi_reduction <add>, %124, %cst_62 [1] : vector<8x8xf32> to vector<8xf32>
    %126 = vector.shape_cast %125 : vector<8xf32> to vector<8x1xf32>
    %127 = vector.broadcast %126 : vector<8x1xf32> to vector<8x8xf32>
    %128 = arith.addf %121, %127 : vector<8x8xf32>
    %129 = arith.addf %114, %128 : vector<8x8xf32>
    %c2_63 = arith.constant 2 : index
    %c0_64 = arith.constant 0 : index
    %c0_65 = arith.constant 0 : index
    %130 = vector.load %arg17[%c2_63, %c0_64, %c0_65] : memref<4x8x1xf32, #tpu.memory_space<vmem>>, vector<1x8x1xf32>
    %131 = vector.shape_cast %130 : vector<1x8x1xf32> to vector<8x1xf32>
    %cst_66 = arith.constant dense<0xFF800000> : vector<8xf32>
    %132 = vector.multi_reduction <maximumf>, %129, %cst_66 [1] : vector<8x8xf32> to vector<8xf32>
    %133 = vector.shape_cast %132 : vector<8xf32> to vector<8x1xf32>
    %134 = arith.maximumf %131, %133 : vector<8x1xf32>
    %135 = arith.subf %131, %134 : vector<8x1xf32>
    %136 = math.exp %135 : vector<8x1xf32>
    %137 = vector.broadcast %134 : vector<8x1xf32> to vector<8x8xf32>
    %138 = arith.subf %129, %137 : vector<8x8xf32>
    %139 = math.exp %138 : vector<8x8xf32>
    %c2_67 = arith.constant 2 : index
    %c0_68 = arith.constant 0 : index
    %c0_69 = arith.constant 0 : index
    %140 = vector.load %arg18[%c2_67, %c0_68, %c0_69] : memref<4x8x1xf32, #tpu.memory_space<vmem>>, vector<1x8x1xf32>
    %141 = vector.shape_cast %140 : vector<1x8x1xf32> to vector<8x1xf32>
    %142 = arith.mulf %136, %141 : vector<8x1xf32>
    %cst_70 = arith.constant dense<0.000000e+00> : vector<8xf32>
    %143 = vector.multi_reduction <add>, %139, %cst_70 [1] : vector<8x8xf32> to vector<8xf32>
    %144 = vector.shape_cast %143 : vector<8xf32> to vector<8x1xf32>
    %145 = arith.addf %142, %144 : vector<8x1xf32>
    %c2_71 = arith.constant 2 : index
    %c0_72 = arith.constant 0 : index
    %c0_73 = arith.constant 0 : index
    %146 = vector.load %arg18[%c2_71, %c0_72, %c0_73] : memref<4x8x1xf32, #tpu.memory_space<vmem>>, vector<1x8x1xf32>
    %147 = vector.shape_cast %146 : vector<1x8x1xf32> to vector<8x1xf32>
    %148 = vector.shape_cast %145 : vector<8x1xf32> to vector<1x8x1xf32>
    tpu.vector_store %arg18[%c2_71, %c0_72, %c0_73], %148 {strides = array<i32>} : memref<4x8x1xf32, #tpu.memory_space<vmem>>, vector<1x8x1xf32>,
    %c2_74 = arith.constant 2 : index
    %c0_75 = arith.constant 0 : index
    %c0_76 = arith.constant 0 : index
    %149 = vector.load %arg17[%c2_74, %c0_75, %c0_76] : memref<4x8x1xf32, #tpu.memory_space<vmem>>, vector<1x8x1xf32>
    %150 = vector.shape_cast %149 : vector<1x8x1xf32> to vector<8x1xf32>
    %151 = vector.shape_cast %134 : vector<8x1xf32> to vector<1x8x1xf32>
    tpu.vector_store %arg17[%c2_74, %c0_75, %c0_76], %151 {strides = array<i32>} : memref<4x8x1xf32, #tpu.memory_space<vmem>>, vector<1x8x1xf32>,
    %152 = vector.shape_cast %136 : vector<8x1xf32> to vector<8x1xf32>
    %153 = vector.broadcast %152 : vector<8x1xf32> to vector<8x8xf32>
    %154 = arith.truncf %139 : vector<8x8xf32> to vector<8x8xbf16>
    %cst_77 = arith.constant dense<0.000000e+00> : vector<8x8xf32>
    %155 = tpu.matmul %154, %113, %cst_77 {dimension_numbers = #tpu.dot_dimension_numbers<[1], [0], [0], [1], [0, 0, 1, 1], [], []>} : vector<8x8xbf16>, vector<8x8xbf16>, vector<8x8xf32> -> vector<8x8xf32>
    %156 = vector.extract_strided_slice %17 {offsets = [0, 24], sizes = [8, 8], strides = [1, 1]} : vector<8x32xf32> to vector<8x8xf32>
    %157 = arith.truncf %156 : vector<8x8xf32> to vector<8x8xbf16>
    %158 = vector.extract_strided_slice %12 {offsets = [0, 24], sizes = [8, 8], strides = [1, 1]} : vector<8x32xbf16> to vector<8x8xbf16>
    %159 = vector.extract_strided_slice %14 {offsets = [0, 24], sizes = [8, 8], strides = [1, 1]} : vector<8x32xbf16> to vector<8x8xbf16>
    %cst_78 = arith.constant dense<0.000000e+00> : vector<8x8xf32>
    %160 = tpu.matmul %157, %158, %cst_78 {dimension_numbers = #tpu.dot_dimension_numbers<[1], [1], [0], [0], [0, 0, 1, 0], [], []>} : vector<8x8xbf16>, vector<8x8xbf16>, vector<8x8xf32> -> vector<8x8xf32>
    %c3 = arith.constant 3 : index
    %c0_79 = arith.constant 0 : index
    %c0_80 = arith.constant 0 : index
    %161 = vector.load %arg21[%c3, %c0_79, %c0_80] : memref<4x8x32xf32, #tpu.memory_space<vmem>>, vector<1x8x32xf32>
    %162 = vector.shape_cast %161 : vector<1x8x32xf32> to vector<8x32xf32>
    %163 = vector.shape_cast %162 : vector<8x32xf32> to vector<8x1x32xf32>
    %164 = arith.extf %16 : vector<8x8x32xbf16> to vector<8x8x32xf32>
    %165 = vector.broadcast %163 : vector<8x1x32xf32> to vector<8x8x32xf32>
    %166 = arith.mulf %164, %165 : vector<8x8x32xf32>
    %cst_81 = arith.constant dense<0.000000e+00> : vector<8x8xf32>
    %167 = vector.multi_reduction <add>, %166, %cst_81 [2] : vector<8x8x32xf32> to vector<8x8xf32>
    %c0_82 = arith.constant 0 : index
    %c24 = arith.constant 24 : index
    %168 = vector.load %arg11[%c0_82, %c24] : memref<1x32xf32, #tpu.memory_space<vmem>>, vector<1x8xf32>
    %169 = vector.broadcast %168 : vector<1x8xf32> to vector<8x8xf32>
    %170 = arith.mulf %156, %169 : vector<8x8xf32>
    %cst_83 = arith.constant dense<0.000000e+00> : vector<8xf32>
    %171 = vector.multi_reduction <add>, %170, %cst_83 [1] : vector<8x8xf32> to vector<8xf32>
    %172 = vector.shape_cast %171 : vector<8xf32> to vector<8x1xf32>
    %173 = vector.broadcast %172 : vector<8x1xf32> to vector<8x8xf32>
    %174 = arith.addf %167, %173 : vector<8x8xf32>
    %175 = arith.addf %160, %174 : vector<8x8xf32>
    %c3_84 = arith.constant 3 : index
    %c0_85 = arith.constant 0 : index
    %c0_86 = arith.constant 0 : index
    %176 = vector.load %arg17[%c3_84, %c0_85, %c0_86] : memref<4x8x1xf32, #tpu.memory_space<vmem>>, vector<1x8x1xf32>
    %177 = vector.shape_cast %176 : vector<1x8x1xf32> to vector<8x1xf32>
    %cst_87 = arith.constant dense<0xFF800000> : vector<8xf32>
    %178 = vector.multi_reduction <maximumf>, %175, %cst_87 [1] : vector<8x8xf32> to vector<8xf32>
    %179 = vector.shape_cast %178 : vector<8xf32> to vector<8x1xf32>
    %180 = arith.maximumf %177, %179 : vector<8x1xf32>
    %181 = arith.subf %177, %180 : vector<8x1xf32>
    %182 = math.exp %181 : vector<8x1xf32>
    %183 = vector.broadcast %180 : vector<8x1xf32> to vector<8x8xf32>
    %184 = arith.subf %175, %183 : vector<8x8xf32>
    %185 = math.exp %184 : vector<8x8xf32>
    %c3_88 = arith.constant 3 : index
    %c0_89 = arith.constant 0 : index
    %c0_90 = arith.constant 0 : index
    %186 = vector.load %arg18[%c3_88, %c0_89, %c0_90] : memref<4x8x1xf32, #tpu.memory_space<vmem>>, vector<1x8x1xf32>
    %187 = vector.shape_cast %186 : vector<1x8x1xf32> to vector<8x1xf32>
    %188 = arith.mulf %182, %187 : vector<8x1xf32>
    %cst_91 = arith.constant dense<0.000000e+00> : vector<8xf32>
    %189 = vector.multi_reduction <add>, %185, %cst_91 [1] : vector<8x8xf32> to vector<8xf32>
    %190 = vector.shape_cast %189 : vector<8xf32> to vector<8x1xf32>
    %191 = arith.addf %188, %190 : vector<8x1xf32>
    %c3_92 = arith.constant 3 : index
    %c0_93 = arith.constant 0 : index
    %c0_94 = arith.constant 0 : index
    %192 = vector.load %arg18[%c3_92, %c0_93, %c0_94] : memref<4x8x1xf32, #tpu.memory_space<vmem>>, vector<1x8x1xf32>
    %193 = vector.shape_cast %192 : vector<1x8x1xf32> to vector<8x1xf32>
    %194 = vector.shape_cast %191 : vector<8x1xf32> to vector<1x8x1xf32>
    tpu.vector_store %arg18[%c3_92, %c0_93, %c0_94], %194 {strides = array<i32>} : memref<4x8x1xf32, #tpu.memory_space<vmem>>, vector<1x8x1xf32>,
    %c3_95 = arith.constant 3 : index
    %c0_96 = arith.constant 0 : index
    %c0_97 = arith.constant 0 : index
    %195 = vector.load %arg17[%c3_95, %c0_96, %c0_97] : memref<4x8x1xf32, #tpu.memory_space<vmem>>, vector<1x8x1xf32>
    %196 = vector.shape_cast %195 : vector<1x8x1xf32> to vector<8x1xf32>
    %197 = vector.shape_cast %180 : vector<8x1xf32> to vector<1x8x1xf32>
    tpu.vector_store %arg17[%c3_95, %c0_96, %c0_97], %197 {strides = array<i32>} : memref<4x8x1xf32, #tpu.memory_space<vmem>>, vector<1x8x1xf32>,
    %198 = vector.shape_cast %182 : vector<8x1xf32> to vector<8x1xf32>
    %199 = vector.broadcast %198 : vector<8x1xf32> to vector<8x8xf32>
    %200 = arith.truncf %185 : vector<8x8xf32> to vector<8x8xbf16>
    %cst_98 = arith.constant dense<0.000000e+00> : vector<8x8xf32>
    %201 = tpu.matmul %200, %159, %cst_98 {dimension_numbers = #tpu.dot_dimension_numbers<[1], [0], [0], [1], [0, 0, 1, 1], [], []>} : vector<8x8xbf16>, vector<8x8xbf16>, vector<8x8xf32> -> vector<8x8xf32>
    %202 = tpu.concatenate %61, %107, %153, %199 in 1 : vector<8x8xf32>, vector<8x8xf32>, vector<8x8xf32>, vector<8x8xf32> -> vector<8x32xf32>
    %c0_99 = arith.constant 0 : index
    %c0_100 = arith.constant 0 : index
    %203 = vector.load %arg19[%c0_99, %c0_100] : memref<8x32xf32, #tpu.memory_space<vmem>>, vector<8x32xf32>
    %204 = arith.mulf %202, %203 : vector<8x32xf32>
    %205 = tpu.concatenate %63, %109, %155, %201 in 1 : vector<8x8xf32>, vector<8x8xf32>, vector<8x8xf32>, vector<8x8xf32> -> vector<8x32xf32>
    %206 = arith.addf %204, %205 : vector<8x32xf32>
    %c0_101 = arith.constant 0 : index
    %c0_102 = arith.constant 0 : index
    %207 = vector.load %arg19[%c0_101, %c0_102] : memref<8x32xf32, #tpu.memory_space<vmem>>, vector<8x32xf32>
    tpu.vector_store %arg19[%c0_101, %c0_102], %206 {strides = array<i32>} : memref<8x32xf32, #tpu.memory_space<vmem>>, vector<8x32xf32>,
    %c0_i32_103 = arith.constant 0 : i32
    %208 = arith.cmpi eq, %arg2, %c0_i32_103 : i32
    %209 = arith.extui %208 : i1 to i32
    %c0_i32_104 = arith.constant 0 : i32
    %210 = arith.cmpi ne, %209, %c0_i32_104 : i32
    scf.if %210 {
      %c0_105 = arith.constant 0 : index
      %c0_106 = arith.constant 0 : index
      %c0_107 = arith.constant 0 : index
      %211 = vector.load %arg18[%c0_105, %c0_106, %c0_107] : memref<4x8x1xf32, #tpu.memory_space<vmem>>, vector<1x8x1xf32>
      %212 = vector.shape_cast %211 : vector<1x8x1xf32> to vector<8x1xf32>
      %213 = tpu.reciprocal %212 {approx = true} : vector<8x1xf32> -> vector<8x1xf32>
      %214 = vector.shape_cast %213 : vector<8x1xf32> to vector<8x1xf32>
      %215 = vector.broadcast %214 : vector<8x1xf32> to vector<8x8xf32>
      %c1_108 = arith.constant 1 : index
      %c0_109 = arith.constant 0 : index
      %c0_110 = arith.constant 0 : index
      %216 = vector.load %arg18[%c1_108, %c0_109, %c0_110] : memref<4x8x1xf32, #tpu.memory_space<vmem>>, vector<1x8x1xf32>
      %217 = vector.shape_cast %216 : vector<1x8x1xf32> to vector<8x1xf32>
      %218 = tpu.reciprocal %217 {approx = true} : vector<8x1xf32> -> vector<8x1xf32>
      %219 = vector.shape_cast %218 : vector<8x1xf32> to vector<8x1xf32>
      %220 = vector.broadcast %219 : vector<8x1xf32> to vector<8x8xf32>
      %c2_111 = arith.constant 2 : index
      %c0_112 = arith.constant 0 : index
      %c0_113 = arith.constant 0 : index
      %221 = vector.load %arg18[%c2_111, %c0_112, %c0_113] : memref<4x8x1xf32, #tpu.memory_space<vmem>>, vector<1x8x1xf32>
      %222 = vector.shape_cast %221 : vector<1x8x1xf32> to vector<8x1xf32>
      %223 = tpu.reciprocal %222 {approx = true} : vector<8x1xf32> -> vector<8x1xf32>
      %224 = vector.shape_cast %223 : vector<8x1xf32> to vector<8x1xf32>
      %225 = vector.broadcast %224 : vector<8x1xf32> to vector<8x8xf32>
      %c3_114 = arith.constant 3 : index
      %c0_115 = arith.constant 0 : index
      %c0_116 = arith.constant 0 : index
      %226 = vector.load %arg18[%c3_114, %c0_115, %c0_116] : memref<4x8x1xf32, #tpu.memory_space<vmem>>, vector<1x8x1xf32>
      %227 = vector.shape_cast %226 : vector<1x8x1xf32> to vector<8x1xf32>
      %228 = tpu.reciprocal %227 {approx = true} : vector<8x1xf32> -> vector<8x1xf32>
      %229 = vector.shape_cast %228 : vector<8x1xf32> to vector<8x1xf32>
      %230 = vector.broadcast %229 : vector<8x1xf32> to vector<8x8xf32>
      %c0_117 = arith.constant 0 : index
      %c0_118 = arith.constant 0 : index
      %231 = vector.load %arg19[%c0_117, %c0_118] : memref<8x32xf32, #tpu.memory_space<vmem>>, vector<8x32xf32>
      %232 = tpu.concatenate %215, %220, %225, %230 in 1 : vector<8x8xf32>, vector<8x8xf32>, vector<8x8xf32>, vector<8x8xf32> -> vector<8x32xf32>
      %233 = arith.mulf %231, %232 : vector<8x32xf32>
      %234 = arith.truncf %233 : vector<8x32xf32> to vector<8x32xbf16>
      %c0_119 = arith.constant 0 : index
      %c0_120 = arith.constant 0 : index
      %235 = vector.load %arg12[%c0_119, %c0_120] : memref<32x32xbf16, #tpu.memory_space<vmem>>, vector<32x32xbf16>
      %cst_121 = arith.constant dense<0.000000e+00> : vector<8x32xf32>
      %236 = tpu.matmul %234, %235, %cst_121 {dimension_numbers = #tpu.dot_dimension_numbers<[1], [0], [0], [1], [0, 0, 1, 1], [], []>} : vector<8x32xbf16>, vector<32x32xbf16>, vector<8x32xf32> -> vector<8x32xf32>
      %c0_122 = arith.constant 0 : index
      %c0_123 = arith.constant 0 : index
      %237 = vector.load %arg13[%c0_122, %c0_123] : memref<1x32xf32, #tpu.memory_space<vmem>>, vector<1x32xf32>
      %238 = vector.broadcast %237 : vector<1x32xf32> to vector<8x32xf32>
      %239 = arith.addf %236, %238 : vector<8x32xf32>
      %c0_124 = arith.constant 0 : index
      %c0_125 = arith.constant 0 : index
      %c0_126 = arith.constant 0 : index
      %240 = vector.load %arg3[%c0_124, %c0_125, %c0_126] : memref<1x8x32xf32, #tpu.memory_space<vmem>>, vector<1x8x32xf32>
      %241 = vector.shape_cast %240 : vector<1x8x32xf32> to vector<8x32xf32>
      %242 = arith.addf %239, %241 : vector<8x32xf32>
      %cst_127 = arith.constant dense<0.000000e+00> : vector<8xf32>
      %243 = vector.multi_reduction <add>, %242, %cst_127 [1] : vector<8x32xf32> to vector<8xf32>
      %244 = vector.shape_cast %243 : vector<8xf32> to vector<8x1xf32>
      %cst_128 = arith.constant 3.200000e+01 : f32
      %245 = vector.broadcast %cst_128 : f32 to vector<8x1xf32>
      %246 = arith.divf %244, %245 : vector<8x1xf32>
      %247 = vector.broadcast %246 : vector<8x1xf32> to vector<8x32xf32>
      %248 = arith.subf %242, %247 : vector<8x32xf32>
      %249 = arith.mulf %248, %248 : vector<8x32xf32>
      %cst_129 = arith.constant dense<0.000000e+00> : vector<8xf32>
      %250 = vector.multi_reduction <add>, %249, %cst_129 [1] : vector<8x32xf32> to vector<8xf32>
      %251 = vector.shape_cast %250 : vector<8xf32> to vector<8x1xf32>
      %cst_130 = arith.constant 3.200000e+01 : f32
      %252 = vector.broadcast %cst_130 : f32 to vector<8x1xf32>
      %253 = arith.divf %251, %252 : vector<8x1xf32>
      %254 = vector.broadcast %246 : vector<8x1xf32> to vector<8x32xf32>
      %255 = arith.subf %242, %254 : vector<8x32xf32>
      %cst_131 = arith.constant 9.99999974E-6 : f32
      %256 = vector.broadcast %cst_131 : f32 to vector<8x1xf32>
      %257 = arith.addf %253, %256 : vector<8x1xf32>
      %258 = math.rsqrt %257 : vector<8x1xf32>
      %259 = vector.broadcast %258 : vector<8x1xf32> to vector<8x32xf32>
      %260 = arith.mulf %255, %259 : vector<8x32xf32>
      %c0_132 = arith.constant 0 : index
      %c0_133 = arith.constant 0 : index
      %261 = vector.load %arg14[%c0_132, %c0_133] : memref<1x32xf32, #tpu.memory_space<vmem>>, vector<1x32xf32>
      %262 = vector.broadcast %261 : vector<1x32xf32> to vector<8x32xf32>
      %263 = arith.mulf %260, %262 : vector<8x32xf32>
      %c0_134 = arith.constant 0 : index
      %c0_135 = arith.constant 0 : index
      %264 = vector.load %arg15[%c0_134, %c0_135] : memref<1x32xf32, #tpu.memory_space<vmem>>, vector<1x32xf32>
      %265 = vector.broadcast %264 : vector<1x32xf32> to vector<8x32xf32>
      %266 = arith.addf %263, %265 : vector<8x32xf32>
      %c0_136 = arith.constant 0 : index
      %c0_137 = arith.constant 0 : index
      %c0_138 = arith.constant 0 : index
      %267 = vector.load %arg16[%c0_136, %c0_137, %c0_138] : memref<1x8x32xf32, #tpu.memory_space<vmem>>, vector<1x8x32xf32>
      %268 = vector.shape_cast %267 : vector<1x8x32xf32> to vector<8x32xf32>
      %269 = vector.shape_cast %266 : vector<8x32xf32> to vector<1x8x32xf32>
      tpu.vector_store %arg16[%c0_136, %c0_137, %c0_138], %269 {strides = array<i32>} : memref<1x8x32xf32, #tpu.memory_space<vmem>>, vector<1x8x32xf32>,
    } else {
    }
    return
  }
  func.func @transform_0(%arg0: i32, %arg1: i32, %arg2: i32) -> (i32, i32, i32) {
    %c0_i32 = arith.constant 0 : i32
    %c0_i32_0 = arith.constant 0 : i32
    return %arg0, %arg1, %c0_i32 : i32, i32, i32
  }
  func.func @transform_1(%arg0: i32, %arg1: i32, %arg2: i32) -> (i32, i32, i32) {
    %c0_i32 = arith.constant 0 : i32
    %c0_i32_0 = arith.constant 0 : i32
    return %arg0, %arg2, %c0_i32 : i32, i32, i32
  }
  func.func @transform_2(%arg0: i32, %arg1: i32, %arg2: i32) -> (i32, i32, i32, i32) {
    %c0_i32 = arith.constant 0 : i32
    %c0_i32_0 = arith.constant 0 : i32
    return %arg0, %arg1, %arg2, %c0_i32 : i32, i32, i32, i32
  }
  func.func @transform_3(%arg0: i32, %arg1: i32, %arg2: i32) -> (i32, i32) {
    %c0_i32 = arith.constant 0 : i32
    %c0_i32_0 = arith.constant 0 : i32
    %c0_i32_1 = arith.constant 0 : i32
    return %c0_i32, %c0_i32_0 : i32, i32
  }
  func.func @transform_4(%arg0: i32, %arg1: i32, %arg2: i32) -> (i32, i32) {
    %c0_i32 = arith.constant 0 : i32
    %c0_i32_0 = arith.constant 0 : i32
    %c0_i32_1 = arith.constant 0 : i32
    return %c0_i32, %c0_i32_0 : i32, i32
  }
  func.func @transform_5(%arg0: i32, %arg1: i32, %arg2: i32) -> (i32, i32) {
    %c0_i32 = arith.constant 0 : i32
    %c0_i32_0 = arith.constant 0 : i32
    %c0_i32_1 = arith.constant 0 : i32
    return %c0_i32, %c0_i32_0 : i32, i32
  }
  func.func @transform_6(%arg0: i32, %arg1: i32, %arg2: i32) -> (i32, i32) {
    %c0_i32 = arith.constant 0 : i32
    %c0_i32_0 = arith.constant 0 : i32
    %c0_i32_1 = arith.constant 0 : i32
    return %c0_i32, %c0_i32_0 : i32, i32
  }
  func.func @transform_7(%arg0: i32, %arg1: i32, %arg2: i32) -> (i32, i32, i32) {
    %c0_i32 = arith.constant 0 : i32
    %c0_i32_0 = arith.constant 0 : i32
    %c0_i32_1 = arith.constant 0 : i32
    %c0_i32_2 = arith.constant 0 : i32
    return %c0_i32, %c0_i32_0, %c0_i32_1 : i32, i32, i32
  }
  func.func @transform_8(%arg0: i32, %arg1: i32, %arg2: i32) -> (i32, i32) {
    %c0_i32 = arith.constant 0 : i32
    %c0_i32_0 = arith.constant 0 : i32
    %c0_i32_1 = arith.constant 0 : i32
    return %c0_i32, %c0_i32_0 : i32, i32
  }
  func.func @transform_9(%arg0: i32, %arg1: i32, %arg2: i32) -> (i32, i32) {
    %c0_i32 = arith.constant 0 : i32
    %c0_i32_0 = arith.constant 0 : i32
    %c0_i32_1 = arith.constant 0 : i32
    return %c0_i32, %c0_i32_0 : i32, i32
  }
  func.func @transform_10(%arg0: i32, %arg1: i32, %arg2: i32) -> (i32, i32) {
    %c0_i32 = arith.constant 0 : i32
    %c0_i32_0 = arith.constant 0 : i32
    %c0_i32_1 = arith.constant 0 : i32
    return %c0_i32, %c0_i32_0 : i32, i32
  }
  func.func @transform_11(%arg0: i32, %arg1: i32, %arg2: i32) -> (i32, i32) {
    %c0_i32 = arith.constant 0 : i32
    %c0_i32_0 = arith.constant 0 : i32
    %c0_i32_1 = arith.constant 0 : i32
    return %c0_i32, %c0_i32_0 : i32, i32
  }
  func.func @transform_12(%arg0: i32, %arg1: i32, %arg2: i32) -> (i32, i32) {
    %c0_i32 = arith.constant 0 : i32
    %c0_i32_0 = arith.constant 0 : i32
    %c0_i32_1 = arith.constant 0 : i32
    return %c0_i32, %c0_i32_0 : i32, i32
  }
  func.func @transform_13(%arg0: i32, %arg1: i32, %arg2: i32) -> (i32, i32, i32) {
    %c0_i32 = arith.constant 0 : i32
    %c0_i32_0 = arith.constant 0 : i32
    return %arg0, %arg1, %c0_i32 : i32, i32, i32
  }
}

module attributes {stable_mosaic.version = 11 : i64} {
  func.func @_attn_layer_kernel(%arg0: i32, %arg1: i32, %arg2: i32, %arg3: memref<1x8x32xf32, #tpu.memory_space<vmem>>, %arg4: memref<1x8x32xf32, #tpu.memory_space<vmem>>, %arg5: memref<32x32xbf16, #tpu.memory_space<vmem>>, %arg6: memref<1x32xf32, #tpu.memory_space<vmem>>, %arg7: memref<32x64xbf16, #tpu.memory_space<vmem>>, %arg8: memref<1x64xf32, #tpu.memory_space<vmem>>, %arg9: memref<32x32xbf16, #tpu.memory_space<vmem>>, %arg10: memref<1x32xf32, #tpu.memory_space<vmem>>, %arg11: memref<1x32xf32, #tpu.memory_space<vmem>>, %arg12: memref<1x32xf32, #tpu.memory_space<vmem>>, %arg13: memref<1x8x32xf32, #tpu.memory_space<vmem>>, %arg14: memref<4x8x1xf32, #tpu.memory_space<vmem>>, %arg15: memref<4x8x1xf32, #tpu.memory_space<vmem>>, %arg16: memref<8x32xf32, #tpu.memory_space<vmem>>, %arg17: memref<8x32xf32, #tpu.memory_space<vmem>>) attributes {dimension_semantics = [#tpu.dimension_semantics<parallel>, #tpu.dimension_semantics<parallel>, #tpu.dimension_semantics<arbitrary>], iteration_bounds = array<i64: 2, 1, 1>, scalar_prefetch = 0 : i64, scratch_operands = 4 : i64, tpu.core_type = #tpu.core_type<tc>, window_params = [{transform_indices = @transform_0, window_bounds = array<i64: 1, 8, 32>}, {transform_indices = @transform_1, window_bounds = array<i64: 1, 8, 32>}, {pipeline_mode = #tpu.pipeline_mode<synchronous>, transform_indices = @transform_2, window_bounds = array<i64: 32, 32>}, {pipeline_mode = #tpu.pipeline_mode<synchronous>, transform_indices = @transform_3, window_bounds = array<i64: 1, 32>}, {pipeline_mode = #tpu.pipeline_mode<synchronous>, transform_indices = @transform_4, window_bounds = array<i64: 32, 64>}, {pipeline_mode = #tpu.pipeline_mode<synchronous>, transform_indices = @transform_5, window_bounds = array<i64: 1, 64>}, {pipeline_mode = #tpu.pipeline_mode<synchronous>, transform_indices = @transform_6, window_bounds = array<i64: 32, 32>}, {pipeline_mode = #tpu.pipeline_mode<synchronous>, transform_indices = @transform_7, window_bounds = array<i64: 1, 32>}, {pipeline_mode = #tpu.pipeline_mode<synchronous>, transform_indices = @transform_8, window_bounds = array<i64: 1, 32>}, {pipeline_mode = #tpu.pipeline_mode<synchronous>, transform_indices = @transform_9, window_bounds = array<i64: 1, 32>}, {transform_indices = @transform_10, window_bounds = array<i64: 1, 8, 32>}]} {
    %c0_i32 = arith.constant 0 : i32
    %0 = arith.cmpi eq, %arg2, %c0_i32 : i32
    %1 = arith.extui %0 : i1 to i32
    %c0_i32_0 = arith.constant 0 : i32
    %2 = arith.cmpi ne, %1, %c0_i32_0 : i32
    scf.if %2 {
      %cst_76 = arith.constant 0xFF800000 : f32
      %149 = vector.broadcast %cst_76 : f32 to vector<4x8x1xf32>
      %c0_77 = arith.constant 0 : index
      %c0_78 = arith.constant 0 : index
      %c0_79 = arith.constant 0 : index
      %150 = vector.load %arg14[%c0_77, %c0_78, %c0_79] : memref<4x8x1xf32, #tpu.memory_space<vmem>>, vector<4x8x1xf32>
      tpu.vector_store %arg14[%c0_77, %c0_78, %c0_79], %149 {strides = array<i32>} : memref<4x8x1xf32, #tpu.memory_space<vmem>>, vector<4x8x1xf32>,
      %cst_80 = arith.constant 0.000000e+00 : f32
      %151 = vector.broadcast %cst_80 : f32 to vector<4x8x1xf32>
      %c0_81 = arith.constant 0 : index
      %c0_82 = arith.constant 0 : index
      %c0_83 = arith.constant 0 : index
      %152 = vector.load %arg15[%c0_81, %c0_82, %c0_83] : memref<4x8x1xf32, #tpu.memory_space<vmem>>, vector<4x8x1xf32>
      tpu.vector_store %arg15[%c0_81, %c0_82, %c0_83], %151 {strides = array<i32>} : memref<4x8x1xf32, #tpu.memory_space<vmem>>, vector<4x8x1xf32>,
      %cst_84 = arith.constant 0.000000e+00 : f32
      %153 = vector.broadcast %cst_84 : f32 to vector<8x32xf32>
      %c0_85 = arith.constant 0 : index
      %c0_86 = arith.constant 0 : index
      %154 = vector.load %arg16[%c0_85, %c0_86] : memref<8x32xf32, #tpu.memory_space<vmem>>, vector<8x32xf32>
      tpu.vector_store %arg16[%c0_85, %c0_86], %153 {strides = array<i32>} : memref<8x32xf32, #tpu.memory_space<vmem>>, vector<8x32xf32>,
      %c0_87 = arith.constant 0 : index
      %c0_88 = arith.constant 0 : index
      %c0_89 = arith.constant 0 : index
      %155 = vector.load %arg3[%c0_87, %c0_88, %c0_89] : memref<1x8x32xf32, #tpu.memory_space<vmem>>, vector<1x8x32xf32>
      %156 = vector.shape_cast %155 : vector<1x8x32xf32> to vector<8x32xf32>
      %157 = arith.truncf %156 : vector<8x32xf32> to vector<8x32xbf16>
      %c0_90 = arith.constant 0 : index
      %c0_91 = arith.constant 0 : index
      %158 = vector.load %arg5[%c0_90, %c0_91] : memref<32x32xbf16, #tpu.memory_space<vmem>>, vector<32x32xbf16>
      %cst_92 = arith.constant dense<0.000000e+00> : vector<8x32xf32>
      %159 = tpu.matmul %157, %158, %cst_92 {dimension_numbers = #tpu.dot_dimension_numbers<[1], [0], [0], [1], [0, 0, 1, 1], [], []>} : vector<8x32xbf16>, vector<32x32xbf16>, vector<8x32xf32> -> vector<8x32xf32>
      %c0_93 = arith.constant 0 : index
      %c0_94 = arith.constant 0 : index
      %160 = vector.load %arg6[%c0_93, %c0_94] : memref<1x32xf32, #tpu.memory_space<vmem>>, vector<1x32xf32>
      %161 = vector.broadcast %160 : vector<1x32xf32> to vector<8x32xf32>
      %162 = arith.addf %159, %161 : vector<8x32xf32>
      %cst_95 = arith.constant 0.353553385 : f32
      %163 = vector.broadcast %cst_95 : f32 to vector<8x32xf32>
      %164 = arith.mulf %162, %163 : vector<8x32xf32>
      %c0_96 = arith.constant 0 : index
      %c0_97 = arith.constant 0 : index
      %165 = vector.load %arg17[%c0_96, %c0_97] : memref<8x32xf32, #tpu.memory_space<vmem>>, vector<8x32xf32>
      tpu.vector_store %arg17[%c0_96, %c0_97], %164 {strides = array<i32>} : memref<8x32xf32, #tpu.memory_space<vmem>>, vector<8x32xf32>,
    } else {
    }
    %c0 = arith.constant 0 : index
    %c0_1 = arith.constant 0 : index
    %c0_2 = arith.constant 0 : index
    %3 = vector.load %arg4[%c0, %c0_1, %c0_2] : memref<1x8x32xf32, #tpu.memory_space<vmem>>, vector<1x8x32xf32>
    %4 = vector.shape_cast %3 : vector<1x8x32xf32> to vector<8x32xf32>
    %5 = arith.truncf %4 : vector<8x32xf32> to vector<8x32xbf16>
    %c0_3 = arith.constant 0 : index
    %c0_4 = arith.constant 0 : index
    %6 = vector.load %arg7[%c0_3, %c0_4] : memref<32x64xbf16, #tpu.memory_space<vmem>>, vector<32x64xbf16>
    %cst = arith.constant dense<0.000000e+00> : vector<8x64xf32>
    %7 = tpu.matmul %5, %6, %cst {dimension_numbers = #tpu.dot_dimension_numbers<[1], [0], [0], [1], [0, 0, 1, 1], [], []>} : vector<8x32xbf16>, vector<32x64xbf16>, vector<8x64xf32> -> vector<8x64xf32>
    %c0_5 = arith.constant 0 : index
    %c0_6 = arith.constant 0 : index
    %8 = vector.load %arg8[%c0_5, %c0_6] : memref<1x64xf32, #tpu.memory_space<vmem>>, vector<1x64xf32>
    %9 = vector.broadcast %8 : vector<1x64xf32> to vector<8x64xf32>
    %10 = arith.addf %7, %9 : vector<8x64xf32>
    %11 = vector.extract_strided_slice %10 {offsets = [0, 0], sizes = [8, 32], strides = [1, 1]} : vector<8x64xf32> to vector<8x32xf32>
    %12 = arith.truncf %11 : vector<8x32xf32> to vector<8x32xbf16>
    %13 = vector.extract_strided_slice %10 {offsets = [0, 32], sizes = [8, 32], strides = [1, 1]} : vector<8x64xf32> to vector<8x32xf32>
    %14 = arith.truncf %13 : vector<8x32xf32> to vector<8x32xbf16>
    %c0_7 = arith.constant 0 : index
    %c0_8 = arith.constant 0 : index
    %15 = vector.load %arg17[%c0_7, %c0_8] : memref<8x32xf32, #tpu.memory_space<vmem>>, vector<8x32xf32>
    %16 = vector.extract_strided_slice %15 {offsets = [0, 0], sizes = [8, 8], strides = [1, 1]} : vector<8x32xf32> to vector<8x8xf32>
    %17 = arith.truncf %16 : vector<8x8xf32> to vector<8x8xbf16>
    %18 = vector.extract_strided_slice %12 {offsets = [0, 0], sizes = [8, 8], strides = [1, 1]} : vector<8x32xbf16> to vector<8x8xbf16>
    %19 = vector.extract_strided_slice %14 {offsets = [0, 0], sizes = [8, 8], strides = [1, 1]} : vector<8x32xbf16> to vector<8x8xbf16>
    %cst_9 = arith.constant dense<0.000000e+00> : vector<8x8xf32>
    %20 = tpu.matmul %17, %18, %cst_9 {dimension_numbers = #tpu.dot_dimension_numbers<[1], [1], [0], [0], [0, 0, 1, 0], [], []>} : vector<8x8xbf16>, vector<8x8xbf16>, vector<8x8xf32> -> vector<8x8xf32>
    %c0_10 = arith.constant 0 : index
    %c0_11 = arith.constant 0 : index
    %c0_12 = arith.constant 0 : index
    %21 = vector.load %arg14[%c0_10, %c0_11, %c0_12] : memref<4x8x1xf32, #tpu.memory_space<vmem>>, vector<1x8x1xf32>
    %22 = vector.shape_cast %21 : vector<1x8x1xf32> to vector<8x1xf32>
    %cst_13 = arith.constant dense<0xFF800000> : vector<8xf32>
    %23 = vector.multi_reduction <maximumf>, %20, %cst_13 [1] : vector<8x8xf32> to vector<8xf32>
    %24 = vector.shape_cast %23 : vector<8xf32> to vector<8x1xf32>
    %25 = arith.maximumf %22, %24 : vector<8x1xf32>
    %26 = arith.subf %22, %25 : vector<8x1xf32>
    %27 = math.exp %26 : vector<8x1xf32>
    %28 = vector.broadcast %25 : vector<8x1xf32> to vector<8x8xf32>
    %29 = arith.subf %20, %28 : vector<8x8xf32>
    %30 = math.exp %29 : vector<8x8xf32>
    %c0_14 = arith.constant 0 : index
    %c0_15 = arith.constant 0 : index
    %c0_16 = arith.constant 0 : index
    %31 = vector.load %arg15[%c0_14, %c0_15, %c0_16] : memref<4x8x1xf32, #tpu.memory_space<vmem>>, vector<1x8x1xf32>
    %32 = vector.shape_cast %31 : vector<1x8x1xf32> to vector<8x1xf32>
    %33 = arith.mulf %27, %32 : vector<8x1xf32>
    %cst_17 = arith.constant dense<0.000000e+00> : vector<8xf32>
    %34 = vector.multi_reduction <add>, %30, %cst_17 [1] : vector<8x8xf32> to vector<8xf32>
    %35 = vector.shape_cast %34 : vector<8xf32> to vector<8x1xf32>
    %36 = arith.addf %33, %35 : vector<8x1xf32>
    %c0_18 = arith.constant 0 : index
    %c0_19 = arith.constant 0 : index
    %c0_20 = arith.constant 0 : index
    %37 = vector.load %arg15[%c0_18, %c0_19, %c0_20] : memref<4x8x1xf32, #tpu.memory_space<vmem>>, vector<1x8x1xf32>
    %38 = vector.shape_cast %37 : vector<1x8x1xf32> to vector<8x1xf32>
    %39 = vector.shape_cast %36 : vector<8x1xf32> to vector<1x8x1xf32>
    tpu.vector_store %arg15[%c0_18, %c0_19, %c0_20], %39 {strides = array<i32>} : memref<4x8x1xf32, #tpu.memory_space<vmem>>, vector<1x8x1xf32>,
    %c0_21 = arith.constant 0 : index
    %c0_22 = arith.constant 0 : index
    %c0_23 = arith.constant 0 : index
    %40 = vector.load %arg14[%c0_21, %c0_22, %c0_23] : memref<4x8x1xf32, #tpu.memory_space<vmem>>, vector<1x8x1xf32>
    %41 = vector.shape_cast %40 : vector<1x8x1xf32> to vector<8x1xf32>
    %42 = vector.shape_cast %25 : vector<8x1xf32> to vector<1x8x1xf32>
    tpu.vector_store %arg14[%c0_21, %c0_22, %c0_23], %42 {strides = array<i32>} : memref<4x8x1xf32, #tpu.memory_space<vmem>>, vector<1x8x1xf32>,
    %43 = vector.shape_cast %27 : vector<8x1xf32> to vector<8x1xf32>
    %44 = vector.broadcast %43 : vector<8x1xf32> to vector<8x8xf32>
    %45 = arith.truncf %30 : vector<8x8xf32> to vector<8x8xbf16>
    %cst_24 = arith.constant dense<0.000000e+00> : vector<8x8xf32>
    %46 = tpu.matmul %45, %19, %cst_24 {dimension_numbers = #tpu.dot_dimension_numbers<[1], [0], [0], [1], [0, 0, 1, 1], [], []>} : vector<8x8xbf16>, vector<8x8xbf16>, vector<8x8xf32> -> vector<8x8xf32>
    %47 = vector.extract_strided_slice %15 {offsets = [0, 8], sizes = [8, 8], strides = [1, 1]} : vector<8x32xf32> to vector<8x8xf32>
    %48 = arith.truncf %47 : vector<8x8xf32> to vector<8x8xbf16>
    %49 = vector.extract_strided_slice %12 {offsets = [0, 8], sizes = [8, 8], strides = [1, 1]} : vector<8x32xbf16> to vector<8x8xbf16>
    %50 = vector.extract_strided_slice %14 {offsets = [0, 8], sizes = [8, 8], strides = [1, 1]} : vector<8x32xbf16> to vector<8x8xbf16>
    %cst_25 = arith.constant dense<0.000000e+00> : vector<8x8xf32>
    %51 = tpu.matmul %48, %49, %cst_25 {dimension_numbers = #tpu.dot_dimension_numbers<[1], [1], [0], [0], [0, 0, 1, 0], [], []>} : vector<8x8xbf16>, vector<8x8xbf16>, vector<8x8xf32> -> vector<8x8xf32>
    %c1 = arith.constant 1 : index
    %c0_26 = arith.constant 0 : index
    %c0_27 = arith.constant 0 : index
    %52 = vector.load %arg14[%c1, %c0_26, %c0_27] : memref<4x8x1xf32, #tpu.memory_space<vmem>>, vector<1x8x1xf32>
    %53 = vector.shape_cast %52 : vector<1x8x1xf32> to vector<8x1xf32>
    %cst_28 = arith.constant dense<0xFF800000> : vector<8xf32>
    %54 = vector.multi_reduction <maximumf>, %51, %cst_28 [1] : vector<8x8xf32> to vector<8xf32>
    %55 = vector.shape_cast %54 : vector<8xf32> to vector<8x1xf32>
    %56 = arith.maximumf %53, %55 : vector<8x1xf32>
    %57 = arith.subf %53, %56 : vector<8x1xf32>
    %58 = math.exp %57 : vector<8x1xf32>
    %59 = vector.broadcast %56 : vector<8x1xf32> to vector<8x8xf32>
    %60 = arith.subf %51, %59 : vector<8x8xf32>
    %61 = math.exp %60 : vector<8x8xf32>
    %c1_29 = arith.constant 1 : index
    %c0_30 = arith.constant 0 : index
    %c0_31 = arith.constant 0 : index
    %62 = vector.load %arg15[%c1_29, %c0_30, %c0_31] : memref<4x8x1xf32, #tpu.memory_space<vmem>>, vector<1x8x1xf32>
    %63 = vector.shape_cast %62 : vector<1x8x1xf32> to vector<8x1xf32>
    %64 = arith.mulf %58, %63 : vector<8x1xf32>
    %cst_32 = arith.constant dense<0.000000e+00> : vector<8xf32>
    %65 = vector.multi_reduction <add>, %61, %cst_32 [1] : vector<8x8xf32> to vector<8xf32>
    %66 = vector.shape_cast %65 : vector<8xf32> to vector<8x1xf32>
    %67 = arith.addf %64, %66 : vector<8x1xf32>
    %c1_33 = arith.constant 1 : index
    %c0_34 = arith.constant 0 : index
    %c0_35 = arith.constant 0 : index
    %68 = vector.load %arg15[%c1_33, %c0_34, %c0_35] : memref<4x8x1xf32, #tpu.memory_space<vmem>>, vector<1x8x1xf32>
    %69 = vector.shape_cast %68 : vector<1x8x1xf32> to vector<8x1xf32>
    %70 = vector.shape_cast %67 : vector<8x1xf32> to vector<1x8x1xf32>
    tpu.vector_store %arg15[%c1_33, %c0_34, %c0_35], %70 {strides = array<i32>} : memref<4x8x1xf32, #tpu.memory_space<vmem>>, vector<1x8x1xf32>,
    %c1_36 = arith.constant 1 : index
    %c0_37 = arith.constant 0 : index
    %c0_38 = arith.constant 0 : index
    %71 = vector.load %arg14[%c1_36, %c0_37, %c0_38] : memref<4x8x1xf32, #tpu.memory_space<vmem>>, vector<1x8x1xf32>
    %72 = vector.shape_cast %71 : vector<1x8x1xf32> to vector<8x1xf32>
    %73 = vector.shape_cast %56 : vector<8x1xf32> to vector<1x8x1xf32>
    tpu.vector_store %arg14[%c1_36, %c0_37, %c0_38], %73 {strides = array<i32>} : memref<4x8x1xf32, #tpu.memory_space<vmem>>, vector<1x8x1xf32>,
    %74 = vector.shape_cast %58 : vector<8x1xf32> to vector<8x1xf32>
    %75 = vector.broadcast %74 : vector<8x1xf32> to vector<8x8xf32>
    %76 = arith.truncf %61 : vector<8x8xf32> to vector<8x8xbf16>
    %cst_39 = arith.constant dense<0.000000e+00> : vector<8x8xf32>
    %77 = tpu.matmul %76, %50, %cst_39 {dimension_numbers = #tpu.dot_dimension_numbers<[1], [0], [0], [1], [0, 0, 1, 1], [], []>} : vector<8x8xbf16>, vector<8x8xbf16>, vector<8x8xf32> -> vector<8x8xf32>
    %78 = vector.extract_strided_slice %15 {offsets = [0, 16], sizes = [8, 8], strides = [1, 1]} : vector<8x32xf32> to vector<8x8xf32>
    %79 = arith.truncf %78 : vector<8x8xf32> to vector<8x8xbf16>
    %80 = vector.extract_strided_slice %12 {offsets = [0, 16], sizes = [8, 8], strides = [1, 1]} : vector<8x32xbf16> to vector<8x8xbf16>
    %81 = vector.extract_strided_slice %14 {offsets = [0, 16], sizes = [8, 8], strides = [1, 1]} : vector<8x32xbf16> to vector<8x8xbf16>
    %cst_40 = arith.constant dense<0.000000e+00> : vector<8x8xf32>
    %82 = tpu.matmul %79, %80, %cst_40 {dimension_numbers = #tpu.dot_dimension_numbers<[1], [1], [0], [0], [0, 0, 1, 0], [], []>} : vector<8x8xbf16>, vector<8x8xbf16>, vector<8x8xf32> -> vector<8x8xf32>
    %c2 = arith.constant 2 : index
    %c0_41 = arith.constant 0 : index
    %c0_42 = arith.constant 0 : index
    %83 = vector.load %arg14[%c2, %c0_41, %c0_42] : memref<4x8x1xf32, #tpu.memory_space<vmem>>, vector<1x8x1xf32>
    %84 = vector.shape_cast %83 : vector<1x8x1xf32> to vector<8x1xf32>
    %cst_43 = arith.constant dense<0xFF800000> : vector<8xf32>
    %85 = vector.multi_reduction <maximumf>, %82, %cst_43 [1] : vector<8x8xf32> to vector<8xf32>
    %86 = vector.shape_cast %85 : vector<8xf32> to vector<8x1xf32>
    %87 = arith.maximumf %84, %86 : vector<8x1xf32>
    %88 = arith.subf %84, %87 : vector<8x1xf32>
    %89 = math.exp %88 : vector<8x1xf32>
    %90 = vector.broadcast %87 : vector<8x1xf32> to vector<8x8xf32>
    %91 = arith.subf %82, %90 : vector<8x8xf32>
    %92 = math.exp %91 : vector<8x8xf32>
    %c2_44 = arith.constant 2 : index
    %c0_45 = arith.constant 0 : index
    %c0_46 = arith.constant 0 : index
    %93 = vector.load %arg15[%c2_44, %c0_45, %c0_46] : memref<4x8x1xf32, #tpu.memory_space<vmem>>, vector<1x8x1xf32>
    %94 = vector.shape_cast %93 : vector<1x8x1xf32> to vector<8x1xf32>
    %95 = arith.mulf %89, %94 : vector<8x1xf32>
    %cst_47 = arith.constant dense<0.000000e+00> : vector<8xf32>
    %96 = vector.multi_reduction <add>, %92, %cst_47 [1] : vector<8x8xf32> to vector<8xf32>
    %97 = vector.shape_cast %96 : vector<8xf32> to vector<8x1xf32>
    %98 = arith.addf %95, %97 : vector<8x1xf32>
    %c2_48 = arith.constant 2 : index
    %c0_49 = arith.constant 0 : index
    %c0_50 = arith.constant 0 : index
    %99 = vector.load %arg15[%c2_48, %c0_49, %c0_50] : memref<4x8x1xf32, #tpu.memory_space<vmem>>, vector<1x8x1xf32>
    %100 = vector.shape_cast %99 : vector<1x8x1xf32> to vector<8x1xf32>
    %101 = vector.shape_cast %98 : vector<8x1xf32> to vector<1x8x1xf32>
    tpu.vector_store %arg15[%c2_48, %c0_49, %c0_50], %101 {strides = array<i32>} : memref<4x8x1xf32, #tpu.memory_space<vmem>>, vector<1x8x1xf32>,
    %c2_51 = arith.constant 2 : index
    %c0_52 = arith.constant 0 : index
    %c0_53 = arith.constant 0 : index
    %102 = vector.load %arg14[%c2_51, %c0_52, %c0_53] : memref<4x8x1xf32, #tpu.memory_space<vmem>>, vector<1x8x1xf32>
    %103 = vector.shape_cast %102 : vector<1x8x1xf32> to vector<8x1xf32>
    %104 = vector.shape_cast %87 : vector<8x1xf32> to vector<1x8x1xf32>
    tpu.vector_store %arg14[%c2_51, %c0_52, %c0_53], %104 {strides = array<i32>} : memref<4x8x1xf32, #tpu.memory_space<vmem>>, vector<1x8x1xf32>,
    %105 = vector.shape_cast %89 : vector<8x1xf32> to vector<8x1xf32>
    %106 = vector.broadcast %105 : vector<8x1xf32> to vector<8x8xf32>
    %107 = arith.truncf %92 : vector<8x8xf32> to vector<8x8xbf16>
    %cst_54 = arith.constant dense<0.000000e+00> : vector<8x8xf32>
    %108 = tpu.matmul %107, %81, %cst_54 {dimension_numbers = #tpu.dot_dimension_numbers<[1], [0], [0], [1], [0, 0, 1, 1], [], []>} : vector<8x8xbf16>, vector<8x8xbf16>, vector<8x8xf32> -> vector<8x8xf32>
    %109 = vector.extract_strided_slice %15 {offsets = [0, 24], sizes = [8, 8], strides = [1, 1]} : vector<8x32xf32> to vector<8x8xf32>
    %110 = arith.truncf %109 : vector<8x8xf32> to vector<8x8xbf16>
    %111 = vector.extract_strided_slice %12 {offsets = [0, 24], sizes = [8, 8], strides = [1, 1]} : vector<8x32xbf16> to vector<8x8xbf16>
    %112 = vector.extract_strided_slice %14 {offsets = [0, 24], sizes = [8, 8], strides = [1, 1]} : vector<8x32xbf16> to vector<8x8xbf16>
    %cst_55 = arith.constant dense<0.000000e+00> : vector<8x8xf32>
    %113 = tpu.matmul %110, %111, %cst_55 {dimension_numbers = #tpu.dot_dimension_numbers<[1], [1], [0], [0], [0, 0, 1, 0], [], []>} : vector<8x8xbf16>, vector<8x8xbf16>, vector<8x8xf32> -> vector<8x8xf32>
    %c3 = arith.constant 3 : index
    %c0_56 = arith.constant 0 : index
    %c0_57 = arith.constant 0 : index
    %114 = vector.load %arg14[%c3, %c0_56, %c0_57] : memref<4x8x1xf32, #tpu.memory_space<vmem>>, vector<1x8x1xf32>
    %115 = vector.shape_cast %114 : vector<1x8x1xf32> to vector<8x1xf32>
    %cst_58 = arith.constant dense<0xFF800000> : vector<8xf32>
    %116 = vector.multi_reduction <maximumf>, %113, %cst_58 [1] : vector<8x8xf32> to vector<8xf32>
    %117 = vector.shape_cast %116 : vector<8xf32> to vector<8x1xf32>
    %118 = arith.maximumf %115, %117 : vector<8x1xf32>
    %119 = arith.subf %115, %118 : vector<8x1xf32>
    %120 = math.exp %119 : vector<8x1xf32>
    %121 = vector.broadcast %118 : vector<8x1xf32> to vector<8x8xf32>
    %122 = arith.subf %113, %121 : vector<8x8xf32>
    %123 = math.exp %122 : vector<8x8xf32>
    %c3_59 = arith.constant 3 : index
    %c0_60 = arith.constant 0 : index
    %c0_61 = arith.constant 0 : index
    %124 = vector.load %arg15[%c3_59, %c0_60, %c0_61] : memref<4x8x1xf32, #tpu.memory_space<vmem>>, vector<1x8x1xf32>
    %125 = vector.shape_cast %124 : vector<1x8x1xf32> to vector<8x1xf32>
    %126 = arith.mulf %120, %125 : vector<8x1xf32>
    %cst_62 = arith.constant dense<0.000000e+00> : vector<8xf32>
    %127 = vector.multi_reduction <add>, %123, %cst_62 [1] : vector<8x8xf32> to vector<8xf32>
    %128 = vector.shape_cast %127 : vector<8xf32> to vector<8x1xf32>
    %129 = arith.addf %126, %128 : vector<8x1xf32>
    %c3_63 = arith.constant 3 : index
    %c0_64 = arith.constant 0 : index
    %c0_65 = arith.constant 0 : index
    %130 = vector.load %arg15[%c3_63, %c0_64, %c0_65] : memref<4x8x1xf32, #tpu.memory_space<vmem>>, vector<1x8x1xf32>
    %131 = vector.shape_cast %130 : vector<1x8x1xf32> to vector<8x1xf32>
    %132 = vector.shape_cast %129 : vector<8x1xf32> to vector<1x8x1xf32>
    tpu.vector_store %arg15[%c3_63, %c0_64, %c0_65], %132 {strides = array<i32>} : memref<4x8x1xf32, #tpu.memory_space<vmem>>, vector<1x8x1xf32>,
    %c3_66 = arith.constant 3 : index
    %c0_67 = arith.constant 0 : index
    %c0_68 = arith.constant 0 : index
    %133 = vector.load %arg14[%c3_66, %c0_67, %c0_68] : memref<4x8x1xf32, #tpu.memory_space<vmem>>, vector<1x8x1xf32>
    %134 = vector.shape_cast %133 : vector<1x8x1xf32> to vector<8x1xf32>
    %135 = vector.shape_cast %118 : vector<8x1xf32> to vector<1x8x1xf32>
    tpu.vector_store %arg14[%c3_66, %c0_67, %c0_68], %135 {strides = array<i32>} : memref<4x8x1xf32, #tpu.memory_space<vmem>>, vector<1x8x1xf32>,
    %136 = vector.shape_cast %120 : vector<8x1xf32> to vector<8x1xf32>
    %137 = vector.broadcast %136 : vector<8x1xf32> to vector<8x8xf32>
    %138 = arith.truncf %123 : vector<8x8xf32> to vector<8x8xbf16>
    %cst_69 = arith.constant dense<0.000000e+00> : vector<8x8xf32>
    %139 = tpu.matmul %138, %112, %cst_69 {dimension_numbers = #tpu.dot_dimension_numbers<[1], [0], [0], [1], [0, 0, 1, 1], [], []>} : vector<8x8xbf16>, vector<8x8xbf16>, vector<8x8xf32> -> vector<8x8xf32>
    %140 = tpu.concatenate %44, %75, %106, %137 in 1 : vector<8x8xf32>, vector<8x8xf32>, vector<8x8xf32>, vector<8x8xf32> -> vector<8x32xf32>
    %c0_70 = arith.constant 0 : index
    %c0_71 = arith.constant 0 : index
    %141 = vector.load %arg16[%c0_70, %c0_71] : memref<8x32xf32, #tpu.memory_space<vmem>>, vector<8x32xf32>
    %142 = arith.mulf %140, %141 : vector<8x32xf32>
    %143 = tpu.concatenate %46, %77, %108, %139 in 1 : vector<8x8xf32>, vector<8x8xf32>, vector<8x8xf32>, vector<8x8xf32> -> vector<8x32xf32>
    %144 = arith.addf %142, %143 : vector<8x32xf32>
    %c0_72 = arith.constant 0 : index
    %c0_73 = arith.constant 0 : index
    %145 = vector.load %arg16[%c0_72, %c0_73] : memref<8x32xf32, #tpu.memory_space<vmem>>, vector<8x32xf32>
    tpu.vector_store %arg16[%c0_72, %c0_73], %144 {strides = array<i32>} : memref<8x32xf32, #tpu.memory_space<vmem>>, vector<8x32xf32>,
    %c0_i32_74 = arith.constant 0 : i32
    %146 = arith.cmpi eq, %arg2, %c0_i32_74 : i32
    %147 = arith.extui %146 : i1 to i32
    %c0_i32_75 = arith.constant 0 : i32
    %148 = arith.cmpi ne, %147, %c0_i32_75 : i32
    scf.if %148 {
      %c0_76 = arith.constant 0 : index
      %c0_77 = arith.constant 0 : index
      %c0_78 = arith.constant 0 : index
      %149 = vector.load %arg15[%c0_76, %c0_77, %c0_78] : memref<4x8x1xf32, #tpu.memory_space<vmem>>, vector<1x8x1xf32>
      %150 = vector.shape_cast %149 : vector<1x8x1xf32> to vector<8x1xf32>
      %151 = tpu.reciprocal %150 {approx = true} : vector<8x1xf32> -> vector<8x1xf32>
      %152 = vector.shape_cast %151 : vector<8x1xf32> to vector<8x1xf32>
      %153 = vector.broadcast %152 : vector<8x1xf32> to vector<8x8xf32>
      %c1_79 = arith.constant 1 : index
      %c0_80 = arith.constant 0 : index
      %c0_81 = arith.constant 0 : index
      %154 = vector.load %arg15[%c1_79, %c0_80, %c0_81] : memref<4x8x1xf32, #tpu.memory_space<vmem>>, vector<1x8x1xf32>
      %155 = vector.shape_cast %154 : vector<1x8x1xf32> to vector<8x1xf32>
      %156 = tpu.reciprocal %155 {approx = true} : vector<8x1xf32> -> vector<8x1xf32>
      %157 = vector.shape_cast %156 : vector<8x1xf32> to vector<8x1xf32>
      %158 = vector.broadcast %157 : vector<8x1xf32> to vector<8x8xf32>
      %c2_82 = arith.constant 2 : index
      %c0_83 = arith.constant 0 : index
      %c0_84 = arith.constant 0 : index
      %159 = vector.load %arg15[%c2_82, %c0_83, %c0_84] : memref<4x8x1xf32, #tpu.memory_space<vmem>>, vector<1x8x1xf32>
      %160 = vector.shape_cast %159 : vector<1x8x1xf32> to vector<8x1xf32>
      %161 = tpu.reciprocal %160 {approx = true} : vector<8x1xf32> -> vector<8x1xf32>
      %162 = vector.shape_cast %161 : vector<8x1xf32> to vector<8x1xf32>
      %163 = vector.broadcast %162 : vector<8x1xf32> to vector<8x8xf32>
      %c3_85 = arith.constant 3 : index
      %c0_86 = arith.constant 0 : index
      %c0_87 = arith.constant 0 : index
      %164 = vector.load %arg15[%c3_85, %c0_86, %c0_87] : memref<4x8x1xf32, #tpu.memory_space<vmem>>, vector<1x8x1xf32>
      %165 = vector.shape_cast %164 : vector<1x8x1xf32> to vector<8x1xf32>
      %166 = tpu.reciprocal %165 {approx = true} : vector<8x1xf32> -> vector<8x1xf32>
      %167 = vector.shape_cast %166 : vector<8x1xf32> to vector<8x1xf32>
      %168 = vector.broadcast %167 : vector<8x1xf32> to vector<8x8xf32>
      %c0_88 = arith.constant 0 : index
      %c0_89 = arith.constant 0 : index
      %169 = vector.load %arg16[%c0_88, %c0_89] : memref<8x32xf32, #tpu.memory_space<vmem>>, vector<8x32xf32>
      %170 = tpu.concatenate %153, %158, %163, %168 in 1 : vector<8x8xf32>, vector<8x8xf32>, vector<8x8xf32>, vector<8x8xf32> -> vector<8x32xf32>
      %171 = arith.mulf %169, %170 : vector<8x32xf32>
      %172 = arith.truncf %171 : vector<8x32xf32> to vector<8x32xbf16>
      %c0_90 = arith.constant 0 : index
      %c0_91 = arith.constant 0 : index
      %173 = vector.load %arg9[%c0_90, %c0_91] : memref<32x32xbf16, #tpu.memory_space<vmem>>, vector<32x32xbf16>
      %cst_92 = arith.constant dense<0.000000e+00> : vector<8x32xf32>
      %174 = tpu.matmul %172, %173, %cst_92 {dimension_numbers = #tpu.dot_dimension_numbers<[1], [0], [0], [1], [0, 0, 1, 1], [], []>} : vector<8x32xbf16>, vector<32x32xbf16>, vector<8x32xf32> -> vector<8x32xf32>
      %c0_93 = arith.constant 0 : index
      %c0_94 = arith.constant 0 : index
      %175 = vector.load %arg10[%c0_93, %c0_94] : memref<1x32xf32, #tpu.memory_space<vmem>>, vector<1x32xf32>
      %176 = vector.broadcast %175 : vector<1x32xf32> to vector<8x32xf32>
      %177 = arith.addf %174, %176 : vector<8x32xf32>
      %c0_95 = arith.constant 0 : index
      %c0_96 = arith.constant 0 : index
      %c0_97 = arith.constant 0 : index
      %178 = vector.load %arg3[%c0_95, %c0_96, %c0_97] : memref<1x8x32xf32, #tpu.memory_space<vmem>>, vector<1x8x32xf32>
      %179 = vector.shape_cast %178 : vector<1x8x32xf32> to vector<8x32xf32>
      %180 = arith.addf %177, %179 : vector<8x32xf32>
      %cst_98 = arith.constant dense<0.000000e+00> : vector<8xf32>
      %181 = vector.multi_reduction <add>, %180, %cst_98 [1] : vector<8x32xf32> to vector<8xf32>
      %182 = vector.shape_cast %181 : vector<8xf32> to vector<8x1xf32>
      %cst_99 = arith.constant 3.200000e+01 : f32
      %183 = vector.broadcast %cst_99 : f32 to vector<8x1xf32>
      %184 = arith.divf %182, %183 : vector<8x1xf32>
      %185 = vector.broadcast %184 : vector<8x1xf32> to vector<8x32xf32>
      %186 = arith.subf %180, %185 : vector<8x32xf32>
      %187 = arith.mulf %186, %186 : vector<8x32xf32>
      %cst_100 = arith.constant dense<0.000000e+00> : vector<8xf32>
      %188 = vector.multi_reduction <add>, %187, %cst_100 [1] : vector<8x32xf32> to vector<8xf32>
      %189 = vector.shape_cast %188 : vector<8xf32> to vector<8x1xf32>
      %cst_101 = arith.constant 3.200000e+01 : f32
      %190 = vector.broadcast %cst_101 : f32 to vector<8x1xf32>
      %191 = arith.divf %189, %190 : vector<8x1xf32>
      %192 = vector.broadcast %184 : vector<8x1xf32> to vector<8x32xf32>
      %193 = arith.subf %180, %192 : vector<8x32xf32>
      %cst_102 = arith.constant 9.99999974E-6 : f32
      %194 = vector.broadcast %cst_102 : f32 to vector<8x1xf32>
      %195 = arith.addf %191, %194 : vector<8x1xf32>
      %196 = math.rsqrt %195 : vector<8x1xf32>
      %197 = vector.broadcast %196 : vector<8x1xf32> to vector<8x32xf32>
      %198 = arith.mulf %193, %197 : vector<8x32xf32>
      %c0_103 = arith.constant 0 : index
      %c0_104 = arith.constant 0 : index
      %199 = vector.load %arg11[%c0_103, %c0_104] : memref<1x32xf32, #tpu.memory_space<vmem>>, vector<1x32xf32>
      %200 = vector.broadcast %199 : vector<1x32xf32> to vector<8x32xf32>
      %201 = arith.mulf %198, %200 : vector<8x32xf32>
      %c0_105 = arith.constant 0 : index
      %c0_106 = arith.constant 0 : index
      %202 = vector.load %arg12[%c0_105, %c0_106] : memref<1x32xf32, #tpu.memory_space<vmem>>, vector<1x32xf32>
      %203 = vector.broadcast %202 : vector<1x32xf32> to vector<8x32xf32>
      %204 = arith.addf %201, %203 : vector<8x32xf32>
      %c0_107 = arith.constant 0 : index
      %c0_108 = arith.constant 0 : index
      %c0_109 = arith.constant 0 : index
      %205 = vector.load %arg13[%c0_107, %c0_108, %c0_109] : memref<1x8x32xf32, #tpu.memory_space<vmem>>, vector<1x8x32xf32>
      %206 = vector.shape_cast %205 : vector<1x8x32xf32> to vector<8x32xf32>
      %207 = vector.shape_cast %204 : vector<8x32xf32> to vector<1x8x32xf32>
      tpu.vector_store %arg13[%c0_107, %c0_108, %c0_109], %207 {strides = array<i32>} : memref<1x8x32xf32, #tpu.memory_space<vmem>>, vector<1x8x32xf32>,
    } else {
    }
    return
  }
  func.func @transform_0(%arg0: i32, %arg1: i32, %arg2: i32) -> (i32, i32, i32) {
    %c0_i32 = arith.constant 0 : i32
    %c0_i32_0 = arith.constant 0 : i32
    return %arg0, %arg1, %c0_i32 : i32, i32, i32
  }
  func.func @transform_1(%arg0: i32, %arg1: i32, %arg2: i32) -> (i32, i32, i32) {
    %c0_i32 = arith.constant 0 : i32
    %c0_i32_0 = arith.constant 0 : i32
    return %arg0, %arg2, %c0_i32 : i32, i32, i32
  }
  func.func @transform_2(%arg0: i32, %arg1: i32, %arg2: i32) -> (i32, i32) {
    %c0_i32 = arith.constant 0 : i32
    %c0_i32_0 = arith.constant 0 : i32
    %c0_i32_1 = arith.constant 0 : i32
    return %c0_i32, %c0_i32_0 : i32, i32
  }
  func.func @transform_3(%arg0: i32, %arg1: i32, %arg2: i32) -> (i32, i32) {
    %c0_i32 = arith.constant 0 : i32
    %c0_i32_0 = arith.constant 0 : i32
    %c0_i32_1 = arith.constant 0 : i32
    return %c0_i32, %c0_i32_0 : i32, i32
  }
  func.func @transform_4(%arg0: i32, %arg1: i32, %arg2: i32) -> (i32, i32) {
    %c0_i32 = arith.constant 0 : i32
    %c0_i32_0 = arith.constant 0 : i32
    %c0_i32_1 = arith.constant 0 : i32
    return %c0_i32, %c0_i32_0 : i32, i32
  }
  func.func @transform_5(%arg0: i32, %arg1: i32, %arg2: i32) -> (i32, i32) {
    %c0_i32 = arith.constant 0 : i32
    %c0_i32_0 = arith.constant 0 : i32
    %c0_i32_1 = arith.constant 0 : i32
    return %c0_i32, %c0_i32_0 : i32, i32
  }
  func.func @transform_6(%arg0: i32, %arg1: i32, %arg2: i32) -> (i32, i32) {
    %c0_i32 = arith.constant 0 : i32
    %c0_i32_0 = arith.constant 0 : i32
    %c0_i32_1 = arith.constant 0 : i32
    return %c0_i32, %c0_i32_0 : i32, i32
  }
  func.func @transform_7(%arg0: i32, %arg1: i32, %arg2: i32) -> (i32, i32) {
    %c0_i32 = arith.constant 0 : i32
    %c0_i32_0 = arith.constant 0 : i32
    %c0_i32_1 = arith.constant 0 : i32
    return %c0_i32, %c0_i32_0 : i32, i32
  }
  func.func @transform_8(%arg0: i32, %arg1: i32, %arg2: i32) -> (i32, i32) {
    %c0_i32 = arith.constant 0 : i32
    %c0_i32_0 = arith.constant 0 : i32
    %c0_i32_1 = arith.constant 0 : i32
    return %c0_i32, %c0_i32_0 : i32, i32
  }
  func.func @transform_9(%arg0: i32, %arg1: i32, %arg2: i32) -> (i32, i32) {
    %c0_i32 = arith.constant 0 : i32
    %c0_i32_0 = arith.constant 0 : i32
    %c0_i32_1 = arith.constant 0 : i32
    return %c0_i32, %c0_i32_0 : i32, i32
  }
  func.func @transform_10(%arg0: i32, %arg1: i32, %arg2: i32) -> (i32, i32, i32) {
    %c0_i32 = arith.constant 0 : i32
    %c0_i32_0 = arith.constant 0 : i32
    return %arg0, %arg1, %c0_i32 : i32, i32, i32
  }
}

module attributes {stable_mosaic.version = 11 : i64} {
  func.func @_ffn_layer_kernel(%arg0: i32, %arg1: memref<16x32xf32, #tpu.memory_space<vmem>>, %arg2: memref<32x64xbf16, #tpu.memory_space<vmem>>, %arg3: memref<1x64xf32, #tpu.memory_space<vmem>>, %arg4: memref<64x32xbf16, #tpu.memory_space<vmem>>, %arg5: memref<1x32xf32, #tpu.memory_space<vmem>>, %arg6: memref<1x32xf32, #tpu.memory_space<vmem>>, %arg7: memref<1x32xf32, #tpu.memory_space<vmem>>, %arg8: memref<16x32xf32, #tpu.memory_space<vmem>>) attributes {dimension_semantics = [#tpu.dimension_semantics<parallel>], iteration_bounds = array<i64: 1>, scalar_prefetch = 0 : i64, scratch_operands = 0 : i64, tpu.core_type = #tpu.core_type<tc>, window_params = [{transform_indices = @transform_0, window_bounds = array<i64: 16, 32>}, {pipeline_mode = #tpu.pipeline_mode<synchronous>, transform_indices = @transform_1, window_bounds = array<i64: 32, 64>}, {pipeline_mode = #tpu.pipeline_mode<synchronous>, transform_indices = @transform_2, window_bounds = array<i64: 1, 64>}, {pipeline_mode = #tpu.pipeline_mode<synchronous>, transform_indices = @transform_3, window_bounds = array<i64: 64, 32>}, {pipeline_mode = #tpu.pipeline_mode<synchronous>, transform_indices = @transform_4, window_bounds = array<i64: 1, 32>}, {pipeline_mode = #tpu.pipeline_mode<synchronous>, transform_indices = @transform_5, window_bounds = array<i64: 1, 32>}, {pipeline_mode = #tpu.pipeline_mode<synchronous>, transform_indices = @transform_6, window_bounds = array<i64: 1, 32>}, {transform_indices = @transform_7, window_bounds = array<i64: 16, 32>}]} {
    %c0 = arith.constant 0 : index
    %c0_0 = arith.constant 0 : index
    %0 = vector.load %arg1[%c0, %c0_0] : memref<16x32xf32, #tpu.memory_space<vmem>>, vector<16x32xf32>
    %1 = arith.truncf %0 : vector<16x32xf32> to vector<16x32xbf16>
    %c0_1 = arith.constant 0 : index
    %c0_2 = arith.constant 0 : index
    %2 = vector.load %arg2[%c0_1, %c0_2] : memref<32x64xbf16, #tpu.memory_space<vmem>>, vector<32x64xbf16>
    %cst = arith.constant dense<0.000000e+00> : vector<16x64xf32>
    %3 = tpu.matmul %1, %2, %cst {dimension_numbers = #tpu.dot_dimension_numbers<[1], [0], [0], [1], [0, 0, 1, 1], [], []>} : vector<16x32xbf16>, vector<32x64xbf16>, vector<16x64xf32> -> vector<16x64xf32>
    %c0_3 = arith.constant 0 : index
    %c0_4 = arith.constant 0 : index
    %4 = vector.load %arg3[%c0_3, %c0_4] : memref<1x64xf32, #tpu.memory_space<vmem>>, vector<1x64xf32>
    %5 = vector.broadcast %4 : vector<1x64xf32> to vector<16x64xf32>
    %6 = arith.addf %3, %5 : vector<16x64xf32>
    %cst_5 = arith.constant 0.000000e+00 : f32
    %7 = vector.broadcast %cst_5 : f32 to vector<16x64xf32>
    %8 = arith.maximumf %6, %7 : vector<16x64xf32>
    %9 = arith.truncf %8 : vector<16x64xf32> to vector<16x64xbf16>
    %c0_6 = arith.constant 0 : index
    %c0_7 = arith.constant 0 : index
    %10 = vector.load %arg4[%c0_6, %c0_7] : memref<64x32xbf16, #tpu.memory_space<vmem>>, vector<64x32xbf16>
    %cst_8 = arith.constant dense<0.000000e+00> : vector<16x32xf32>
    %11 = tpu.matmul %9, %10, %cst_8 {dimension_numbers = #tpu.dot_dimension_numbers<[1], [0], [0], [1], [0, 0, 1, 1], [], []>} : vector<16x64xbf16>, vector<64x32xbf16>, vector<16x32xf32> -> vector<16x32xf32>
    %c0_9 = arith.constant 0 : index
    %c0_10 = arith.constant 0 : index
    %12 = vector.load %arg5[%c0_9, %c0_10] : memref<1x32xf32, #tpu.memory_space<vmem>>, vector<1x32xf32>
    %13 = vector.broadcast %12 : vector<1x32xf32> to vector<16x32xf32>
    %14 = arith.addf %11, %13 : vector<16x32xf32>
    %15 = arith.addf %0, %14 : vector<16x32xf32>
    %cst_11 = arith.constant dense<0.000000e+00> : vector<16xf32>
    %16 = vector.multi_reduction <add>, %15, %cst_11 [1] : vector<16x32xf32> to vector<16xf32>
    %17 = vector.shape_cast %16 : vector<16xf32> to vector<16x1xf32>
    %cst_12 = arith.constant 3.200000e+01 : f32
    %18 = vector.broadcast %cst_12 : f32 to vector<16x1xf32>
    %19 = arith.divf %17, %18 : vector<16x1xf32>
    %20 = vector.broadcast %19 : vector<16x1xf32> to vector<16x32xf32>
    %21 = arith.subf %15, %20 : vector<16x32xf32>
    %22 = arith.mulf %21, %21 : vector<16x32xf32>
    %cst_13 = arith.constant dense<0.000000e+00> : vector<16xf32>
    %23 = vector.multi_reduction <add>, %22, %cst_13 [1] : vector<16x32xf32> to vector<16xf32>
    %24 = vector.shape_cast %23 : vector<16xf32> to vector<16x1xf32>
    %cst_14 = arith.constant 3.200000e+01 : f32
    %25 = vector.broadcast %cst_14 : f32 to vector<16x1xf32>
    %26 = arith.divf %24, %25 : vector<16x1xf32>
    %27 = vector.broadcast %19 : vector<16x1xf32> to vector<16x32xf32>
    %28 = arith.subf %15, %27 : vector<16x32xf32>
    %cst_15 = arith.constant 9.99999974E-6 : f32
    %29 = vector.broadcast %cst_15 : f32 to vector<16x1xf32>
    %30 = arith.addf %26, %29 : vector<16x1xf32>
    %31 = math.rsqrt %30 : vector<16x1xf32>
    %32 = vector.broadcast %31 : vector<16x1xf32> to vector<16x32xf32>
    %33 = arith.mulf %28, %32 : vector<16x32xf32>
    %c0_16 = arith.constant 0 : index
    %c0_17 = arith.constant 0 : index
    %34 = vector.load %arg6[%c0_16, %c0_17] : memref<1x32xf32, #tpu.memory_space<vmem>>, vector<1x32xf32>
    %35 = vector.broadcast %34 : vector<1x32xf32> to vector<16x32xf32>
    %36 = arith.mulf %33, %35 : vector<16x32xf32>
    %c0_18 = arith.constant 0 : index
    %c0_19 = arith.constant 0 : index
    %37 = vector.load %arg7[%c0_18, %c0_19] : memref<1x32xf32, #tpu.memory_space<vmem>>, vector<1x32xf32>
    %38 = vector.broadcast %37 : vector<1x32xf32> to vector<16x32xf32>
    %39 = arith.addf %36, %38 : vector<16x32xf32>
    %c0_20 = arith.constant 0 : index
    %c0_21 = arith.constant 0 : index
    %40 = vector.load %arg8[%c0_20, %c0_21] : memref<16x32xf32, #tpu.memory_space<vmem>>, vector<16x32xf32>
    tpu.vector_store %arg8[%c0_20, %c0_21], %39 {strides = array<i32>} : memref<16x32xf32, #tpu.memory_space<vmem>>, vector<16x32xf32>,
    return
  }
  func.func @transform_0(%arg0: i32) -> (i32, i32) {
    %c0_i32 = arith.constant 0 : i32
    %c0_i32_0 = arith.constant 0 : i32
    return %arg0, %c0_i32 : i32, i32
  }
  func.func @transform_1(%arg0: i32) -> (i32, i32) {
    %c0_i32 = arith.constant 0 : i32
    %c0_i32_0 = arith.constant 0 : i32
    %c0_i32_1 = arith.constant 0 : i32
    return %c0_i32, %c0_i32_0 : i32, i32
  }
  func.func @transform_2(%arg0: i32) -> (i32, i32) {
    %c0_i32 = arith.constant 0 : i32
    %c0_i32_0 = arith.constant 0 : i32
    %c0_i32_1 = arith.constant 0 : i32
    return %c0_i32, %c0_i32_0 : i32, i32
  }
  func.func @transform_3(%arg0: i32) -> (i32, i32) {
    %c0_i32 = arith.constant 0 : i32
    %c0_i32_0 = arith.constant 0 : i32
    %c0_i32_1 = arith.constant 0 : i32
    return %c0_i32, %c0_i32_0 : i32, i32
  }
  func.func @transform_4(%arg0: i32) -> (i32, i32) {
    %c0_i32 = arith.constant 0 : i32
    %c0_i32_0 = arith.constant 0 : i32
    %c0_i32_1 = arith.constant 0 : i32
    return %c0_i32, %c0_i32_0 : i32, i32
  }
  func.func @transform_5(%arg0: i32) -> (i32, i32) {
    %c0_i32 = arith.constant 0 : i32
    %c0_i32_0 = arith.constant 0 : i32
    %c0_i32_1 = arith.constant 0 : i32
    return %c0_i32, %c0_i32_0 : i32, i32
  }
  func.func @transform_6(%arg0: i32) -> (i32, i32) {
    %c0_i32 = arith.constant 0 : i32
    %c0_i32_0 = arith.constant 0 : i32
    %c0_i32_1 = arith.constant 0 : i32
    return %c0_i32, %c0_i32_0 : i32, i32
  }
  func.func @transform_7(%arg0: i32) -> (i32, i32) {
    %c0_i32 = arith.constant 0 : i32
    %c0_i32_0 = arith.constant 0 : i32
    return %arg0, %c0_i32 : i32, i32
  }
}

module attributes {stable_mosaic.version = 11 : i64} {
  func.func @_linear_kernel(%arg0: i32, %arg1: memref<32x32xf32, #tpu.memory_space<vmem>>, %arg2: memref<32x16xbf16, #tpu.memory_space<vmem>>, %arg3: memref<1x16xf32, #tpu.memory_space<vmem>>, %arg4: memref<32x16xf32, #tpu.memory_space<vmem>>) attributes {dimension_semantics = [#tpu.dimension_semantics<parallel>], iteration_bounds = array<i64: 1>, scalar_prefetch = 0 : i64, scratch_operands = 0 : i64, tpu.core_type = #tpu.core_type<tc>, window_params = [{transform_indices = @transform_0, window_bounds = array<i64: 32, 32>}, {pipeline_mode = #tpu.pipeline_mode<synchronous>, transform_indices = @transform_1, window_bounds = array<i64: 32, 16>}, {pipeline_mode = #tpu.pipeline_mode<synchronous>, transform_indices = @transform_2, window_bounds = array<i64: 1, 16>}, {transform_indices = @transform_3, window_bounds = array<i64: 32, 16>}]} {
    %c0 = arith.constant 0 : index
    %c0_0 = arith.constant 0 : index
    %0 = vector.load %arg1[%c0, %c0_0] : memref<32x32xf32, #tpu.memory_space<vmem>>, vector<32x32xf32>
    %1 = arith.truncf %0 : vector<32x32xf32> to vector<32x32xbf16>
    %c0_1 = arith.constant 0 : index
    %c0_2 = arith.constant 0 : index
    %2 = vector.load %arg2[%c0_1, %c0_2] : memref<32x16xbf16, #tpu.memory_space<vmem>>, vector<32x16xbf16>
    %cst = arith.constant dense<0.000000e+00> : vector<32x16xf32>
    %3 = tpu.matmul %1, %2, %cst {dimension_numbers = #tpu.dot_dimension_numbers<[1], [0], [0], [1], [0, 0, 1, 1], [], []>} : vector<32x32xbf16>, vector<32x16xbf16>, vector<32x16xf32> -> vector<32x16xf32>
    %c0_3 = arith.constant 0 : index
    %c0_4 = arith.constant 0 : index
    %4 = vector.load %arg3[%c0_3, %c0_4] : memref<1x16xf32, #tpu.memory_space<vmem>>, vector<1x16xf32>
    %5 = vector.broadcast %4 : vector<1x16xf32> to vector<32x16xf32>
    %6 = arith.addf %3, %5 : vector<32x16xf32>
    %c0_5 = arith.constant 0 : index
    %c0_6 = arith.constant 0 : index
    %7 = vector.load %arg4[%c0_5, %c0_6] : memref<32x16xf32, #tpu.memory_space<vmem>>, vector<32x16xf32>
    tpu.vector_store %arg4[%c0_5, %c0_6], %6 {strides = array<i32>} : memref<32x16xf32, #tpu.memory_space<vmem>>, vector<32x16xf32>,
    return
  }
  func.func @transform_0(%arg0: i32) -> (i32, i32) {
    %c0_i32 = arith.constant 0 : i32
    %c0_i32_0 = arith.constant 0 : i32
    return %arg0, %c0_i32 : i32, i32
  }
  func.func @transform_1(%arg0: i32) -> (i32, i32) {
    %c0_i32 = arith.constant 0 : i32
    %c0_i32_0 = arith.constant 0 : i32
    %c0_i32_1 = arith.constant 0 : i32
    return %c0_i32, %c0_i32_0 : i32, i32
  }
  func.func @transform_2(%arg0: i32) -> (i32, i32) {
    %c0_i32 = arith.constant 0 : i32
    %c0_i32_0 = arith.constant 0 : i32
    %c0_i32_1 = arith.constant 0 : i32
    return %c0_i32, %c0_i32_0 : i32, i32
  }
  func.func @transform_3(%arg0: i32) -> (i32, i32) {
    %c0_i32 = arith.constant 0 : i32
    %c0_i32_0 = arith.constant 0 : i32
    return %arg0, %c0_i32 : i32, i32
  }
}

</mosaic_0001>

<bundles_post_ra>
// kernel: transformer_module_forward.8
= control target key start
LH: loop header
LB: loop body
LE: loop exit
PB: predicated region body
PF: predicated region fallthrough
CT: control target
= control target key end

     0   :  { %vm36_vm0 = vcmask 130048   ;;  %vm92_vm1 = vcmask 261120   ;;  %s165_s1 = inlined_call_operand.vmem [shape: bf16[16,32], index: 1, kind: input, shape index: {}]   ;;  %s166_s0 = inlined_call_operand.vmem [shape: f32[32,16], index: 0, kind: input, shape index: {}]   ;;  %s167_s2 = inlined_call_operand.vmem [shape: f32[1,32], index: 2, kind: input, shape index: {}]   ;;  %s168_s3 = inlined_call_operand.vmem [shape: f32[32,32], index: 3, kind: output, shape index: {}]  }
   0x1   :  { %v114_v0 = vld [vmem:[%s165_s1] sm:$0xff]   ;;  %v16_v2 = vld [vmem:[%s166_s0 + $0x8] sm:$0xff]  ;;  %v17_v3 = vld [vmem:[%s166_s0 + $0x10] sm:$0xff] }
   0x2   :  { %v15_v1 = vld [vmem:[%s166_s0] sm:$0xff]  ;;  %108 = vmatprep.subr.bf16.mxu0 %v114_v0  ;;  %v18_v5 = vld [vmem:[%s166_s0 + $0x18] sm:$0xff] }
   0x3   :  { %v19_v4 = vpack.c.bf16 %v16_v2, %v15_v1  ;;  %109 = vmatpush3.bf16.msra.mxu0 %v114_v0  ;;  %v20_v6 = vpack.c.bf16 %v18_v5, %v17_v3  ;;  %v101_v7 = vld [vmem:[%s167_s2] ss:$0 sm:$0xff] }
   0x5   :  { %110 = vmatprep.mubr.msk.bf16.mxu0 %vm36_vm0, %v19_v4 }
   0x6   :  { %111 = vmatmul.mubr.msk.bf16.vlgmr.msra.gmra.mrb[0].mxu0 %vm36_vm0, %v20_v6 }
  0xd9   :  { %v112_v8 = vpop.f32.mrb[0].mxu0 }
  0xda   :  { %v86_v9 = vadd.f32 %v112_v8, %v101_v7  ;;  %v77_v10 = vpop.f32.mrb[1].mxu0 }
  0xdb   :  { %v78_v11 = vadd.f32 %v101_v7, %v77_v10  ;;  %v113_v12 = vpop.f32.mrb[2].mxu0 }
  0xdc   :  { %95 = vst.msk [vmem:[%s168_s3 + $0x10] sm:$0xff] %vm92_vm1, %v86_v9  ;;  %v89_v13 = vadd.f32 %v113_v12, %v101_v7  ;;  %v80_v14 = vpop.f32.mrb[3].mxu0 }
  0xdd   :  { %93 = vst.msk [vmem:[%s168_s3] sm:$0xff] %vm92_vm1, %v78_v11  ;;  %v81_v15 = vadd.f32 %v101_v7, %v80_v14 }
  0xde   :  { %96 = vst.msk [vmem:[%s168_s3 + $0x18] sm:$0xff] %vm92_vm1, %v89_v13 }
  0xdf   :  { %94 = vst.msk [vmem:[%s168_s3 + $0x8] sm:$0xff] %vm92_vm1, %v81_v15 }

// kernel: transformer_module_forward.10
= control target key start
LH: loop header
LB: loop body
LE: loop exit
PB: predicated region body
PF: predicated region fallthrough
CT: control target
= control target key end

     0   :  { %vm56_vm0 = vcmask 261120   ;;  %vm157_vm1 = vcmask 523264   ;;  %s466_s1 = inlined_call_operand.vmem [shape: bf16[32,64], index: 1, kind: input, shape index: {}]   ;;  %s467_s0 = inlined_call_operand.vmem [shape: f32[32,32], index: 0, kind: input, shape index: {}]   ;;  %s468_s3 = inlined_call_operand.vmem [shape: bf16[64,32], index: 3, kind: input, shape index: {}]   ;;  %s469_s2 = inlined_call_operand.vmem [shape: f32[1,64], index: 2, kind: input, shape index: {}]   ;;  %s470_s4 = inlined_call_operand.vmem [shape: f32[1,32], index: 4, kind: input, shape index: {}]   ;;  %s471_s5 = inlined_call_operand.vmem [shape: f32[1,32], index: 5, kind: input, shape index: {}]   ;;  %s472_s6 = inlined_call_operand.vmem [shape: f32[1,32], index: 6, kind: input, shape index: {}]   ;;  %s473_s7 = inlined_call_operand.vmem [shape: f32[32,32], index: 7, kind: output, shape index: {}]  }
   0x1   :  { %v344_v0 = vld [vmem:[%s466_s1] sm:$0xff]   ;;  %v345_v1 = vld [vmem:[%s466_s1 + $0x8] sm:$0xff]   ;;  %v29_v4 = vld [vmem:[%s467_s0 + $0x10] sm:$0xff] }
   0x2   :  { %324 = vmatprep.subr.bf16.mxu0 %v344_v0  ;;  %v27_v2 = vld [vmem:[%s467_s0] sm:$0xff]  ;;  %v28_v3 = vld [vmem:[%s467_s0 + $0x8] sm:$0xff]  ;;  %v30_v6 = vld [vmem:[%s467_s0 + $0x18] sm:$0xff] }
   0x3   :  { %325 = vmatpush3.bf16.msra.mxu0 %v344_v0  ;;  %v31_v5 = vpack.c.bf16 %v28_v3, %v27_v2  ;;  %v346_v7 = vld [vmem:[%s468_s3] sm:$0xff]   ;;  %v347_v8 = vld [vmem:[%s468_s3 + $0x8] sm:$0xff]   ;;  %v32_v9 = vpack.c.bf16 %v30_v6, %v29_v4  ;;  %v348_v10 = vld [vmem:[%s468_s3 + $0x10] sm:$0xff]  }
   0x4   :  { %326 = vmatprep.subr.bf16.mxu0 %v345_v1  ;;  %332 = vmatprep.subr.bf16.mxu1 %v346_v7  ;;  %v349_v11 = vld [vmem:[%s468_s3 + $0x18] sm:$0xff]   ;;  %v300_v12 = vld [vmem:[%s469_s2] ss:$0 sm:$0xff] }
   0x5   :  { %328 = vmatprep.mubr.msk.bf16.mxu0 %vm56_vm0, %v31_v5  ;;  %333 = vmatpush3.bf16.msra.mxu1 %v346_v7  ;;  %v305_v27 = vld [vmem:[%s470_s4] ss:$0 sm:$0xff] }
   0x6   :  { %334 = vmatprep.subr.bf16.mxu1 %v347_v8 }
   0x7   :  { %327 = vmatpush3.bf16.msra.mxu0 %v345_v1 }
   0x9   :  { %335 = vmatpush3.bf16.msra.mxu1 %v347_v8 }
   0xa   :  { %329 = vmatmul.mubr.msk.bf16.vlgmr.msra.gmra.mrb[0].mxu0 %vm56_vm0, %v32_v9  ;;  %336 = vmatprep.subr.bf16.mxu1 %v348_v10 }
   0xd   :  { %337 = vmatpush3.bf16.msra.mxu1 %v348_v10 }
   0xe   :  { %338 = vmatprep.subr.bf16.mxu1 %v349_v11 }
  0x11   :  { %339 = vmatpush3.bf16.msra.mxu1 %v349_v11 }
  0xdd   :  { %v330_v13 = vpop.f32.mrb[0].mxu0 }
  0xde   :  { %v106_v14 = vadd.f32 %v330_v13, %v300_v12  ;;  %v97_v15 = vpop.f32.mrb[1].mxu0  ;;  %v312_v13 = vld [vmem:[%s471_s5] ss:$0 sm:$0xff] }
  0xdf   :  { %v98_v16 = vadd.f32 %v300_v12, %v97_v15  ;;  %v331_v17 = vpop.f32.mrb[2].mxu0  ;;  %v313_v15 = vld [vmem:[%s472_s6] ss:$0 sm:$0xff] }
  0xe0   :  { %v109_v18 = vadd.f32 %v331_v17, %v300_v12  ;;  %v100_v19 = vpop.f32.mrb[3].mxu0  ;;  %v114_v21 = vmax.f32 %v106_v14, 0.0 }
  0xe1   :  { %v101_v20 = vadd.f32 %v300_v12, %v100_v19  ;;  %v112_v23 = vmax.f32 %v98_v16, 0.0 }
  0xe2   :  { %v115_v22 = vmax.f32 %v109_v18, 0.0 }
  0xe3   :  { %v113_v24 = vmax.f32 %v101_v20, 0.0 }
  0xe4   :  { %v117_v25 = vpack.c.bf16 %v115_v22, %v114_v21 }
  0xe5   :  { %v116_v26 = vpack.c.bf16 %v113_v24, %v112_v23 }
  0xe7   :  { %340 = vmatprep.mubr.msk.bf16.mxu1 %vm157_vm1, %v116_v26 }
  0xe8   :  { %341 = vmatmul.mubr.msk.bf16.vlgmr.msra.gmra.mrb[0].mxu1 %vm157_vm1, %v117_v25 }
 0x1bb   :  { %v342_v28 = vpop.f32.mrb[0].mxu1 }
 0x1bc   :  { %v207_v29 = vadd.f32 %v342_v28, %v305_v27  ;;  %v198_v30 = vpop.f32.mrb[1].mxu1 }
 0x1bd   :  { %v199_v31 = vadd.f32 %v305_v27, %v198_v30  ;;  %v343_v32 = vpop.f32.mrb[2].mxu1 }
 0x1be   :  { %v210_v33 = vadd.f32 %v343_v32, %v305_v27  ;;  %v201_v34 = vpop.f32.mrb[3].mxu1  ;;  %v215_v35 = vadd.f32 %v207_v29, %v29_v4 }
 0x1bf   :  { %v202_v36 = vadd.f32 %v305_v27, %v201_v34  ;;  %v213_v37 = vadd.f32 %v199_v31, %v27_v2 }
 0x1c0   :  { %v223_v38 = vsel %vm56_vm0, %v215_v35, 0.0  ;;  %v216_v39 = vadd.f32 %v210_v33, %v30_v6 }
 0x1c1   :  { %224 = vadd.xlane.f32.xlu1 %v223_v38  ;;  %v217_v40 = vsel %vm56_vm0, %v213_v37, 0.0  ;;  %v214_v41 = vadd.f32 %v202_v36, %v28_v3 }
 0x1c2   :  { %218 = vadd.xlane.f32.xlu0 %v217_v40  ;;  %v226_v42 = vsel %vm56_vm0, %v216_v39, 0.0 }
 0x1c3   :  { %v220_v43 = vsel %vm56_vm0, %v214_v41, 0.0 }
 0x1c5   :  { %227 = vadd.xlane.f32.xlu1 %v226_v42 }
 0x1c6   :  { %221 = vadd.xlane.f32.xlu0 %v220_v43 }
 0x24e   :  { %v225_v44 = vpop.xlane.xlu1 %224 }
 0x24f   :  { %v232_v45 = vmul.f32 0.03125, %v225_v44  ;;  %v219_v46 = vpop.xlane.xlu0 %218 }
 0x250   :  { %v230_v47 = vmul.f32 0.03125, %v219_v46 }
 0x251   :  { %v236_v48 = vsub.f32 %v215_v35, %v232_v45 }
 0x252   :  { %v234_v49 = vsub.f32 %v213_v37, %v230_v47  ;;  %v228_v50 = vpop.xlane.xlu1 %227 }
 0x253   :  { %v233_v51 = vmul.f32 0.03125, %v228_v50  ;;  %v222_v52 = vpop.xlane.xlu0 %221  ;;  %v240_v58 = vmul.f32 %v236_v48, %v236_v48 }
 0x254   :  { %v231_v53 = vmul.f32 0.03125, %v222_v52  ;;  %v238_v54 = vmul.f32 %v234_v49, %v234_v49 }
 0x255   :  { %v237_v55 = vsub.f32 %v216_v39, %v233_v51  ;;  %v248_v60 = vsel %vm56_vm0, %v240_v58, 0.0 }
 0x256   :  { %v235_v56 = vsub.f32 %v214_v41, %v231_v53  ;;  %v242_v57 = vsel %vm56_vm0, %v238_v54, 0.0 }
 0x257   :  { %243 = vadd.xlane.f32.xlu0 %v242_v57  ;;  %v241_v62 = vmul.f32 %v237_v55, %v237_v55 }
 0x258   :  { %v239_v59 = vmul.f32 %v235_v56, %v235_v56 }
 0x259   :  { %v251_v63 = vsel %vm56_vm0, %v241_v62, 0.0 }
 0x25a   :  { %v245_v61 = vsel %vm56_vm0, %v239_v59, 0.0 }
 0x25b   :  { %249 = vadd.xlane.f32.xlu0 %v248_v60  ;;  %246 = vadd.xlane.f32.xlu1 %v245_v61 }
 0x25f   :  { %252 = vadd.xlane.f32.xlu1 %v251_v63 }
 0x2e4   :  { %v244_v0 = vpop.xlane.xlu0 %243 }
 0x2e5   :  { %v254_v1 = vmul.f32 0.03125, %v244_v0 }
 0x2e7   :  { %v258_v2 = vadd.f32 1e-05, %v254_v1 }
 0x2e8   :  { %v247_v3 = vpop.xlane.xlu1 %246  ;;  %v250_v4 = vpop.xlane.xlu0 %249 }
 0x2e9   :  { %350 = vrsqrt.f32 %v258_v2  ;;  %v255_v5 = vmul.f32 0.03125, %v247_v3  ;;  %v256_v6 = vmul.f32 0.03125, %v250_v4 }
 0x2eb   :  { %v259_v7 = vadd.f32 1e-05, %v255_v5  ;;  %v260_v8 = vadd.f32 1e-05, %v256_v6 }
 0x2ec   :  { %v253_v9 = vpop.xlane.xlu1 %252 }
 0x2ed   :  { %352 = vrsqrt.f32 %v259_v7  ;;  %v257_v10 = vmul.f32 0.03125, %v253_v9 }
 0x2ee   :  { %354 = vrsqrt.f32 %v260_v8 }
 0x2ef   :  { %v261_v11 = vadd.f32 1e-05, %v257_v10 }
 0x2f1   :  { %356 = vrsqrt.f32 %v261_v11 }
 0x2f3   :  { %v351_v12 = vpop.eup %350 }
 0x2f4   :  { %v266_v14 = vmul.f32 %v351_v12, %v234_v49 }
 0x2f6   :  { %v277_v16 = vmul.f32 %v312_v13, %v266_v14 }
 0x2f7   :  { %v353_v17 = vpop.eup %352 }
 0x2f8   :  { %v355_v18 = vpop.eup %354  ;;  %v288_v19 = vadd.f32 %v313_v15, %v277_v16  ;;  %v267_v20 = vmul.f32 %v353_v17, %v235_v56 }
 0x2f9   :  { %v268_v21 = vmul.f32 %v355_v18, %v236_v48 }
 0x2fa   :  { %292 = vst.msk [vmem:[%s473_s7] sm:$0xff] %vm56_vm0, %v288_v19  ;;  %v278_v22 = vmul.f32 %v312_v13, %v267_v20 }
 0x2fb   :  { %v357_v23 = vpop.eup %356  ;;  %v279_v24 = vmul.f32 %v312_v13, %v268_v21 }
 0x2fc   :  { %v289_v25 = vadd.f32 %v313_v15, %v278_v22  ;;  %v269_v26 = vmul.f32 %v357_v23, %v237_v55 }
 0x2fd   :  { %v290_v27 = vadd.f32 %v313_v15, %v279_v24 }
 0x2fe   :  { %293 = vst.msk [vmem:[%s473_s7 + $0x8] sm:$0xff] %vm56_vm0, %v289_v25  ;;  %v280_v28 = vmul.f32 %v312_v13, %v269_v26 }
 0x2ff   :  { %294 = vst.msk [vmem:[%s473_s7 + $0x10] sm:$0xff] %vm56_vm0, %v290_v27 }
 0x300   :  { %v291_v29 = vadd.f32 %v313_v15, %v280_v28 }
 0x302   :  { %295 = vst.msk [vmem:[%s473_s7 + $0x18] sm:$0xff] %vm56_vm0, %v291_v29 }

// kernel: transformer_module_forward.12
= control target key start
LH: loop header
LB: loop body
LE: loop exit
PB: predicated region body
PF: predicated region fallthrough
CT: control target
= control target key end

     0   :  { %v290_v0 = vmov 0.0   ;;  %vm291_vm0 = vmmov 0   ;;  %vm53_vm1 = vcmask 261120   ;;  %vm140_vm2 = vcmask 523264   ;;  %s381_s1 = inlined_call_operand.vmem [shape: bf16[32,64], index: 1, kind: input, shape index: {}]   ;;  %s382_s0 = inlined_call_operand.vmem [shape: f32[16,32], index: 0, kind: input, shape index: {}]   ;;  %s383_s3 = inlined_call_operand.vmem [shape: bf16[64,32], index: 3, kind: input, shape index: {}]   ;;  %s384_s2 = inlined_call_operand.vmem [shape: f32[1,64], index: 2, kind: input, shape index: {}]   ;;  %s385_s4 = inlined_call_operand.vmem [shape: f32[1,32], index: 4, kind: input, shape index: {}]   ;;  %s386_s5 = inlined_call_operand.vmem [shape: f32[1,32], index: 5, kind: input, shape index: {}]   ;;  %s387_s6 = inlined_call_operand.vmem [shape: f32[1,32], index: 6, kind: input, shape index: {}]   ;;  %s388_s7 = inlined_call_operand.vmem [shape: f32[16,32], index: 7, kind: output, shape index: {}]  }
   0x1   :  { %258 = vmatprep.subr.bf16.mxu0 %v290_v0  ;;  %v280_v1 = vld [vmem:[%s381_s1] sm:$0xff]   ;;  %262 = vmatprep.mubr.msk.bf16.mxu0 %vm291_vm0, %v290_v0  ;;  %v281_v2 = vld [vmem:[%s381_s1 + $0x8] sm:$0xff]   ;;  %v284_v8 = vld [vmem:[%s383_s3 + $0x10] sm:$0xff]  }
   0x2   :  { %266 = vmatprep.subr.bf16.mxu1 %v290_v0  ;;  %274 = vmatprep.mubr.msk.bf16.mxu1 %vm291_vm0, %v290_v0  ;;  %v27_v3 = vld [vmem:[%s382_s0] sm:$0xff]  ;;  %v28_v4 = vld [vmem:[%s382_s0 + $0x8] sm:$0xff]  ;;  %v285_v9 = vld [vmem:[%s383_s3 + $0x18] sm:$0xff]  }
   0x3   :  { %259 = vmatpush3.bf16.msra.mxu0 %v280_v1  ;;  %v282_v5 = vld [vmem:[%s383_s3] sm:$0xff]   ;;  %v283_v6 = vld [vmem:[%s383_s3 + $0x8] sm:$0xff]   ;;  %v29_v7 = vpack.c.bf16 %v28_v4, %v27_v3 }
   0x4   :  { %260 = vmatprep.subr.bf16.mxu0 %v290_v0  ;;  %267 = vmatpush3.bf16.msra.mxu1 %v282_v5  ;;  %v238_v10 = vld [vmem:[%s384_s2] ss:$0 sm:$0xff] }
   0x5   :  { %268 = vmatprep.subr.bf16.mxu1 %v290_v0  ;;  %v242_v20 = vld [vmem:[%s385_s4] ss:$0 sm:$0xff] }
   0x6   :  { %v248_v48 = vld [vmem:[%s386_s5] ss:$0 sm:$0xff] }
   0x7   :  { %261 = vmatpush3.bf16.msra.mxu0 %v281_v2  ;;  %v249_v50 = vld [vmem:[%s387_s6] ss:$0 sm:$0xff] }
   0x8   :  { %269 = vmatpush3.bf16.msra.mxu1 %v283_v6 }
   0x9   :  { %270 = vmatprep.subr.bf16.mxu1 %v290_v0 }
   0xa   :  { %263 = vmatmul.mubr.msk.bf16.vlgmr.msra.gmra.mrb[0].mxu0 %vm53_vm1, %v29_v7 }
   0xc   :  { %271 = vmatpush3.bf16.msra.mxu1 %v284_v8 }
   0xd   :  { %272 = vmatprep.subr.bf16.mxu1 %v290_v0 }
  0x10   :  { %273 = vmatpush3.bf16.msra.mxu1 %v285_v9 }
  0xdd   :  { %v91_v11 = vpop.f32.mrb[0].mxu0 }
  0xde   :  { %v92_v12 = vadd.f32 %v238_v10, %v91_v11  ;;  %v264_v13 = vpop.f32.mrb[1].mxu0 }
  0xdf   :  { %v94_v14 = vpop.f32.mrb[2].mxu0 }
  0xe0   :  { %v95_v15 = vadd.f32 %v238_v10, %v94_v14  ;;  %v265_v16 = vpop.f32.mrb[3].mxu0  ;;  %v98_v17 = vmax.f32 %v92_v12, 0.0 }
  0xe2   :  { %v99_v18 = vmax.f32 %v95_v15, 0.0 }
  0xe4   :  { %v100_v19 = vpack.c.bf16 %v99_v18, %v98_v17 }
  0xe6   :  { %275 = vmatmul.mubr.msk.bf16.vlgmr.msra.gmra.mrb[0].mxu1 %vm140_vm2, %v100_v19 }
 0x1b9   :  { %v178_v21 = vpop.f32.mrb[0].mxu1 }
 0x1ba   :  { %v179_v22 = vadd.f32 %v242_v20, %v178_v21  ;;  %v276_v23 = vpop.f32.mrb[1].mxu1 }
 0x1bb   :  { %v181_v24 = vpop.f32.mrb[2].mxu1 }
 0x1bc   :  { %v182_v25 = vadd.f32 %v242_v20, %v181_v24  ;;  %v277_v26 = vpop.f32.mrb[3].mxu1  ;;  %v185_v27 = vadd.f32 %v179_v22, %v27_v3 }
 0x1be   :  { %v187_v28 = vsel %vm53_vm1, %v185_v27, 0.0  ;;  %v186_v29 = vadd.f32 %v182_v25, %v28_v4 }
 0x1bf   :  { %188 = vadd.xlane.f32.xlu0 %v187_v28 }
 0x1c0   :  { %v190_v30 = vsel %vm53_vm1, %v186_v29, 0.0 }
 0x1c3   :  { %191 = vadd.xlane.f32.xlu0 %v190_v30 }
 0x24c   :  { %v189_v31 = vpop.xlane.xlu0 %188 }
 0x24d   :  { %v194_v32 = vmul.f32 0.03125, %v189_v31 }
 0x24f   :  { %v196_v33 = vsub.f32 %v185_v27, %v194_v32 }
 0x250   :  { %v192_v34 = vpop.xlane.xlu0 %191 }
 0x251   :  { %v195_v35 = vmul.f32 0.03125, %v192_v34  ;;  %v198_v36 = vmul.f32 %v196_v33, %v196_v33 }
 0x253   :  { %v197_v37 = vsub.f32 %v186_v29, %v195_v35  ;;  %v200_v38 = vsel %vm53_vm1, %v198_v36, 0.0 }
 0x254   :  { %201 = vadd.xlane.f32.xlu1 %v200_v38 }
 0x255   :  { %v199_v39 = vmul.f32 %v197_v37, %v197_v37 }
 0x257   :  { %v203_v40 = vsel %vm53_vm1, %v199_v39, 0.0 }
 0x258   :  { %204 = vadd.xlane.f32.xlu1 %v203_v40 }
 0x2e1   :  { %v202_v41 = vpop.xlane.xlu1 %201 }
 0x2e2   :  { %v206_v42 = vmul.f32 0.03125, %v202_v41 }
 0x2e4   :  { %v208_v43 = vadd.f32 1e-05, %v206_v42 }
 0x2e5   :  { %v205_v44 = vpop.xlane.xlu1 %204 }
 0x2e6   :  { %286 = vrsqrt.f32 %v208_v43  ;;  %v207_v45 = vmul.f32 0.03125, %v205_v44 }
 0x2e8   :  { %v209_v46 = vadd.f32 1e-05, %v207_v45 }
 0x2ea   :  { %288 = vrsqrt.f32 %v209_v46 }
 0x2f0   :  { %v287_v47 = vpop.eup %286 }
 0x2f1   :  { %v212_v49 = vmul.f32 %v287_v47, %v196_v33 }
 0x2f3   :  { %v221_v51 = vmul.f32 %v248_v48, %v212_v49 }
 0x2f4   :  { %v289_v52 = vpop.eup %288 }
 0x2f5   :  { %v230_v53 = vadd.f32 %v249_v50, %v221_v51  ;;  %v213_v54 = vmul.f32 %v289_v52, %v197_v37 }
 0x2f7   :  { %232 = vst.msk [vmem:[%s388_s7] sm:$0xff] %vm53_vm1, %v230_v53  ;;  %v222_v55 = vmul.f32 %v248_v48, %v213_v54 }
 0x2f9   :  { %v231_v56 = vadd.f32 %v249_v50, %v222_v55 }
 0x2fb   :  { %233 = vst.msk [vmem:[%s388_s7 + $0x8] sm:$0xff] %vm53_vm1, %v231_v56 }

// kernel: transformer_module_forward.11
= control target key start
LH: loop header
LB: loop body
LE: loop exit
PB: predicated region body
PF: predicated region fallthrough
CT: control target
= control target key end

     0   :  { %s1644_s13 = smov 0   ;;  %s1646_s14 = smov 0   ;;  %s1888_s0 = inlined_call_operand.vmem [shape: f32[2,8,32], index: 0, kind: input, shape index: {}]   ;;  %s1889_s1 = inlined_call_operand.vmem [shape: f32[2,8,32], index: 1, kind: input, shape index: {}]   ;;  %s1890_s2 = inlined_call_operand.vmem [shape: bf16[32,32], index: 2, kind: input, shape index: {}]   ;;  %s1891_s3 = inlined_call_operand.vmem [shape: f32[1,32], index: 3, kind: input, shape index: {}]   ;;  %s1892_s4 = inlined_call_operand.vmem [shape: bf16[32,64], index: 4, kind: input, shape index: {}]   ;;  %s1893_s5 = inlined_call_operand.vmem [shape: f32[1,64], index: 5, kind: input, shape index: {}]   ;;  %s1894_s6 = inlined_call_operand.vmem [shape: bf16[32,32], index: 6, kind: input, shape index: {}]   ;;  %s1895_s7 = inlined_call_operand.vmem [shape: f32[1,32], index: 7, kind: input, shape index: {}]   ;;  %s1896_s8 = inlined_call_operand.vmem [shape: f32[1,32], index: 8, kind: input, shape index: {}]   ;;  %s1897_s9 = inlined_call_operand.vmem [shape: f32[1,32], index: 9, kind: input, shape index: {}]   ;;  %s1898_s10 = inlined_call_operand.vmem [shape: f32[2,8,32], index: 10, kind: output, shape index: {}]  }
   0x1   :  { %s1648_s15 = smov 0  }
   0x2 LB: > { %s39_s16 = sadd.s32 1, %s1569_s14  ;;  %p1354_p0 = scmp.ge.s32.totalorder %s1573_s15, 1  ;;  %s1573_s15 = sphi %s1648_s15, %s20_s15   ;;  %s1569_s14 = sphi %s1646_s14, %s1900_s14   ;;  %s1565_s13 = sphi %s1644_s13, %s1899_s13  }
   0x3   : > { %p41_p1 = scmp.ge.s32.totalorder %s39_s16, 2  ;;  %p351_p2 = scmp.lt.s32.totalorder %s1573_s15, 3 }
   0x5   : > { %s1902_s16 = smov (%p41_p1, %s39_s16), 0  ;;  %p352_p3 = pnand %p1354_p0, %p351_p2 }
   0x6   : > { %v1519_v0 = vld [vmem:[%s1890_s2] sm:$0xff] (!%p352_p3)   ;;  %v1575_v1 = vmov (!%p352_p3), 0.0   ;;  %v1521_v3 = vld [vmem:[%s1890_s2 + $0x8] sm:$0xff] (!%p352_p3)   ;;  %vm1576_vm0 = vmmov (!%p352_p3), 0   ;;  %p400_p4 = scmp.lt.s32.totalorder (!%p352_p3), %s1565_s13, 1  ;;  %vm435_vm1 = vcmask (!%p352_p3), 261120  }
   0x7   : > { %355 = sbr.rel (%p352_p3) target bundleno = 1765 (0x6e5), region = 60  ;;  %1407 = vmatprep.subr.bf16.mxu0 (!%p352_p3), %v1575_v1  ;;  %1415 = vmatprep.subr.bf16.mxu1 (!%p352_p3), %v1575_v1  ;;  %v1520_v2 = vld [vmem:[%s1892_s4] sm:$0xff] (!%p352_p3)   ;;  %v1522_v4 = vld [vmem:[%s1892_s4 + $0x8] sm:$0xff] (!%p352_p3)   ;;  %436 = vst.msk [vmem:[#allocation4] sm:$0xff] (!%p352_p3), %vm435_vm1, %v1575_v1  ;;  %vm579_vm2 = vcmask (!%p352_p3), 64512   ;;  %s1577_s19 = smov (!%p352_p3), 120  }
   0x8   : > { %1408 = vmatpush3.bf16.msra.mxu0 (!%p352_p3), %v1519_v0  ;;  %1411 = vmatprep.mubr.msk.bf16.mxu0 (!%p352_p3), %vm1576_vm0, %v1575_v1  ;;  %v1358_v9 = vld [vmem:[%s1891_s3] ss:$0 sm:$0xff] (!%p352_p3)  ;;  %s1578_s20 = smov (!%p352_p3), 112   ;;  %s1579_s21 = smov (!%p352_p3), 104   ;;  %vm426_vm3 = vcmask (!%p352_p3), 7168   ;;  %v1580_v40 = vmov (!%p352_p3), -inf  }
   0x9   : > { %1416 = vmatpush3.bf16.msra.mxu1 (!%p352_p3), %v1520_v2  ;;  %1409 = vmatprep.subr.bf16.mxu0 (!%p352_p3), %v1575_v1  ;;  %v1362_v10 = vld [vmem:[%s1893_s5] ss:$0 sm:$0xff] (!%p352_p3)  ;;  %427 = vst.msk [vmem:[#allocation2] sm:$0xff] (!%p352_p3), %vm426_vm3, %v1580_v40  ;;  %428 = vst.msk [vmem:[#allocation2 + $0x8] sm:$0xff] (!%p352_p3), %vm426_vm3, %v1580_v40  ;;  %v1581_v41 = vmov (!%p352_p3), 0   ;;  %s1582_s22 = smov (!%p352_p3), 96  }
   0xa   : > { %1417 = vmatprep.subr.bf16.mxu1 (!%p352_p3), %v1575_v1  ;;  %1419 = vmatprep.mubr.msk.bf16.mxu1 (!%p352_p3), %vm1576_vm0, %v1575_v1  ;;  %429 = vst.msk [vmem:[#allocation2 + $0x10] sm:$0xff] (!%p352_p3), %vm426_vm3, %v1580_v40  ;;  %430 = vst.msk [vmem:[#allocation2 + $0x18] sm:$0xff] (!%p352_p3), %vm426_vm3, %v1580_v40  ;;  %s1583_s23 = smov (!%p352_p3), 88   ;;  %s1584_s24 = smov (!%p352_p3), 80   ;;  %vm663_vm4 = vcmask (!%p352_p3), 1043456   ;;  %vm1099_vm5 = vcmask (!%p352_p3), 130048  }
   0xb   : > { %431 = vst.msk [vmem:[#allocation3] sm:$0xff] (!%p352_p3), %vm426_vm3, %v1575_v1  ;;  %432 = vst.msk [vmem:[#allocation3 + $0x8] sm:$0xff] (!%p352_p3), %vm426_vm3, %v1575_v1  ;;  %1517 = vset.pattern.permute.xlu1 (!%p352_p3), %v1581_v41  ;;  %1518 = vset.pattern.permute.xlu0 (!%p352_p3), %v1581_v41  ;;  %s1585_s26 = smov (!%p352_p3), 72   ;;  %s1586_s27 = smov (!%p352_p3), 8   ;;  %vm1101_vm6 = vcmask (!%p352_p3), 195584  }
   0xc   : > { %1410 = vmatpush3.bf16.msra.mxu0 (!%p352_p3), %v1521_v3  ;;  %433 = vst.msk [vmem:[#allocation3 + $0x10] sm:$0xff] (!%p352_p3), %vm426_vm3, %v1575_v1  ;;  %434 = vst.msk [vmem:[#allocation3 + $0x18] sm:$0xff] (!%p352_p3), %vm426_vm3, %v1575_v1 }
   0xd   : > { %1418 = vmatpush3.bf16.msra.mxu1 (!%p352_p3), %v1522_v4  ;;  %1423 = vmatprep.subr.bf16.mxu0 (!%p352_p3), %v1575_v1 }
   0xe   : > { %s1904_s13 = smov (!%p400_p4, %s1565_s13), 1  ;;  %1429 = vmatprep.subr.bf16.mxu1 %v1575_v1 }
   0xf   : > { %s1684_s25 = sshll.u32 %s1904_s13, 3 }
  0x10   : > { %s406_s28 = scalar_lea.vmem %s1888_s0, %s1684_s25  ;;  %s413_s11 = scalar_lea.vmem %s1889_s1, %s1684_s25  ;;  %v1761_v57 = vld [vmem:[#allocation2] sm:$0xff]  ;;  %v1771_v61 = vld [vmem:[#allocation2 + $0x8] sm:$0xff] }
  0x11   : > { %v1691_v5 = vld [vmem:[%s406_s28] sm:$0xff]  ;;  %v1781_v2 = vld [vmem:[#allocation2 + $0x10] sm:$0xff]  ;;  %s1587_s28 = smov 16  }
  0x12   : > { %v438_v6 = vpack.c.bf16 %v1691_v5, %v1691_v5  ;;  %v507_v7 = vld [vmem:[%s413_s11] sm:$0xff]  ;;  %s1588_s11 = smov 24  }
  0x13   : > { %v508_v8 = vpack.c.bf16 %v507_v7, %v507_v7  ;;  %v1791_v7 = vld [vmem:[#allocation2 + $0x18] sm:$0xff] }
  0x14   : > { %1412 = vmatmul.mubr.msk.bf16.vlgmr.msra.gmra.mrb[0].mxu0 %vm435_vm1, %v438_v6 }
  0x15   : > { %1420 = vmatmul.mubr.msk.bf16.vlgmr.msra.gmra.mrb[0].mxu1 %vm435_vm1, %v508_v8  ;;  %1425 = vmatprep.mubr.msk.bf16.mxu0 %vm1576_vm0, %v1575_v1 }
  0x16   : > { %1431 = vmatprep.mubr.msk.bf16.mxu1 %vm1576_vm0, %v1575_v1 }
  0xe7   : > { %v499_v11 = vpop.f32.mrb[0].mxu0 }
  0xe8   : > { %v500_v12 = vadd.f32 %v1358_v9, %v499_v11  ;;  %v570_v13 = vpop.f32.mrb[0].mxu1  ;;  %v1413_v14 = vpop.f32.mrb[1].mxu0 }
  0xe9   : > { %v571_v15 = vadd.f32 %v1362_v10, %v570_v13  ;;  %v1421_v16 = vpop.f32.mrb[1].mxu1  ;;  %v502_v17 = vpop.f32.mrb[2].mxu0 }
  0xea   : > { %v505_v18 = vmul.f32 0.35355338, %v500_v12  ;;  %v573_v19 = vpop.f32.mrb[2].mxu1  ;;  %v1414_v20 = vpop.f32.mrb[3].mxu0 }
  0xeb   : > { %v1712_v21 = vpack.c.bf16 %v571_v15, %v571_v15  ;;  %v1422_v22 = vpop.f32.mrb[3].mxu1 }
  0xec   : > { %506 = vst.msk [vmem:[#allocation5] sm:$0xff] %vm435_vm1, %v505_v18 }
  0xed   : > { %710 = vrot.lane.b32.xlu0 %v1712_v21, %s1577_s19  ;;  %840 = vrot.lane.b32.xlu1 %v1712_v21, %s1578_s20  ;;  %v584_v23 = vsel %vm579_vm2, %v1712_v21, 0 }
  0xee   : > { %1424 = vmatpush3.bf16.xpose.msra.mxu0 %v584_v23 }
  0xef   : > { %1435 = vmatprep.subr.bf16.mxu0 %v1575_v1 }
  0xf3   : > { %v577_v24 = vld [vmem:[#allocation5] sm:$0xff] }
  0xf4   : > { %v578_v25 = vpack.c.bf16 %v577_v24, %v577_v24 }
  0xf6   : > { %838 = vrot.lane.b32.xlu1 %v578_v25, %s1578_s20  ;;  %708 = vrot.lane.b32.xlu0 %v578_v25, %s1577_s19 }
  0xf7   : > { %1426 = vmatmul.mubr.msk.bf16.vlgmr.msra.gmra.mrb[4].mxu0 %vm579_vm2, %v578_v25 }
  0xf8   : > { %1437 = vmatprep.mubr.msk.bf16.mxu0 %vm1576_vm0, %v1575_v1 }
  0xfa   : > { %968 = vrot.lane.b32.xlu1 %v578_v25, %s1579_s21  ;;  %970 = vrot.lane.b32.xlu0 %v1712_v21, %s1579_s21 }
 0x15f   : > { %v711_v26 = vpop.permute.xlu0 %710  ;;  %v841_v28 = vpop.permute.xlu1 %840 }
 0x160   : > { %v716_v27 = vsel %vm579_vm2, %v711_v26, 0  ;;  %v846_v30 = vsel %vm579_vm2, %v841_v28, 0 }
 0x161   : > { %1436 = vmatpush3.bf16.xpose.msra.mxu0 %v716_v27 }
 0x162   : > { %1447 = vmatprep.subr.bf16.mxu0 %v1575_v1 }
 0x168   : > { %v709_v29 = vpop.permute.xlu0 %708  ;;  %v839_v32 = vpop.permute.xlu1 %838 }
 0x169   : > { %1438 = vmatmul.mubr.msk.bf16.vlgmr.msra.gmra.mrb[8].mxu0 %vm579_vm2, %v709_v29 }
 0x16a   : > { %1448 = vmatpush3.bf16.xpose.msra.mxu0 %v846_v30  ;;  %1449 = vmatprep.mubr.msk.bf16.mxu0 %vm1576_vm0, %v1575_v1 }
 0x16b   : > { %1459 = vmatprep.subr.bf16.mxu0 %v1575_v1 }
 0x16c   : > { %v971_v31 = vpop.permute.xlu0 %970  ;;  %v969_v34 = vpop.permute.xlu1 %968 }
 0x16d   : > { %v976_v33 = vsel %vm579_vm2, %v971_v31, 0 }
 0x171   : > { %1450 = vmatmul.mubr.msk.bf16.vlgmr.msra.gmra.mrb[12].mxu0 %vm579_vm2, %v839_v32 }
 0x172   : > { %1460 = vmatpush3.bf16.xpose.msra.mxu0 %v976_v33  ;;  %1461 = vmatprep.mubr.msk.bf16.mxu0 %vm1576_vm0, %v1575_v1 }
 0x173   : > { %1471 = vmatprep.subr.bf16.mxu0 %v1575_v1 }
 0x179   : > { %1462 = vmatmul.mubr.msk.bf16.vlgmr.msra.gmra.mrb[16].mxu0 %vm579_vm2, %v969_v34 }
 0x17a   : > { %1475 = vmatprep.mubr.msk.bf16.mxu0 %vm1576_vm0, %v1575_v1 }
 0x1ca   : > { %v1739_v35 = vpop.f32.mrb[4].mxu0 }
 0x1cb   : > { %v1427_v36 = vpop.f32.mrb[5].mxu0  ;;  %v627_v37 = vsel %vm579_vm2, %v1739_v35, -inf }
 0x1cc   : > { %628 = vmax.xlane.f32.xlu0 %v627_v37  ;;  %v623_v38 = vpop.f32.mrb[6].mxu0 }
 0x1cd   : > { %v1428_v39 = vpop.f32.mrb[7].mxu0 }
 0x23c   : > { %v752_v42 = vpop.f32.mrb[8].mxu0 }
 0x23d   : > { %v1439_v43 = vpop.f32.mrb[9].mxu0  ;;  %v760_v44 = vsel %vm579_vm2, %v752_v42, -inf }
 0x23e   : > { %761 = vmax.xlane.f32.xlu1 %v760_v44  ;;  %v755_v45 = vpop.f32.mrb[10].mxu0 }
 0x23f   : > { %v1440_v46 = vpop.f32.mrb[11].mxu0 }
 0x244   : > { %v882_v47 = vpop.f32.mrb[12].mxu0 }
 0x245   : > { %v1451_v48 = vpop.f32.mrb[13].mxu0  ;;  %v890_v49 = vsel %vm579_vm2, %v882_v47, -inf }
 0x246   : > { %891 = vmax.xlane.f32.xlu0 %v890_v49  ;;  %v885_v50 = vpop.f32.mrb[14].mxu0 }
 0x247   : > { %v1452_v51 = vpop.f32.mrb[15].mxu0 }
 0x248   : > { %v642_v51 = vld [vmem:[#allocation3] sm:$0xff] }
 0x24c   : > { %v1757_v52 = vpop.f32.mrb[16].mxu0 }
 0x24d   : > { %v1463_v53 = vpop.f32.mrb[17].mxu0  ;;  %v1020_v54 = vsel %vm579_vm2, %v1757_v52, -inf }
 0x24e   : > { %1021 = vmax.xlane.f32.xlu0 %v1020_v54  ;;  %v1015_v55 = vpop.f32.mrb[18].mxu0 }
 0x24f   : > { %v1464_v56 = vpop.f32.mrb[19].mxu0 }
 0x259   : > { %v629_v58 = vpop.xlane.xlu0 %628 }
 0x25a   : > { %v1764_v59 = vmax.f32 %v1761_v57, %v629_v58 }
 0x25c   : > { %v631_v60 = vsub.f32 %v1761_v57, %v1764_v59  ;;  %650 = vst.msk [vmem:[#allocation2] sm:$0xff] %vm426_vm3, %v1764_v59  ;;  %636 = vperm.xlu1 %1517, %v1764_v59   ;;  %v776_v57 = vld [vmem:[#allocation3 + $0x8] sm:$0xff] }
 0x25e   : > { %v632_v37 = vmul.f32 1.442695, %v631_v60 }
 0x2cb   : > { %v762_v62 = vpop.xlane.xlu1 %761 }
 0x2cc   : > { %v1774_v63 = vmax.f32 %v1771_v61, %v762_v62 }
 0x2ce   : > { %v764_v0 = vsub.f32 %v1771_v61, %v1774_v63  ;;  %783 = vst.msk [vmem:[#allocation2 + $0x8] sm:$0xff] %vm426_vm3, %v1774_v63  ;;  %769 = vperm.xlu0 %1518, %v1774_v63   ;;  %v906_v61 = vld [vmem:[#allocation3 + $0x10] sm:$0xff] }
 0x2d0   : > { %v765_v46 = vmul.f32 1.442695, %v764_v0 }
 0x2d3   : > { %v892_v3 = vpop.xlane.xlu0 %891 }
 0x2d4   : > { %v1784_v4 = vmax.f32 %v1781_v2, %v892_v3  ;;  %v1036_v3 = vld [vmem:[#allocation3 + $0x18] sm:$0xff] }
 0x2d6   : > { %v894_v6 = vsub.f32 %v1781_v2, %v1784_v4  ;;  %913 = vst.msk [vmem:[#allocation2 + $0x10] sm:$0xff] %vm426_vm3, %v1784_v4  ;;  %899 = vperm.xlu1 %1517, %v1784_v4  }
 0x2d8   : > { %v895_v40 = vmul.f32 1.442695, %v894_v6 }
 0x2da   : > { %658 = vrot.lane.b32.xlu1 %v1712_v21, %s1582_s22 }
 0x2db   : > { %v1022_v8 = vpop.xlane.xlu0 %1021  ;;  %v637_v11 = vpop.permute.xlu1 %636 }
 0x2dc   : > { %v1795_v9 = vmax.f32 %v1791_v7, %v1022_v8  ;;  %v639_v12 = vsub.f32 %v1739_v35, %v637_v11 }
 0x2de   : > { %v1024_v10 = vsub.f32 %v1791_v7, %v1795_v9  ;;  %1043 = vst.msk [vmem:[#allocation2 + $0x18] sm:$0xff] %vm426_vm3, %v1795_v9  ;;  %1029 = vperm.xlu1 %1517, %v1795_v9   ;;  %v640_v13 = vmul.f32 1.442695, %v639_v12 }
 0x2e0   : > { %1525 = vpow2.f32 %v640_v13  ;;  %v1025_v44 = vmul.f32 1.442695, %v1024_v10 }
 0x2e2   : > { %790 = vrot.lane.b32.xlu1 %v1712_v21, %s1583_s23 }
 0x2e6   : > { %920 = vrot.lane.b32.xlu1 %v1712_v21, %s1584_s24 }
 0x2ea   : > { %1050 = vrot.lane.b32.xlu1 %v1712_v21, %s1585_s26  ;;  %v1526_v14 = vpop.eup %1525  ;;  %s420_s26 = scalar_lea.vmem %s1898_s10, %s1684_s25 }
 0x2eb   : > { %v644_v15 = vsel %vm579_vm2, %v1526_v14, 0.0  ;;  %v656_v25 = vpack.c.bf16 %v1526_v14, %v1526_v14 }
 0x30e   : > { %645 = vadd.xlane.f32.xlu1 %v644_v15 }
 0x34d   : > { %v770_v16 = vpop.permute.xlu0 %769 }
 0x34e   : > { %v772_v17 = vsub.f32 %v752_v42, %v770_v16 }
 0x350   : > { %v773_v18 = vmul.f32 1.442695, %v772_v17 }
 0x352   : > { %1527 = vpow2.f32 %v773_v18 }
 0x355   : > { %v900_v19 = vpop.permute.xlu1 %899 }
 0x356   : > { %v902_v20 = vsub.f32 %v882_v47, %v900_v19 }
 0x358   : > { %v903_v22 = vmul.f32 1.442695, %v902_v20 }
 0x359   : > { %v659_v23 = vpop.permute.xlu1 %658 }
 0x35a   : > { %1529 = vpow2.f32 %v903_v22  ;;  %v665_v21 = vsel %vm663_vm4, %v659_v23, 0 }
 0x35b   : > { %1430 = vmatpush3.bf16.msra.mxu1 %v665_v21 }
 0x35c   : > { %v1528_v24 = vpop.eup %1527  ;;  %1441 = vmatprep.subr.bf16.mxu1 %v1575_v1 }
 0x35d   : > { %v1030_v26 = vpop.permute.xlu1 %1029  ;;  %v778_v27 = vsel %vm579_vm2, %v1528_v24, 0.0  ;;  %v789_v33 = vpack.c.bf16 %v1528_v24, %v1528_v24  ;;  %v1523_v24 = vld [vmem:[%s1894_s6] sm:$0xff]  }
 0x35e   : > { %v1032_v28 = vsub.f32 %v1757_v52, %v1030_v26  ;;  %1432 = vmatmul.mubr.msk.bf16.vlgmr.msra.gmra.mrb[4].mxu1 %vm579_vm2, %v656_v25  ;;  %779 = vadd.xlane.f32.xlu0 %v778_v27 }
 0x35f   : > { %1443 = vmatprep.mubr.msk.bf16.mxu1 %vm1576_vm0, %v1575_v1  ;;  %1472 = vmatpush3.bf16.msra.mxu0 %v1523_v24 }
 0x360   : > { %v1033_v29 = vmul.f32 1.442695, %v1032_v28  ;;  %1473 = vmatprep.subr.bf16.mxu0 %v1575_v1 }
 0x361   : > { %v791_v30 = vpop.permute.xlu1 %790 }
 0x362   : > { %1531 = vpow2.f32 %v1033_v29  ;;  %v796_v31 = vsel %vm663_vm4, %v791_v30, 0  ;;  %v1524_v30 = vld [vmem:[%s1894_s6 + $0x8] sm:$0xff]  }
 0x363   : > { %1442 = vmatpush3.bf16.msra.mxu1 %v796_v31  ;;  %1533 = vpow2.f32 %v632_v37  ;;  %1474 = vmatpush3.bf16.msra.mxu0 %v1524_v30 }
 0x364   : > { %v1530_v32 = vpop.eup %1529  ;;  %1453 = vmatprep.subr.bf16.mxu1 %v1575_v1  ;;  %1535 = vpow2.f32 %v895_v40 }
 0x365   : > { %v921_v34 = vpop.permute.xlu1 %920  ;;  %v908_v35 = vsel %vm579_vm2, %v1530_v32, 0.0  ;;  %v919_v41 = vpack.c.bf16 %v1530_v32, %v1530_v32  ;;  %1537 = vpow2.f32 %v1025_v44 }
 0x366   : > { %v926_v36 = vsel %vm663_vm4, %v921_v34, 0  ;;  %909 = vadd.xlane.f32.xlu1 %v908_v35  ;;  %1444 = vmatmul.mubr.msk.bf16.vlgmr.msra.gmra.mrb[8].mxu1 %vm579_vm2, %v789_v33  ;;  %1539 = vpow2.f32 %v765_v46 }
 0x367   : > { %1454 = vmatpush3.bf16.msra.mxu1 %v926_v36  ;;  %1455 = vmatprep.mubr.msk.bf16.mxu1 %vm1576_vm0, %v1575_v1 }
 0x368   : > { %1465 = vmatprep.subr.bf16.mxu1 %v1575_v1 }
 0x369   : > { %v1051_v38 = vpop.permute.xlu1 %1050 }
 0x36a   : > { %v1056_v43 = vsel %vm663_vm4, %v1051_v38, 0 }
 0x36c   : > { %v1532_v39 = vpop.eup %1531 }
 0x36d   : > { %v1038_v42 = vsel %vm579_vm2, %v1532_v39, 0.0  ;;  %v1049_v45 = vpack.c.bf16 %v1532_v39, %v1532_v39  ;;  %v1534_v47 = vpop.eup %1533 }
 0x36e   : > { %1456 = vmatmul.mubr.msk.bf16.vlgmr.msra.gmra.mrb[12].mxu1 %vm579_vm2, %v919_v41  ;;  %1039 = vadd.xlane.f32.xlu0 %v1038_v42  ;;  %v1536_v48 = vpop.eup %1535  ;;  %v643_v52 = vmul.f32 %v1534_v47, %v642_v51  ;;  %v1103_v41 = vld [vmem:[#allocation4] sm:$0xff] }
 0x36f   : > { %1466 = vmatpush3.bf16.msra.mxu1 %v1056_v43  ;;  %1467 = vmatprep.mubr.msk.bf16.mxu1 %vm1576_vm0, %v1575_v1  ;;  %v1538_v49 = vpop.eup %1537  ;;  %v907_v62 = vmul.f32 %v1536_v48, %v906_v61 }
 0x370   : > { %v1540_v50 = vpop.eup %1539  ;;  %v1037_v4 = vmul.f32 %v1538_v49, %v1036_v3 }
 0x371   : > { %v777_v58 = vmul.f32 %v1540_v50, %v776_v57 }
 0x376   : > { %1468 = vmatmul.mubr.msk.bf16.vlgmr.msra.gmra.mrb[16].mxu1 %vm579_vm2, %v1049_v45 }
 0x377   : > { %653 = vperm.xlu1 %1517, %v1534_v47  }
 0x37b   : > { %916 = vperm.xlu1 %1517, %v1536_v48  }
 0x37f   : > { %1046 = vperm.xlu1 %1517, %v1538_v49  }
 0x384   : > { %786 = vperm.xlu0 %1518, %v1540_v50  }
 0x39b   : > { %v646_v53 = vpop.xlane.xlu1 %645 }
 0x39c   : > { %v647_v54 = vadd.f32 %v646_v53, %v643_v52 }
 0x39e   : > { %649 = vst.msk [vmem:[#allocation3] sm:$0xff] %vm426_vm3, %v647_v54 }
 0x3a5   : > { %v1125_v55 = vld [vmem:[#allocation3] sm:$0xff] }
 0x3a6   : > { %1541 = vrcp.f32 %v1125_v55 }
 0x3b0   : > { %v1542_v56 = vpop.eup %1541 }
 0x3b1   : > { %1129 = vperm.xlu1 %1517, %v1542_v56   ;;  %v1374_v56 = vld [vmem:[%s1895_s7] ss:$0 sm:$0xff] }
 0x3eb   : > { %v780_v59 = vpop.xlane.xlu0 %779 }
 0x3ec   : > { %v781_v60 = vadd.f32 %v780_v59, %v777_v58 }
 0x3ee   : > { %782 = vst.msk [vmem:[#allocation3 + $0x8] sm:$0xff] %vm426_vm3, %v781_v60 }
 0x3f3   : > { %v910_v63 = vpop.xlane.xlu1 %909 }
 0x3f4   : > { %v911_v0 = vadd.f32 %v910_v63, %v907_v62 }
 0x3f5   : > { %v1132_v2 = vld [vmem:[#allocation3 + $0x8] sm:$0xff] }
 0x3f6   : > { %912 = vst.msk [vmem:[#allocation3 + $0x10] sm:$0xff] %vm426_vm3, %v911_v0  ;;  %1543 = vrcp.f32 %v1132_v2 }
 0x3f7   : > { %v654_v31 = vpop.permute.xlu1 %653 }
 0x3fb   : > { %v1040_v6 = vpop.xlane.xlu0 %1039  ;;  %v917_v32 = vpop.permute.xlu1 %916 }
 0x3fc   : > { %v1041_v7 = vadd.f32 %v1040_v6, %v1037_v4 }
 0x3fd   : > { %v1139_v13 = vld [vmem:[#allocation3 + $0x10] sm:$0xff] }
 0x3fe   : > { %1042 = vst.msk [vmem:[#allocation3 + $0x18] sm:$0xff] %vm426_vm3, %v1041_v7  ;;  %1545 = vrcp.f32 %v1139_v13 }
 0x3ff   : > { %v1047_v34 = vpop.permute.xlu1 %1046 }
 0x400   : > { %v1544_v8 = vpop.eup %1543 }
 0x401   : > { %1136 = vperm.xlu0 %1518, %v1544_v8  }
 0x403   : > { %v787_v33 = vpop.permute.xlu0 %786 }
 0x404   : > { %v1098_v35 = vsel %vm579_vm2, %v654_v31, %v787_v33 }
 0x405   : > { %v1146_v18 = vld [vmem:[#allocation3 + $0x18] sm:$0xff]  ;;  %v1100_v37 = vsel %vm1099_vm5, %v1098_v35, %v917_v32 }
 0x406   : > { %1547 = vrcp.f32 %v1146_v18  ;;  %v1102_v40 = vsel %vm1101_vm6, %v1100_v37, %v1047_v34 }
 0x407   : > { %v1104_v44 = vmul.f32 %v1103_v41, %v1102_v40 }
 0x408   : > { %v1546_v21 = vpop.eup %1545 }
 0x410   : > { %v1548_v29 = vpop.eup %1547 }
 0x430   : > { %v1130_v36 = vpop.permute.xlu1 %1129 }
 0x431   : > { %v701_v9 = vpop.f32.mrb[4].mxu1 }
 0x432   : > { %v1433_v10 = vpop.f32.mrb[5].mxu1 }
 0x433   : > { %v704_v11 = vpop.f32.mrb[6].mxu1 }
 0x434   : > { %v1434_v12 = vpop.f32.mrb[7].mxu1 }
 0x435   : > { %v1379_v12 = vld [vmem:[%s1897_s9] ss:$0 sm:$0xff] }
 0x439   : > { %v832_v14 = vpop.f32.mrb[8].mxu1 }
 0x43a   : > { %v1445_v15 = vpop.f32.mrb[9].mxu1  ;;  %1106 = vrot.lane.b32.xlu0 %v832_v14, %s1586_s27 }
 0x43b   : > { %v835_v16 = vpop.f32.mrb[10].mxu1 }
 0x43c   : > { %v1446_v17 = vpop.f32.mrb[11].mxu1 }
 0x441   : > { %v962_v19 = vpop.f32.mrb[12].mxu1 }
 0x442   : > { %1110 = vrot.lane.b32.xlu1 %v962_v19, %s1587_s28  ;;  %v1457_v20 = vpop.f32.mrb[13].mxu1 }
 0x443   : > { %v965_v22 = vpop.f32.mrb[14].mxu1 }
 0x444   : > { %v1458_v23 = vpop.f32.mrb[15].mxu1 }
 0x446   : > { %1143 = vperm.xlu1 %1517, %v1546_v21  }
 0x449   : > { %v1092_v25 = vpop.f32.mrb[16].mxu1 }
 0x44a   : > { %v1469_v26 = vpop.f32.mrb[17].mxu1  ;;  %1114 = vrot.lane.b32.xlu0 %v1092_v25, %s1588_s11 }
 0x44b   : > { %v1095_v27 = vpop.f32.mrb[18].mxu1 }
 0x44c   : > { %v1470_v28 = vpop.f32.mrb[19].mxu1 }
 0x44e   : > { %1150 = vperm.xlu0 %1518, %v1548_v29  }
 0x480   : > { %v1137_v1 = vpop.permute.xlu0 %1136 }
 0x481   : > { %v1154_v49 = vsel %vm579_vm2, %v1130_v36, %v1137_v1 }
 0x4ac   : > { %v1107_v38 = vpop.permute.xlu0 %1106 }
 0x4ad   : > { %v1117_v42 = vsel %vm579_vm2, %v701_v9, %v1107_v38 }
 0x4b4   : > { %v1111_v39 = vpop.permute.xlu1 %1110 }
 0x4b5   : > { %v1118_v43 = vsel %vm1099_vm5, %v1117_v42, %v1111_v39 }
 0x4bc   : > { %v1115_v45 = vpop.permute.xlu0 %1114 }
 0x4bd   : > { %v1119_v46 = vsel %vm1101_vm6, %v1118_v43, %v1115_v45 }
 0x4be   : > { %v1120_v47 = vadd.f32 %v1119_v46, %v1104_v44 }
 0x4c0   : > { %1121 = vst.msk [vmem:[#allocation4] sm:$0xff] %vm435_vm1, %v1120_v47 }
 0x4c5   : > { %v1144_v48 = vpop.permute.xlu1 %1143 }
 0x4c6   : > { %v1155_v50 = vsel %vm1099_vm5, %v1154_v49, %v1144_v48 }
 0x4c7   : > { %v1153_v52 = vld [vmem:[#allocation4] sm:$0xff] }
 0x4cd   : > { %v1151_v51 = vpop.permute.xlu0 %1150 }
 0x4ce   : > { %v1156_v53 = vsel %vm1101_vm6, %v1155_v50, %v1151_v51 }
 0x4cf   : > { %v1157_v54 = vmul.f32 %v1156_v53, %v1153_v52 }
 0x4d1   : > { %v1158_v55 = vpack.c.bf16 %v1157_v54, %v1157_v54 }
 0x4d3   : > { %1476 = vmatmul.mubr.msk.bf16.vlgmr.msra.gmra.mrb[20].mxu0 %vm435_vm1, %v1158_v55 }
 0x5a6   : > { %v1219_v57 = vpop.f32.mrb[20].mxu0 }
 0x5a7   : > { %v1220_v58 = vadd.f32 %v1374_v56, %v1219_v57  ;;  %v1477_v59 = vpop.f32.mrb[21].mxu0 }
 0x5a8   : > { %v1222_v60 = vpop.f32.mrb[22].mxu0 }
 0x5a9   : > { %v1478_v61 = vpop.f32.mrb[23].mxu0  ;;  %v1226_v62 = vadd.f32 %v1220_v58, %v1691_v5  ;;  %v1378_v5 = vld [vmem:[%s1896_s8] ss:$0 sm:$0xff] }
 0x5ab   : > { %v1227_v63 = vsel %vm435_vm1, %v1226_v62, 0.0 }
 0x5ac   : > { %1228 = vadd.xlane.f32.xlu1 %v1227_v63 }
 0x639   : > { %v1229_v0 = vpop.xlane.xlu1 %1228 }
 0x63a   : > { %v1231_v2 = vmul.f32 0.03125, %v1229_v0 }
 0x63c   : > { %v1232_v3 = vsub.f32 %v1226_v62, %v1231_v2 }
 0x63e   : > { %v1233_v4 = vmul.f32 %v1232_v3, %v1232_v3 }
 0x640   : > { %v1234_v6 = vsel %vm435_vm1, %v1233_v4, 0.0 }
 0x641   : > { %1235 = vadd.xlane.f32.xlu0 %v1234_v6 }
 0x6ce   : > { %v1236_v7 = vpop.xlane.xlu0 %1235 }
 0x6cf   : > { %v1237_v8 = vmul.f32 0.03125, %v1236_v7 }
 0x6d1   : > { %v1238_v9 = vadd.f32 1e-05, %v1237_v8 }
 0x6d3   : > { %1549 = vrsqrt.f32 %v1238_v9 }
 0x6dd   : > { %v1550_v10 = vpop.eup %1549 }
 0x6de   : > { %v1240_v11 = vmul.f32 %v1550_v10, %v1232_v3 }
 0x6e0   : > { %v1248_v13 = vmul.f32 %v1378_v5, %v1240_v11 }
 0x6e2   : > { %v1256_v14 = vadd.f32 %v1379_v12, %v1248_v13 }
 0x6e4   : > { %1257 = vst.msk [vmem:[%s420_s26] sm:$0xff] %vm435_vm1, %v1256_v14 }
 0x6e5 PF: > { %s20_s15 = sadd.s32 1, %s1573_s15   ;;  %s1899_s13 = smov %s1569_s14 }
 0x6e6   : > { %p17_p5 = scmp.ge.s32.totalorder %s20_s15, 4   ;;  %s1900_s14 = smov %s1902_s16 }
 0x6e8   :  { %19 = sbr.rel (!%p17_p5) target bundleno = 2 (0x2), region = 107 }

// kernel: transformer_module_forward.15
= control target key start
LH: loop header
LB: loop body
LE: loop exit
PB: predicated region body
PF: predicated region fallthrough
CT: control target
= control target key end

     0   :  { %vm44_vm0 = vcmask 261120   ;;  %vm100_vm1 = vcmask 130048   ;;  %s181_s1 = inlined_call_operand.vmem [shape: bf16[32,16], index: 1, kind: input, shape index: {}]   ;;  %s182_s0 = inlined_call_operand.vmem [shape: f32[32,32], index: 0, kind: input, shape index: {}]   ;;  %s183_s2 = inlined_call_operand.vmem [shape: f32[1,16], index: 2, kind: input, shape index: {}]   ;;  %s184_s3 = inlined_call_operand.vmem [shape: f32[32,16], index: 3, kind: output, shape index: {}]  }
   0x1   :  { %v126_v0 = vld [vmem:[%s181_s1] sm:$0xff]   ;;  %v127_v1 = vld [vmem:[%s181_s1 + $0x8] sm:$0xff]   ;;  %v17_v5 = vld [vmem:[%s182_s0 + $0x10] sm:$0xff] }
   0x2   :  { %118 = vmatprep.subr.bf16.mxu0 %v126_v0  ;;  %v15_v2 = vld [vmem:[%s182_s0] sm:$0xff]  ;;  %v16_v3 = vld [vmem:[%s182_s0 + $0x8] sm:$0xff]  ;;  %v18_v6 = vld [vmem:[%s182_s0 + $0x18] sm:$0xff] }
   0x3   :  { %119 = vmatpush3.bf16.msra.mxu0 %v126_v0  ;;  %v19_v4 = vpack.c.bf16 %v16_v3, %v15_v2  ;;  %v20_v7 = vpack.c.bf16 %v18_v6, %v17_v5  ;;  %v109_v8 = vld [vmem:[%s183_s2] ss:$0 sm:$0xff] }
   0x4   :  { %120 = vmatprep.subr.bf16.mxu0 %v127_v1 }
   0x5   :  { %122 = vmatprep.mubr.msk.bf16.mxu0 %vm44_vm0, %v19_v4 }
   0x7   :  { %121 = vmatpush3.bf16.msra.mxu0 %v127_v1 }
   0xa   :  { %123 = vmatmul.mubr.msk.bf16.vlgmr.msra.gmra.mrb[0].mxu0 %vm44_vm0, %v20_v7 }
  0xdd   :  { %v124_v9 = vpop.f32.mrb[0].mxu0 }
  0xde   :  { %v94_v10 = vadd.f32 %v124_v9, %v109_v8  ;;  %v85_v11 = vpop.f32.mrb[1].mxu0 }
  0xdf   :  { %v86_v12 = vadd.f32 %v109_v8, %v85_v11  ;;  %v125_v13 = vpop.f32.mrb[2].mxu0 }
  0xe0   :  { %103 = vst.msk [vmem:[%s184_s3 + $0x10] sm:$0xff] %vm100_vm1, %v94_v10  ;;  %v97_v14 = vadd.f32 %v125_v13, %v109_v8  ;;  %v88_v15 = vpop.f32.mrb[3].mxu0 }
  0xe1   :  { %101 = vst.msk [vmem:[%s184_s3] sm:$0xff] %vm100_vm1, %v86_v12  ;;  %v89_v16 = vadd.f32 %v109_v8, %v88_v15 }
  0xe2   :  { %104 = vst.msk [vmem:[%s184_s3 + $0x18] sm:$0xff] %vm100_vm1, %v97_v14 }
  0xe3   :  { %102 = vst.msk [vmem:[%s184_s3 + $0x8] sm:$0xff] %vm100_vm1, %v89_v16 }

// kernel: transformer_module_forward.9
= control target key start
LH: loop header
LB: loop body
LE: loop exit
PB: predicated region body
PF: predicated region fallthrough
CT: control target
= control target key end

     0   :  { %s3147_s25 = smov 0   ;;  %s3149_s26 = smov 0   ;;  %s3796_s0 = inlined_call_operand.vmem [shape: f32[4,8,32], index: 0, kind: input, shape index: {}, may-alias: {0,1}]   ;;  %s3797_s1 = inlined_call_operand.vmem [shape: f32[4,8,32], index: 1, kind: input, shape index: {}, may-alias: {0,1}]   ;;  %s3798_s2 = inlined_call_operand.vmem [shape: bf16[4,8,8,32], index: 2, kind: input, shape index: {}]   ;;  %s3799_s3 = inlined_call_operand.vmem [shape: bf16[32,32], index: 3, kind: input, shape index: {}]   ;;  %s3800_s4 = inlined_call_operand.vmem [shape: f32[1,32], index: 4, kind: input, shape index: {}]   ;;  %s3801_s5 = inlined_call_operand.vmem [shape: bf16[32,64], index: 5, kind: input, shape index: {}]   ;;  %s3802_s6 = inlined_call_operand.vmem [shape: f32[1,64], index: 6, kind: input, shape index: {}]   ;;  %s3803_s7 = inlined_call_operand.vmem [shape: bf16[4,8,32], index: 7, kind: input, shape index: {}]   ;;  %s3804_s8 = inlined_call_operand.vmem [shape: f32[1,32], index: 8, kind: input, shape index: {}]   ;;  %s3805_s9 = inlined_call_operand.vmem [shape: bf16[32,32], index: 9, kind: input, shape index: {}]   ;;  %s3806_s10 = inlined_call_operand.vmem [shape: f32[1,32], index: 10, kind: input, shape index: {}]   ;;  %s3807_s11 = inlined_call_operand.vmem [shape: f32[1,32], index: 11, kind: input, shape index: {}]   ;;  %s3808_s12 = inlined_call_operand.vmem [shape: f32[1,32], index: 12, kind: input, shape index: {}]   ;;  %s3809_s13 = inlined_call_operand.vmem [shape: f32[4,8,32], index: 13, kind: output, shape index: {}]  }
   0x1   :  { %s3151_s27 = smov 0  }
   0x2 LB: > { %s42_s28 = sadd.s32 1, %s3056_s26  ;;  %p2771_p0 = scmp.ge.s32.totalorder %s3060_s27, 1  ;;  %s3060_s27 = sphi %s3151_s27, %s23_s27   ;;  %s3056_s26 = sphi %s3149_s26, %s3814_s26   ;;  %s3052_s25 = sphi %s3147_s25, %s3813_s25  }
   0x3   : > { %p44_p1 = scmp.ge.s32.totalorder %s42_s28, 4  ;;  %p448_p2 = scmp.lt.s32.totalorder %s3060_s27, 5 }
   0x5   : > { %s3816_s28 = smov (%p44_p1, %s42_s28), 0  ;;  %p449_p3 = pnand %p2771_p0, %p448_p2 }
   0x6   : > { %v3002_v0 = vld [vmem:[%s3799_s3] sm:$0xff] (!%p449_p3)   ;;  %v3062_v1 = vmov (!%p449_p3), 0.0   ;;  %v3003_v2 = vld [vmem:[%s3799_s3 + $0x8] sm:$0xff] (!%p449_p3)   ;;  %vm3063_vm0 = vmmov (!%p449_p3), 0   ;;  %p515_p4 = scmp.lt.s32.totalorder (!%p449_p3), %s3052_s25, 3  ;;  %vm563_vm1 = vcmask (!%p449_p3), 261120   ;;  %v929_v24 = vlaneseq (!%p449_p3) }
   0x7   : > { %452 = sbr.rel (%p449_p3) target bundleno = 2211 (0x8a3), region = 72  ;;  %2865 = vmatprep.subr.bf16.mxu0 (!%p449_p3), %v3062_v1  ;;  %2873 = vmatprep.subr.bf16.mxu1 (!%p449_p3), %v3062_v1  ;;  %564 = vst.msk [vmem:[#allocation4] sm:$0xff] (!%p449_p3), %vm563_vm1, %v3062_v1  ;;  %v636_v5 = vld [vmem:[%s3803_s7] sm:$0xf] (!%p449_p3)  ;;  %vm641_vm2 = vcmask (!%p449_p3), 1043456   ;;  %vm637_vm3 = vcmask (!%p449_p3), 64512  }
   0x8   : > { %2866 = vmatpush3.bf16.msra.mxu0 (!%p449_p3), %v3002_v0  ;;  %2869 = vmatprep.mubr.msk.bf16.mxu0 (!%p449_p3), %vm3063_vm0, %v3062_v1  ;;  %v643_v6 = vsel (!%p449_p3), %vm641_vm2, %v636_v5, 0  ;;  %v2784_v7 = vld [vmem:[%s3803_s7 + $0x8] sm:$0xf] (!%p449_p3)  ;;  %v2777_v9 = vld [vmem:[%s3800_s4] ss:$0 sm:$0xff] (!%p449_p3)  ;;  %s3810_s15 = smov (!%p449_p3), 104  }
   0x9   : > { %2867 = vmatprep.subr.bf16.mxu0 (!%p449_p3), %v3062_v1  ;;  %2875 = vmatprep.mubr.msk.bf16.mxu1 (!%p449_p3), %vm3063_vm0, %v3062_v1  ;;  %v747_v8 = vsel (!%p449_p3), %vm641_vm2, %v2784_v7, 0  ;;  %v2782_v16 = vld [vmem:[%s3803_s7 + $0x4] sm:$0xf] (!%p449_p3)  ;;  %s3065_s17 = smov (!%p449_p3), 112   ;;  %s3066_s18 = smov (!%p449_p3), 120   ;;  %v3238_v25 = vshrl.u32 (!%p449_p3), %v929_v24, 7 }
   0xa   : > { %2874 = vmatpush3.bf16.msra.mxu1 (!%p449_p3), %v643_v6  ;;  %v695_v18 = vsel (!%p449_p3), %vm641_vm2, %v2782_v16, 0  ;;  %v2798_v21 = vld [vmem:[%s3804_s8] ss:$0 sm:$0xff] (!%p449_p3)  ;;  %v1148_v26 = vand.u32 (!%p449_p3), 127, %v929_v24  ;;  %v2786_v30 = vld [vmem:[%s3803_s7 + $0xc] sm:$0xf] (!%p449_p3) }
   0xb   : > { %2879 = vmatprep.subr.bf16.mxu1 (!%p449_p3), %v3062_v1  ;;  %v3004_v28 = vld [vmem:[%s3801_s5] sm:$0xff] (!%p449_p3)   ;;  %v3005_v31 = vld [vmem:[%s3801_s5 + $0x8] sm:$0xff] (!%p449_p3)   ;;  %v799_v33 = vsel (!%p449_p3), %vm641_vm2, %v2786_v30, 0  ;;  %v3067_v37 = vmov (!%p449_p3), 1966171168   ;;  %v3295_v55 = vsub.s32 (!%p449_p3), 0, %v3238_v25 }
   0xc   : > { %2868 = vmatpush3.bf16.msra.mxu0 (!%p449_p3), %v3003_v2  ;;  %v3241_v27 = vsub.s32 (!%p449_p3), %v1148_v26, %v3238_v25  ;;  %v927_v38 = vunpack.c.l.s4 (!%p449_p3), %v3067_v37  ;;  %vm1181_vm4 = vcmask (!%p449_p3), 1041409   ;;  %vm554_vm5 = vcmask (!%p449_p3), 7168   ;;  %s3072_s14 = smov (!%p449_p3), 72   ;;  %s3073_s20 = smov (!%p449_p3), 80  }
   0xd   : > { %2885 = vmatprep.subr.bf16.mxu0 (!%p449_p3), %v3062_v1  ;;  %559 = vst.msk [vmem:[#allocation3] sm:$0xff] (!%p449_p3), %vm554_vm5, %v3062_v1  ;;  %560 = vst.msk [vmem:[#allocation3 + $0x8] sm:$0xff] (!%p449_p3), %vm554_vm5, %v3062_v1  ;;  %vm1183_vm6 = vcmask (!%p449_p3), 1042434   ;;  %vm1185_vm7 = vcmask (!%p449_p3), 1043459   ;;  %vm1187_vm8 = vcmask (!%p449_p3), 1044484   ;;  %vm1189_vm9 = vcmask (!%p449_p3), 1045509  }
   0xe   : > { %s3818_s25 = smov (!%p515_p4, %s3052_s25), 3  ;;  %v928_v41 = vunpack.c.0.s8 %v927_v38  ;;  %561 = vst.msk [vmem:[#allocation3 + $0x10] sm:$0xff] %vm554_vm5, %v3062_v1  ;;  %562 = vst.msk [vmem:[#allocation3 + $0x18] sm:$0xff] %vm554_vm5, %v3062_v1  ;;  %vm1191_vm10 = vcmask 1046534   ;;  %vm1193_vm11 = vcmask 1047559   ;;  %s3074_s21 = smov 8  }
   0xf   : > { %s3183_s16 = sshll.u32 %s3818_s25, 3  ;;  %vm2495_vm12 = vcmask 130048   ;;  %vm2497_vm13 = vcmask 195584  }
  0x10   : > { %s3189_s19 = scalar_lea.vmem %s3796_s0, %s3183_s16  ;;  %s528_s30 = scalar_lea.vmem %s3797_s1, %s3183_s16  ;;  %v3274_v44 = vsub.s32 %v928_v41, %v3238_v25 }
  0x11   : > { %v565_v3 = vld [vmem:[%s3189_s19] sm:$0xff]  ;;  %s548_s22 = scalar_lea.vmem %s3809_s13, %s3183_s16 }
  0x12   : > { %v566_v4 = vpack.c.bf16 %v565_v3, %v565_v3  ;;  %v843_v32 = vld [vmem:[%s528_s30] sm:$0xff]  ;;  %s3812_s30 = smov 104  }
  0x13   : > { %v844_v35 = vpack.c.bf16 %v843_v32, %v843_v32 }
  0x14   : > { %2870 = vmatmul.mubr.msk.bf16.vlgmr.msra.gmra.mrb[0].mxu0 %vm563_vm1, %v566_v4 }
  0x15   : > { %2887 = vmatprep.mubr.msk.bf16.mxu0 %vm3063_vm0, %v3062_v1  ;;  %2886 = vmatpush3.bf16.msra.mxu0 %v747_v8 }
  0x16   : > { %2897 = vmatprep.subr.bf16.mxu0 %v3062_v1 }
  0xe7   : > { %v627_v10 = vpop.f32.mrb[0].mxu0 }
  0xe8   : > { %v628_v11 = vadd.f32 %v2777_v9, %v627_v10  ;;  %v2871_v12 = vpop.f32.mrb[1].mxu0 }
  0xe9   : > { %v630_v13 = vpop.f32.mrb[2].mxu0 }
  0xea   : > { %v633_v14 = vmul.f32 0.35355338, %v628_v11  ;;  %v2872_v15 = vpop.f32.mrb[3].mxu0 }
  0xec   : > { %634 = vst.msk [vmem:[#allocation5] sm:$0xff] %vm563_vm1, %v633_v14  ;;  %v635_v17 = vpack.c.bf16 %v633_v14, %v633_v14 }
  0xee   : > { %793 = vrot.lane.b32.xlu1 %v635_v17, %s3810_s15  ;;  %741 = vrot.lane.b32.xlu0 %v635_v17, %s3065_s17 }
  0xef   : > { %2876 = vmatmul.mubr.msk.bf16.vlgmr.msra.gmra.mrb[0].mxu1 %vm637_vm3, %v635_v17 }
  0xf0   : > { %2880 = vmatpush3.bf16.msra.mxu1 %v695_v18  ;;  %2881 = vmatprep.mubr.msk.bf16.mxu1 %vm3063_vm0, %v3062_v1 }
  0xf1   : > { %2891 = vmatprep.subr.bf16.mxu1 %v3062_v1 }
  0xf2   : > { %689 = vrot.lane.b32.xlu0 %v635_v17, %s3066_s18 }
  0xf3   : > { %v921_v19 = vld [vmem:[#allocation5] sm:$0xff] }
  0xf4   : > { %v3221_v20 = vpack.c.bf16 %v921_v19, %v921_v19  ;;  %v3232_v22 = vmul.f32 %v2798_v21, %v921_v19  ;;  %v2788_v21 = vld [vmem:[%s3802_s6] ss:$0 sm:$0xff] }
  0xf6   : > { %1512 = vrot.lane.b32.xlu0 %v3221_v20, %s3066_s18  ;;  %v1063_v23 = vsel %vm637_vm3, %v3232_v22, 0.0 }
  0xfa   : > { %1902 = vrot.lane.b32.xlu0 %v3221_v20, %s3065_s17 }
  0xfe   : > { %2292 = vrot.lane.b32.xlu0 %v3221_v20, %s3810_s15  ;;  %s2812_s15 = sshll.u32 %s3818_s25, 5 }
  0xff   : > { %s540_s24 = scalar_lea.vmem %s3798_s2, %s2812_s15  ;;  %s3075_s15 = smov 16  }
 0x100   : > { %v2814_v51 = vld [vmem:[%s540_s24] sm:$0xff]   ;;  %v3287_v52 = vld [vmem:[%s540_s24 + $0x8] sm:$0xff]   ;;  %v2830_v60 = vld [vmem:[%s540_s24 + $0x10] sm:$0xff]  }
 0x101   : > { %v3289_v53 = vunpack.c.h.bf16 %v2814_v51  ;;  %v3302_v58 = vunpack.c.l.bf16 %v3287_v52  ;;  %v3308_v63 = vunpack.c.l.bf16 %v2830_v60  ;;  %v2831_v5 = vld [vmem:[%s540_s24 + $0x18] sm:$0xff]   ;;  %v3346_v37 = vunpack.c.l.bf16 %v2814_v51  ;;  %s3076_s24 = smov 24  }
 0x102   : > { %1847 = vrot.lane.b32.xlu0 %v3232_v22, %s3065_s17  ;;  %v3315_v8 = vunpack.c.l.bf16 %v2831_v5 }
 0x121   : > { %1064 = vadd.xlane.f32.xlu0 %v1063_v23 }
 0x160   : > { %v742_v29 = vpop.permute.xlu0 %741  ;;  %v794_v36 = vpop.permute.xlu1 %793 }
 0x161   : > { %2888 = vmatmul.mubr.msk.bf16.vlgmr.msra.gmra.mrb[4].mxu0 %vm637_vm3, %v742_v29 }
 0x162   : > { %2898 = vmatpush3.bf16.msra.mxu0 %v3004_v28  ;;  %2901 = vmatprep.mubr.msk.bf16.mxu0 %vm3063_vm0, %v3062_v1 }
 0x163   : > { %2899 = vmatprep.subr.bf16.mxu0 %v3062_v1 }
 0x164   : > { %v690_v34 = vpop.permute.xlu0 %689 }
 0x165   : > { %2882 = vmatmul.mubr.msk.bf16.vlgmr.msra.gmra.mrb[4].mxu1 %vm637_vm3, %v690_v34 }
 0x166   : > { %2900 = vmatpush3.bf16.msra.mxu0 %v3005_v31  ;;  %2892 = vmatpush3.bf16.msra.mxu1 %v799_v33 }
 0x167   : > { %2893 = vmatprep.mubr.msk.bf16.mxu1 %vm3063_vm0, %v3062_v1  ;;  %2905 = vmatprep.subr.bf16.mxu1 %v3062_v1 }
 0x168   : > { %2911 = vmatprep.subr.bf16.mxu0 %v3062_v1 }
 0x169   : > { %2902 = vmatmul.mubr.msk.bf16.vlgmr.msra.gmra.mrb[8].mxu0 %vm563_vm1, %v844_v35 }
 0x16a   : > { %2913 = vmatprep.mubr.msk.bf16.mxu0 %vm3063_vm0, %v3062_v1 }
 0x16d   : > { %2894 = vmatmul.mubr.msk.bf16.vlgmr.msra.gmra.mrb[8].mxu1 %vm637_vm3, %v794_v36 }
 0x16e   : > { %2907 = vmatprep.mubr.msk.bf16.mxu1 %vm3063_vm0, %v3062_v1 }
 0x1c2   : > { %v679_v39 = vpop.f32.mrb[0].mxu1 }
 0x1c3   : > { %685 = vst.msk [vmem:[#allocation6] sm:$0xff] %vm563_vm1, %v679_v39  ;;  %v2877_v40 = vpop.f32.mrb[1].mxu1 }
 0x1c4   : > { %v682_v42 = vpop.f32.mrb[2].mxu1  ;;  %v3354_v40 = vpop.permute.xlu0 %1512 }
 0x1c5   : > { %v2878_v43 = vpop.f32.mrb[3].mxu1  ;;  %v3358_v42 = vunpack.c.h.bf16 %v3287_v52 }
 0x1ca   : > { %v923_v45 = vld [vmem:[#allocation6] sm:$0xff] }
 0x1cb   : > { %v932_v46 = vrot.slane %v923_v45, %v3274_v44  ;;  %v925_v47 = vcombine.high %v923_v45, %v923_v45  ;;  %v3362_v45 = vunpack.c.h.bf16 %v2830_v60 }
 0x1cd   : > { %v940_v48 = vcombine.high %v932_v46, %v932_v46  ;;  %v3282_v49 = vrot.slane %v932_v46, %v3274_v44  ;;  %v3285_v50 = vrot.slane %v925_v47, %v3274_v44 }
 0x1cf   : > { %v3292_v54 = vrot.slane %v940_v48, %v3274_v44  ;;  %v970_v56 = vcombine.high %v3282_v49, %v3282_v49  ;;  %v955_v61 = vrot.slane %v3285_v50, %v3274_v44  ;;  %v985_v38 = vrot.slane %v3282_v49, %v3295_v55 }
 0x1d1   : > { %v989_v57 = vrot.slane %v3292_v54, %v3295_v55  ;;  %v993_v59 = vrot.slane %v970_v56, %v3295_v55  ;;  %v1001_v3 = vrot.slane %v955_v61, %v3295_v55  ;;  %v971_v4 = vcombine.high %v955_v61, %v955_v61 }
 0x1d2   : > { %v972_v39 = vcombine.high %v3292_v54, %v3292_v54  ;;  %v1022_v41 = vmul.f32 %v3346_v37, %v985_v38  ;;  %v3369_v54 = vunpack.c.h.bf16 %v2831_v5 }
 0x1d3   : > { %v1023_v62 = vmul.f32 %v3289_v53, %v989_v57  ;;  %v1024_v2 = vmul.f32 %v3302_v58, %v993_v59  ;;  %v1026_v7 = vmul.f32 %v3308_v63, %v1001_v3  ;;  %v1009_v9 = vrot.slane %v971_v4, %v3295_v55 }
 0x1d4   : > { %v1030_v46 = vsel %vm563_vm1, %v1022_v41, 0.0 }
 0x1d5   : > { %v1033_v0 = vsel %vm563_vm1, %v1023_v62, 0.0  ;;  %v1036_v6 = vsel %vm563_vm1, %v1024_v2, 0.0  ;;  %v1042_v10 = vsel %vm563_vm1, %v1026_v7, 0.0  ;;  %v1028_v11 = vmul.f32 %v3315_v8, %v1009_v9 }
 0x1d6   : > { %1034 = vadd.xlane.f32.xlu0 %v1033_v0 }
 0x1d7   : > { %v1048_v12 = vsel %vm563_vm1, %v1028_v11, 0.0 }
 0x1da   : > { %1037 = vadd.xlane.f32.xlu0 %v1036_v6 }
 0x1de   : > { %1043 = vadd.xlane.f32.xlu0 %v1042_v10 }
 0x1e2   : > { %1049 = vadd.xlane.f32.xlu0 %v1048_v12 }
 0x234   : > { %v783_v13 = vpop.f32.mrb[4].mxu0 }
 0x235   : > { %790 = vst.msk [vmem:[#allocation6 + $0x10] sm:$0xff] %vm563_vm1, %v783_v13  ;;  %v2889_v14 = vpop.f32.mrb[5].mxu0 }
 0x236   : > { %v786_v15 = vpop.f32.mrb[6].mxu0 }
 0x237   : > { %v2890_v16 = vpop.f32.mrb[7].mxu0 }
 0x238   : > { %v731_v17 = vpop.f32.mrb[4].mxu1  ;;  %v3068_v16 = vmov 0  }
 0x239   : > { %738 = vst.msk [vmem:[#allocation6 + $0x8] sm:$0xff] %vm563_vm1, %v731_v17  ;;  %v2883_v18 = vpop.f32.mrb[5].mxu1  ;;  %3000 = vset.pattern.permute.xlu1 %v3068_v16  ;;  %3001 = vset.pattern.permute.xlu0 %v3068_v16 }
 0x23a   : > { %v734_v19 = vpop.f32.mrb[6].mxu1 }
 0x23b   : > { %v2884_v23 = vpop.f32.mrb[7].mxu1 }
 0x23c   : > { %v906_v24 = vpop.f32.mrb[8].mxu0  ;;  %v1715_v3 = vld [vmem:[#allocation6 + $0x10] sm:$0xff] }
 0x23d   : > { %v907_v26 = vadd.f32 %v2788_v21, %v906_v24  ;;  %v2903_v28 = vpop.f32.mrb[9].mxu0  ;;  %v3384_v4 = vrot.slane %v1715_v3, %v3274_v44  ;;  %v1717_v17 = vcombine.high %v1715_v3, %v1715_v3 }
 0x23e   : > { %v909_v29 = vpop.f32.mrb[10].mxu0 }
 0x23f   : > { %v3326_v30 = vpack.c.bf16 %v907_v26, %v907_v26  ;;  %v2904_v31 = vpop.f32.mrb[11].mxu0  ;;  %v1732_v11 = vcombine.high %v3384_v4, %v3384_v4  ;;  %v3403_v24 = vrot.slane %v1717_v17, %v3274_v44 }
 0x240   : > { %v835_v32 = vpop.f32.mrb[8].mxu1  ;;  %v1324_v51 = vld [vmem:[#allocation6 + $0x8] sm:$0xff] }
 0x241   : > { %842 = vst.msk [vmem:[#allocation6 + $0x18] sm:$0xff] %vm563_vm1, %v835_v32  ;;  %v2895_v33 = vpop.f32.mrb[9].mxu1  ;;  %1514 = vrot.lane.b32.xlu1 %v3326_v30, %s3066_s18  ;;  %v1200_v34 = vsel %vm637_vm3, %v3326_v30, 0  ;;  %v3375_v59 = vrot.slane %v1324_v51, %v3274_v44  ;;  %v1326_v2 = vcombine.high %v1324_v51, %v1324_v51  ;;  %v1754_v23 = vrot.slane %v1732_v11, %v3274_v44 }
 0x242   : > { %v838_v35 = vpop.f32.mrb[10].mxu1  ;;  %2906 = vmatpush3.bf16.xpose.msra.mxu1 %v1200_v34  ;;  %v1733_v32 = vcombine.high %v3403_v24, %v3403_v24 }
 0x243   : > { %v2896_v36 = vpop.f32.mrb[11].mxu1  ;;  %2917 = vmatprep.subr.bf16.mxu1 %v3062_v1  ;;  %v1349_v0 = vrot.slane %v3375_v59, %v3274_v44  ;;  %v3389_v9 = vrot.slane %v1326_v2, %v3274_v44  ;;  %v1773_v29 = vrot.slane %v1754_v23, %v3295_v55 }
 0x244   : > { %v1764_v36 = vcombine.high %v1754_v23, %v1754_v23  ;;  %v1761_v38 = vrot.slane %v1733_v32, %v3274_v44 }
 0x245   : > { %1904 = vrot.lane.b32.xlu1 %v3326_v30, %s3065_s17  ;;  %v1378_v6 = vrot.slane %v1349_v0, %v3295_v55  ;;  %v1371_v7 = vcombine.high %v1349_v0, %v1349_v0  ;;  %v1356_v15 = vrot.slane %v3389_v9, %v3274_v44  ;;  %v1807_v34 = vmul.f32 %v3289_v53, %v1773_v29  ;;  %s3070_s17 = smov 96  }
 0x246   : > { %v1781_v41 = vrot.slane %v1764_v36, %v3295_v55 }
 0x247   : > { %v1415_v13 = vmul.f32 %v3346_v37, %v1378_v6  ;;  %v1386_v14 = vrot.slane %v1371_v7, %v3295_v55  ;;  %v1394_v21 = vrot.slane %v1356_v15, %v3295_v55  ;;  %v1372_v31 = vcombine.high %v1356_v15, %v1356_v15 }
 0x249   : > { %2294 = vrot.lane.b32.xlu1 %v3326_v30, %s3812_s30  ;;  %2908 = vmatmul.mubr.msk.bf16.vlgmr.msra.gmra.mrb[12].mxu1 %vm637_vm3, %v3221_v20  ;;  %v941_v20 = vcombine.high %v3285_v50, %v3285_v50  ;;  %v3367_v50 = vpop.permute.xlu0 %1902  ;;  %v1423_v18 = vsel %vm563_vm1, %v1415_v13, 0.0  ;;  %v1417_v19 = vmul.f32 %v3302_v58, %v1386_v14  ;;  %v1419_v28 = vmul.f32 %v3308_v63, %v1394_v21 }
 0x24a   : > { %2919 = vmatprep.mubr.msk.bf16.mxu1 %vm3063_vm0, %v3062_v1  ;;  %v1402_v35 = vrot.slane %v1372_v31, %v3295_v55 }
 0x24b   : > { %v969_v43 = vrot.slane %v941_v20, %v3274_v44  ;;  %v1429_v26 = vsel %vm563_vm1, %v1417_v19, 0.0  ;;  %v1435_v33 = vsel %vm563_vm1, %v1419_v28, 0.0 }
 0x24c   : > { %v1421_v20 = vmul.f32 %v3315_v8, %v1402_v35 }
 0x24d   : > { %1456 = vrot.lane.b32.xlu1 %v3232_v22, %s3066_s18  ;;  %v1005_v48 = vrot.slane %v969_v43, %v3295_v55  ;;  %v973_v49 = vcombine.high %v969_v43, %v969_v43  ;;  %v3377_v60 = vpop.permute.xlu0 %2292  ;;  %v1789_v43 = vrot.slane %v1761_v38, %v3295_v55  ;;  %s3071_s18 = smov 88  }
 0x24f   : > { %v1027_v56 = vmul.f32 %v3362_v45, %v1005_v48  ;;  %v1013_v57 = vrot.slane %v973_v49, %v3295_v55  ;;  %v1765_v48 = vcombine.high %v1761_v38, %v1761_v38  ;;  %v1811_v51 = vmul.f32 %v3362_v45, %v1789_v43 }
 0x251   : > { %2237 = vrot.lane.b32.xlu1 %v3232_v22, %s3812_s30  ;;  %v997_v22 = vrot.slane %v972_v39, %v3295_v55  ;;  %v1045_v61 = vsel %vm563_vm1, %v1027_v56, 0.0  ;;  %v1029_v62 = vmul.f32 %v3369_v54, %v1013_v57  ;;  %v1848_v10 = vpop.permute.xlu0 %1847  ;;  %v1817_v39 = vsel %vm563_vm1, %v1807_v34, 0.0 }
 0x252   : > { %v1850_v12 = vsel %vm637_vm3, %v1848_v10, 0.0  ;;  %v1797_v56 = vrot.slane %v1765_v48, %v3295_v55  ;;  %v1341_v34 = vcombine.high %v3375_v59, %v3375_v59 }
 0x253   : > { %v1025_v47 = vmul.f32 %v3358_v42, %v997_v22  ;;  %v1051_v5 = vsel %vm563_vm1, %v1029_v62, 0.0  ;;  %v2105_v22 = vld [vmem:[#allocation6 + $0x18] sm:$0xff]  ;;  %v1829_v62 = vsel %vm563_vm1, %v1811_v51, 0.0 }
 0x254   : > { %v3421_v49 = vrot.slane %v2105_v22, %v3274_v44  ;;  %v1813_v0 = vmul.f32 %v3369_v54, %v1797_v56  ;;  %v1342_v56 = vcombine.high %v3389_v9, %v3389_v9 }
 0x255   : > { %v1039_v52 = vsel %vm563_vm1, %v1025_v47, 0.0  ;;  %v1809_v47 = vmul.f32 %v3358_v42, %v1781_v41 }
 0x256   : > { %v2130_v57 = vrot.slane %v3421_v49, %v3274_v44  ;;  %v1835_v6 = vsel %vm563_vm1, %v1813_v0, 0.0 }
 0x258   : > { %v2159_v2 = vrot.slane %v2130_v57, %v3295_v55  ;;  %v2152_v3 = vcombine.high %v2130_v57, %v2130_v57 }
 0x25a   : > { %v2196_v7 = vmul.f32 %v3346_v37, %v2159_v2  ;;  %v2167_v10 = vrot.slane %v2152_v3, %v3295_v55 }
 0x25c   : > { %v2198_v13 = vmul.f32 %v3302_v58, %v2167_v10 }
 0x25e   : > { %v2210_v16 = vsel %vm563_vm1, %v2198_v13, 0.0 }
 0x275   : > { %1031 = vadd.xlane.f32.xlu1 %v1030_v46  ;;  %v1441_v46 = vsel %vm563_vm1, %v1421_v20, 0.0 }
 0x279   : > { %1040 = vadd.xlane.f32.xlu1 %v1039_v52  ;;  %v1823_v52 = vsel %vm563_vm1, %v1809_v47, 0.0 }
 0x27d   : > { %1046 = vadd.xlane.f32.xlu1 %v1045_v61  ;;  %v2107_v61 = vcombine.high %v2105_v22, %v2105_v22 }
 0x281   : > { %1052 = vadd.xlane.f32.xlu1 %v1051_v5  ;;  %v3432_v5 = vrot.slane %v2107_v61, %v3274_v44 }
 0x283   : > { %v2137_v11 = vrot.slane %v3432_v5, %v3274_v44 }
 0x285   : > { %1851 = vadd.xlane.f32.xlu1 %v1850_v12  ;;  %v2204_v12 = vsel %vm563_vm1, %v2196_v7, 0.0  ;;  %v2175_v14 = vrot.slane %v2137_v11, %v3295_v55  ;;  %v2153_v15 = vcombine.high %v2137_v11, %v2137_v11  ;;  %v2122_v7 = vcombine.high %v3421_v49, %v3421_v49 }
 0x287   : > { %v2200_v17 = vmul.f32 %v3308_v63, %v2175_v14  ;;  %v2144_v13 = vrot.slane %v2122_v7, %v3274_v44  ;;  %v2123_v14 = vcombine.high %v3432_v5, %v3432_v5 }
 0x289   : > { %1424 = vadd.xlane.f32.xlu1 %v1423_v18  ;;  %v2183_v18 = vrot.slane %v2153_v15, %v3295_v55  ;;  %v2216_v19 = vsel %vm563_vm1, %v2200_v17, 0.0  ;;  %v2163_v17 = vrot.slane %v2144_v13, %v3295_v55  ;;  %v2154_v49 = vcombine.high %v2144_v13, %v2144_v13 }
 0x28b   : > { %v2202_v21 = vmul.f32 %v3315_v8, %v2183_v18 }
 0x28d   : > { %1430 = vadd.xlane.f32.xlu1 %v1429_v26  ;;  %v2222_v28 = vsel %vm563_vm1, %v2202_v21, 0.0  ;;  %v2151_v21 = vrot.slane %v2123_v14, %v3274_v44 }
 0x291   : > { %1436 = vadd.xlane.f32.xlu1 %v1435_v33  ;;  %v1740_v33 = vrot.slane %v3384_v4, %v3274_v44 }
 0x293   : > { %v1769_v38 = vrot.slane %v1740_v33, %v3295_v55  ;;  %v1762_v20 = vcombine.high %v1740_v33, %v1740_v33 }
 0x295   : > { %1818 = vadd.xlane.f32.xlu1 %v1817_v39  ;;  %v1363_v39 = vrot.slane %v1341_v34, %v3274_v44  ;;  %v1806_v41 = vmul.f32 %v3346_v37, %v1769_v38  ;;  %v1777_v43 = vrot.slane %v1762_v20, %v3295_v55 }
 0x297   : > { %v1382_v22 = vrot.slane %v1363_v39, %v3295_v55  ;;  %v1808_v37 = vmul.f32 %v3302_v58, %v1777_v43 }
 0x299   : > { %1442 = vadd.xlane.f32.xlu1 %v1441_v46  ;;  %v1814_v46 = vsel %vm563_vm1, %v1806_v41, 0.0  ;;  %v1416_v47 = vmul.f32 %v3289_v53, %v1382_v22 }
 0x29b   : > { %v1426_v48 = vsel %vm563_vm1, %v1416_v47, 0.0 }
 0x29d   : > { %1824 = vadd.xlane.f32.xlu1 %v1823_v52  ;;  %v1373_v52 = vcombine.high %v1363_v39, %v1363_v39  ;;  %v3525_v39 = vsub.s32 1, %v3238_v25 }
 0x29f   : > { %v1390_v58 = vrot.slane %v1373_v52, %v3295_v55 }
 0x2a1   : > { %1830 = vadd.xlane.f32.xlu1 %v1829_v62  ;;  %v1418_v0 = vmul.f32 %v3358_v42, %v1390_v58 }
 0x2a3   : > { %v1432_v3 = vsel %vm563_vm1, %v1418_v0, 0.0 }
 0x2a5   : > { %1836 = vadd.xlane.f32.xlu1 %v1835_v6 }
 0x2a9   : > { %2205 = vadd.xlane.f32.xlu1 %v2204_v12 }
 0x2ad   : > { %2211 = vadd.xlane.f32.xlu1 %v2210_v16 }
 0x2b1   : > { %2217 = vadd.xlane.f32.xlu1 %v2216_v19  ;;  %v2171_v19 = vrot.slane %v2154_v49, %v3295_v55 }
 0x2b3   : > { %v1515_v23 = vpop.permute.xlu1 %1514  ;;  %v2199_v5 = vmul.f32 %v3358_v42, %v2171_v19  ;;  %v1065_v42 = vpop.xlane.xlu0 %1064 }
 0x2b4   : > { %v1592_v26 = vsel %vm637_vm3, %v1515_v23, 0 }
 0x2b5   : > { %2223 = vadd.xlane.f32.xlu1 %v2222_v28  ;;  %2918 = vmatpush3.bf16.xpose.msra.mxu1 %v1592_v26  ;;  %v2179_v26 = vrot.slane %v2151_v21, %v3295_v55  ;;  %v2155_v28 = vcombine.high %v2151_v21, %v2151_v21 }
 0x2b6   : > { %2929 = vmatprep.subr.bf16.mxu1 %v3062_v1 }
 0x2b7   : > { %v1905_v29 = vpop.permute.xlu1 %1904  ;;  %v1035_v34 = vpop.xlane.xlu0 %1034 }
 0x2b8   : > { %v1982_v32 = vsel %vm637_vm3, %v1905_v29, 0  ;;  %v2213_v29 = vsel %vm563_vm1, %v2199_v5, 0.0 }
 0x2bb   : > { %v2295_v31 = vpop.permute.xlu1 %2294  ;;  %v1038_v38 = vpop.xlane.xlu0 %1037 }
 0x2bc   : > { %2920 = vmatmul.mubr.msk.bf16.vlgmr.msra.gmra.mrb[16].mxu1 %vm637_vm3, %v3354_v40  ;;  %v2372_v4 = vsel %vm637_vm3, %v2295_v31, 0  ;;  %v2201_v31 = vmul.f32 %v3362_v45, %v2179_v26 }
 0x2bd   : > { %2930 = vmatpush3.bf16.xpose.msra.mxu1 %v1982_v32  ;;  %2931 = vmatprep.mubr.msk.bf16.mxu1 %vm3063_vm0, %v3062_v1  ;;  %v2187_v32 = vrot.slane %v2155_v28, %v3295_v55 }
 0x2be   : > { %2941 = vmatprep.subr.bf16.mxu1 %v3062_v1 }
 0x2bf   : > { %v1457_v35 = vpop.permute.xlu1 %1456  ;;  %v1044_v41 = vpop.xlane.xlu0 %1043 }
 0x2c0   : > { %v1459_v36 = vsel %vm637_vm3, %v1457_v35, 0.0  ;;  %v3521_v35 = vsub.s32 2, %v3238_v25 }
 0x2c1   : > { %1460 = vadd.xlane.f32.xlu0 %v1459_v36  ;;  %v1070_v36 = vrot.slane %v1065_v42, %v3295_v55 }
 0x2c2   : > { %v1078_v20 = vrot.slane %v1065_v42, %v3521_v35 }
 0x2c3   : > { %v2238_v40 = vpop.permute.xlu1 %2237  ;;  %v1050_v58 = vpop.xlane.xlu0 %1049 }
 0x2c4   : > { %2932 = vmatmul.mubr.msk.bf16.vlgmr.msra.gmra.mrb[20].mxu1 %vm637_vm3, %v3367_v50  ;;  %v2240_v59 = vsel %vm637_vm3, %v2238_v40, 0.0  ;;  %v1747_v50 = vrot.slane %v3403_v24, %v3274_v44  ;;  %v1820_v24 = vsel %vm563_vm1, %v1808_v37, 0.0 }
 0x2c5   : > { %2241 = vadd.xlane.f32.xlu0 %v2240_v59  ;;  %2942 = vmatpush3.bf16.xpose.msra.mxu1 %v2372_v4  ;;  %v1074_v4 = vrot.slane %v1065_v42, %v3525_v39  ;;  %v1109_v59 = vadd.f32 %v1078_v20, %v1038_v38 }
 0x2c6   : > { %2943 = vmatprep.mubr.msk.bf16.mxu1 %vm3063_vm0, %v3062_v1  ;;  %2953 = vmatprep.subr.bf16.mxu1 %v3062_v1  ;;  %v1785_v51 = vrot.slane %v1747_v50, %v3295_v55  ;;  %v1763_v61 = vcombine.high %v1747_v50, %v1747_v50 }
 0x2c7   : > { %v1108_v22 = vadd.f32 %v1074_v4, %v1035_v34 }
 0x2c8   : > { %v1810_v57 = vmul.f32 %v3308_v63, %v1785_v51  ;;  %v1793_v2 = vrot.slane %v1763_v61, %v3295_v55  ;;  %v3546_v61 = vsub.s32 7, %v3238_v25 }
 0x2c9   : > { %1815 = vadd.xlane.f32.xlu0 %v1814_v46  ;;  %v3534_v46 = vsub.s32 3, %v3238_v25 }
 0x2ca   : > { %v1826_v62 = vsel %vm563_vm1, %v1810_v57, 0.0  ;;  %v1812_v11 = vmul.f32 %v3315_v8, %v1793_v2  ;;  %v2197_v8 = vmul.f32 %v3289_v53, %v2163_v17  ;;  %v2219_v53 = vsel %vm563_vm1, %v2201_v31, 0.0 }
 0x2cb   : > { %v1082_v37 = vrot.slane %v1065_v42, %v3534_v46 }
 0x2cc   : > { %2944 = vmatmul.mubr.msk.bf16.vlgmr.msra.gmra.mrb[24].mxu1 %vm637_vm3, %v3377_v60  ;;  %v1370_v60 = vrot.slane %v1342_v56, %v3274_v44  ;;  %v1832_v15 = vsel %vm563_vm1, %v1812_v11, 0.0  ;;  %v2207_v23 = vsel %vm563_vm1, %v2197_v8, 0.0  ;;  %v2203_v44 = vmul.f32 %v3369_v54, %v2187_v32 }
 0x2cd   : > { %1427 = vadd.xlane.f32.xlu0 %v1426_v48  ;;  %2957 = vmatprep.mubr.msk.bf16.mxu1 %vm3063_vm0, %v3062_v1  ;;  %v3538_v48 = vsub.s32 5, %v3238_v25  ;;  %v3541_v56 = vsub.s32 6, %v3238_v25 }
 0x2ce   : > { %v1398_v9 = vrot.slane %v1370_v60, %v3295_v55  ;;  %v1374_v63 = vcombine.high %v1370_v60, %v1370_v60  ;;  %v2225_v33 = vsel %vm563_vm1, %v2203_v44, 0.0 }
 0x2cf   : > { %v1094_v60 = vrot.slane %v1065_v42, %v3541_v56 }
 0x2d0   : > { %v1420_v6 = vmul.f32 %v3362_v45, %v1398_v9  ;;  %v1406_v12 = vrot.slane %v1374_v63, %v3295_v55  ;;  %v1098_v9 = vrot.slane %v1065_v42, %v3546_v61 }
 0x2d1   : > { %1821 = vadd.xlane.f32.xlu0 %v1820_v24  ;;  %v1090_v24 = vrot.slane %v1065_v42, %v3538_v48 }
 0x2d2   : > { %v1438_v10 = vsel %vm563_vm1, %v1420_v6, 0.0  ;;  %v1422_v16 = vmul.f32 %v3369_v54, %v1406_v12  ;;  %v3529_v54 = vsub.s32 4, %v3238_v25 }
 0x2d4   : > { %v1444_v18 = vsel %vm563_vm1, %v1422_v16, 0.0  ;;  %v1086_v43 = vrot.slane %v1065_v42, %v3529_v54 }
 0x2d5   : > { %1827 = vadd.xlane.f32.xlu0 %v1826_v62  ;;  %v1113_v62 = vadd.f32 %v1094_v60, %v1050_v58 }
 0x2d6   : > { %v1111_v50 = vadd.f32 %v1086_v43, %v1044_v41 }
 0x2d9   : > { %1433 = vadd.xlane.f32.xlu0 %v1432_v3 }
 0x2dd   : > { %1439 = vadd.xlane.f32.xlu0 %v1438_v10 }
 0x2e1   : > { %1833 = vadd.xlane.f32.xlu0 %v1832_v15 }
 0x2e5   : > { %1445 = vadd.xlane.f32.xlu0 %v1444_v18 }
 0x2e9   : > { %2208 = vadd.xlane.f32.xlu0 %v2207_v23 }
 0x2ed   : > { %2214 = vadd.xlane.f32.xlu0 %v2213_v29 }
 0x2f1   : > { %2220 = vadd.xlane.f32.xlu0 %v2219_v53 }
 0x2f5   : > { %2226 = vadd.xlane.f32.xlu0 %v2225_v33 }
 0x302   : > { %v1032_v45 = vpop.xlane.xlu1 %1031 }
 0x303   : > { %v1107_v40 = vadd.f32 %v1070_v36, %v1032_v45 }
 0x305   : > { %1124 = vperm.xlu1 %3000, %v1107_v40  }
 0x306   : > { %v1041_v47 = vpop.xlane.xlu1 %1040 }
 0x307   : > { %v1110_v51 = vadd.f32 %v1082_v37, %v1041_v47 }
 0x309   : > { %1130 = vperm.xlu1 %3000, %v1109_v59  }
 0x30a   : > { %v1047_v52 = vpop.xlane.xlu1 %1046 }
 0x30b   : > { %1127 = vperm.xlu0 %3001, %v1108_v22   ;;  %v1112_v57 = vadd.f32 %v1090_v24, %v1047_v52 }
 0x30d   : > { %1136 = vperm.xlu1 %3000, %v1111_v50  }
 0x30e   : > { %v1053_v0 = vpop.xlane.xlu1 %1052 }
 0x30f   : > { %v1114_v2 = vadd.f32 %v1098_v9, %v1053_v0 }
 0x311   : > { %1133 = vperm.xlu1 %3000, %v1110_v51  }
 0x312   : > { %v3551_v10 = vpop.xlane.xlu1 %1851 }
 0x313   : > { %v1857_v18 = vrot.slane %v3551_v10, %v3295_v55  ;;  %v1861_v32 = vrot.slane %v3551_v10, %v3525_v39  ;;  %v1865_v34 = vrot.slane %v3551_v10, %v3521_v35  ;;  %v1873_v45 = vrot.slane %v3551_v10, %v3529_v54 }
 0x314   : > { %v1869_v52 = vrot.slane %v3551_v10, %v3534_v46  ;;  %v1881_v24 = vrot.slane %v3551_v10, %v3541_v56  ;;  %v1877_v0 = vrot.slane %v3551_v10, %v3538_v48 }
 0x315   : > { %1139 = vperm.xlu1 %3000, %v1112_v57  }
 0x316   : > { %v1425_v11 = vpop.xlane.xlu1 %1424 }
 0x319   : > { %1142 = vperm.xlu1 %3000, %v1113_v62  }
 0x31a   : > { %v1431_v12 = vpop.xlane.xlu1 %1430 }
 0x31c   : > { %v3549_v3 = vpop.f32.mrb[12].mxu1 }
 0x31d   : > { %1145 = vperm.xlu1 %3000, %v1114_v2   ;;  %v2909_v6 = vpop.f32.mrb[13].mxu1 }
 0x31e   : > { %v1239_v63 = vpop.f32.mrb[14].mxu1  ;;  %v1437_v13 = vpop.xlane.xlu1 %1436 }
 0x31f   : > { %v2910_v7 = vpop.f32.mrb[15].mxu1 }
 0x322   : > { %v1819_v25 = vpop.xlane.xlu1 %1818 }
 0x323   : > { %v1895_v44 = vadd.f32 %v1861_v32, %v1819_v25 }
 0x326   : > { %v1443_v49 = vpop.xlane.xlu1 %1442 }
 0x32a   : > { %v1825_v5 = vpop.xlane.xlu1 %1824 }
 0x32b   : > { %v1897_v58 = vadd.f32 %v1869_v52, %v1825_v5 }
 0x32e   : > { %v1831_v42 = vpop.xlane.xlu1 %1830 }
 0x32f   : > { %v1899_v6 = vadd.f32 %v1877_v0, %v1831_v42 }
 0x332   : > { %v1837_v20 = vpop.xlane.xlu1 %1836 }
 0x336   : > { %v2206_v51 = vpop.xlane.xlu1 %2205 }
 0x33a   : > { %v2212_v9 = vpop.xlane.xlu1 %2211 }
 0x34e   : > { %v3553_v14 = vpop.xlane.xlu0 %1460 }
 0x34f   : > { %v1466_v15 = vrot.slane %v3553_v14, %v3295_v55  ;;  %v1474_v21 = vrot.slane %v3553_v14, %v3521_v35  ;;  %v1470_v23 = vrot.slane %v3553_v14, %v3525_v39  ;;  %v1482_v31 = vrot.slane %v3553_v14, %v3529_v54 }
 0x350   : > { %v1478_v40 = vrot.slane %v3553_v14, %v3534_v46  ;;  %v1490_v22 = vrot.slane %v3553_v14, %v3541_v56  ;;  %v1486_v43 = vrot.slane %v3553_v14, %v3538_v48 }
 0x351   : > { %v1503_v16 = vadd.f32 %v1466_v15, %v1425_v11  ;;  %v1505_v29 = vadd.f32 %v1474_v21, %v1431_v12  ;;  %v1507_v33 = vadd.f32 %v1482_v31, %v1437_v13  ;;  %v1494_v11 = vrot.slane %v3553_v14, %v3546_v61  ;;  %v2218_v15 = vpop.xlane.xlu1 %2217 }
 0x352   : > { %v3557_v17 = vpop.xlane.xlu0 %2241  ;;  %v1509_v37 = vadd.f32 %v1490_v22, %v1443_v49 }
 0x353   : > { %1525 = vperm.xlu1 %3000, %v1503_v16   ;;  %v2247_v62 = vrot.slane %v3557_v17, %v3295_v55  ;;  %v2255_v7 = vrot.slane %v3557_v17, %v3521_v35  ;;  %v2263_v25 = vrot.slane %v3557_v17, %v3529_v54  ;;  %v1885_v16 = vrot.slane %v3551_v10, %v3546_v61 }
 0x354   : > { %v2271_v35 = vrot.slane %v3557_v17, %v3541_v56  ;;  %v2267_v56 = vrot.slane %v3557_v17, %v3538_v48  ;;  %v2275_v31 = vrot.slane %v3557_v17, %v3546_v61 }
 0x355   : > { %v2284_v63 = vadd.f32 %v2247_v62, %v2206_v51  ;;  %v2286_v55 = vadd.f32 %v2255_v7, %v2212_v9  ;;  %v1901_v49 = vadd.f32 %v1885_v16, %v1837_v20 }
 0x356   : > { %v1816_v8 = vpop.xlane.xlu0 %1815 }
 0x357   : > { %v1894_v19 = vadd.f32 %v1857_v18, %v1816_v8  ;;  %v2288_v18 = vadd.f32 %v2263_v25, %v2218_v15  ;;  %v2251_v8 = vrot.slane %v3557_v17, %v3525_v39 }
 0x359   : > { %1915 = vperm.xlu0 %3001, %v1894_v19   ;;  %v2224_v19 = vpop.xlane.xlu1 %2223 }
 0x35a   : > { %v1428_v26 = vpop.xlane.xlu0 %1427  ;;  %v2290_v54 = vadd.f32 %v2271_v35, %v2224_v19 }
 0x35b   : > { %v1504_v28 = vadd.f32 %v1470_v23, %v1428_v26  ;;  %v2259_v23 = vrot.slane %v3557_v17, %v3534_v46 }
 0x35d   : > { %1528 = vperm.xlu1 %3000, %v1504_v28   ;;  %1531 = vperm.xlu0 %3001, %v1505_v29  }
 0x35e   : > { %v1822_v53 = vpop.xlane.xlu0 %1821 }
 0x35f   : > { %v1896_v38 = vadd.f32 %v1865_v34, %v1822_v53 }
 0x361   : > { %1537 = vperm.xlu0 %3001, %v1507_v33   ;;  %1918 = vperm.xlu1 %3000, %v1895_v44  }
 0x362   : > { %v1828_v36 = vpop.xlane.xlu0 %1827 }
 0x363   : > { %v1898_v59 = vadd.f32 %v1873_v45, %v1828_v36 }
 0x365   : > { %1921 = vperm.xlu0 %3001, %v1896_v38  }
 0x366   : > { %v1434_v4 = vpop.xlane.xlu0 %1433 }
 0x367   : > { %v1506_v41 = vadd.f32 %v1478_v40, %v1434_v4  ;;  %v3069_v40 = vmov -inf  }
 0x368   : > { %555 = vst.msk [vmem:[#allocation2] sm:$0xff] %vm554_vm5, %v3069_v40  ;;  %556 = vst.msk [vmem:[#allocation2 + $0x8] sm:$0xff] %vm554_vm5, %v3069_v40 }
 0x369   : > { %1927 = vperm.xlu0 %3001, %v1898_v59   ;;  %1534 = vperm.xlu1 %3000, %v1506_v41   ;;  %557 = vst.msk [vmem:[#allocation2 + $0x10] sm:$0xff] %vm554_vm5, %v3069_v40  ;;  %558 = vst.msk [vmem:[#allocation2 + $0x18] sm:$0xff] %vm554_vm5, %v3069_v40 }
 0x36a   : > { %v1440_v47 = vpop.xlane.xlu0 %1439 }
 0x36b   : > { %v1508_v50 = vadd.f32 %v1486_v43, %v1440_v47 }
 0x36d   : > { %1540 = vperm.xlu1 %3000, %v1508_v50   ;;  %1543 = vperm.xlu0 %3001, %v1509_v37  }
 0x36e   : > { %v1834_v57 = vpop.xlane.xlu0 %1833 }
 0x36f   : > { %v1900_v60 = vadd.f32 %v1881_v24, %v1834_v57 }
 0x371   : > { %1933 = vperm.xlu0 %3001, %v1900_v60   ;;  %1924 = vperm.xlu1 %3000, %v1897_v58  }
 0x372   : > { %v1446_v2 = vpop.xlane.xlu0 %1445 }
 0x373   : > { %v1510_v13 = vadd.f32 %v1494_v11, %v1446_v2 }
 0x375   : > { %1930 = vperm.xlu1 %3000, %v1899_v6   ;;  %2305 = vperm.xlu0 %3001, %v2284_v63  }
 0x376   : > { %v2209_v12 = vpop.xlane.xlu0 %2208 }
 0x377   : > { %v2285_v21 = vadd.f32 %v2251_v8, %v2209_v12 }
 0x379   : > { %1546 = vperm.xlu1 %3000, %v1510_v13   ;;  %2311 = vperm.xlu0 %3001, %v2286_v55  }
 0x37a   : > { %v2215_v14 = vpop.xlane.xlu0 %2214 }
 0x37b   : > { %v2287_v5 = vadd.f32 %v2259_v23, %v2215_v14 }
 0x37d   : > { %1936 = vperm.xlu1 %3000, %v1901_v49   ;;  %2317 = vperm.xlu0 %3001, %v2288_v18  }
 0x37e   : > { %v2221_v10 = vpop.xlane.xlu0 %2220 }
 0x37f   : > { %v2289_v28 = vadd.f32 %v2267_v56, %v2221_v10 }
 0x381   : > { %2308 = vperm.xlu1 %3000, %v2285_v21   ;;  %2323 = vperm.xlu0 %3001, %v2290_v54  }
 0x382   : > { %v2227_v29 = vpop.xlane.xlu0 %2226 }
 0x383   : > { %v2291_v32 = vadd.f32 %v2275_v31, %v2227_v29 }
 0x384   : > { %v1125_v26 = vpop.permute.xlu1 %1124 }
 0x385   : > { %2314 = vperm.xlu1 %3000, %v2287_v5   ;;  %v1152_v38 = vrot.slane %v1125_v26, %v3241_v27 }
 0x388   : > { %v1131_v39 = vpop.permute.xlu1 %1130 }
 0x389   : > { %2320 = vperm.xlu1 %3000, %v2289_v28   ;;  %v1160_v20 = vrot.slane %v1131_v39, %v3241_v27 }
 0x38a   : > { %v1128_v46 = vpop.permute.xlu0 %1127 }
 0x38b   : > { %v1156_v34 = vrot.slane %v1128_v46, %v3241_v27 }
 0x38c   : > { %v1137_v53 = vpop.permute.xlu1 %1136 }
 0x38d   : > { %2326 = vperm.xlu1 %3000, %v2291_v32   ;;  %v1182_v61 = vsel %vm1181_vm4, %v1156_v34, %v1152_v38  ;;  %v1168_v37 = vrot.slane %v1137_v53, %v3241_v27 }
 0x38e   : > { %v1184_v59 = vsel %vm1183_vm6, %v1160_v20, %v1182_v61 }
 0x38f   : > { %v3605_v44 = vpop.f32.mrb[16].mxu1 }
 0x390   : > { %v1134_v33 = vpop.permute.xlu1 %1133  ;;  %v2921_v42 = vpop.f32.mrb[17].mxu1 }
 0x391   : > { %v1631_v36 = vpop.f32.mrb[18].mxu1  ;;  %v1164_v17 = vrot.slane %v1134_v33, %v3241_v27 }
 0x392   : > { %v2922_v48 = vpop.f32.mrb[19].mxu1 }
 0x393   : > { %v1186_v43 = vsel %vm1185_vm7, %v1164_v17, %v1184_v59 }
 0x394   : > { %v1140_v45 = vpop.permute.xlu1 %1139  ;;  %v1188_v24 = vsel %vm1187_vm8, %v1168_v37, %v1186_v43 }
 0x395   : > { %v1172_v47 = vrot.slane %v1140_v45, %v3241_v27 }
 0x397   : > { %v3624_v4 = vpop.f32.mrb[20].mxu1  ;;  %v1190_v58 = vsel %vm1189_vm9, %v1172_v47, %v1188_v24 }
 0x398   : > { %v1143_v41 = vpop.permute.xlu1 %1142  ;;  %v2933_v22 = vpop.f32.mrb[21].mxu1 }
 0x399   : > { %v2021_v50 = vpop.f32.mrb[22].mxu1  ;;  %v1176_v51 = vrot.slane %v1143_v41, %v3241_v27 }
 0x39a   : > { %v2934_v52 = vpop.f32.mrb[23].mxu1 }
 0x39b   : > { %v1192_v62 = vsel %vm1191_vm10, %v1176_v51, %v1190_v58 }
 0x39c   : > { %v1146_v57 = vpop.permute.xlu1 %1145 }
 0x39d   : > { %v1180_v60 = vrot.slane %v1146_v57, %v3241_v27 }
 0x39f   : > { %v3635_v0 = vpop.f32.mrb[24].mxu1  ;;  %v1194_v9 = vsel %vm1193_vm11, %v1180_v60, %v1192_v62 }
 0x3a0   : > { %v2945_v2 = vpop.f32.mrb[25].mxu1  ;;  %v3639_v6 = vadd.f32 %v3549_v3, %v1194_v9 }
 0x3a1   : > { %v2411_v63 = vpop.f32.mrb[26].mxu1 }
 0x3a2   : > { %v2946_v7 = vpop.f32.mrb[27].mxu1  ;;  %v1243_v11 = vsel %vm637_vm3, %v3639_v6, -inf }
 0x3a3   : > { %1244 = vmax.xlane.f32.xlu0 %v1243_v11 }
 0x3d2   : > { %v1526_v13 = vpop.permute.xlu1 %1525 }
 0x3d3   : > { %v1551_v19 = vrot.slane %v1526_v13, %v3241_v27 }
 0x3d8   : > { %v1916_v12 = vpop.permute.xlu0 %1915 }
 0x3d9   : > { %v1941_v29 = vrot.slane %v1916_v12, %v3241_v27 }
 0x3dc   : > { %v1532_v55 = vpop.permute.xlu0 %1531  ;;  %v1529_v25 = vpop.permute.xlu1 %1528 }
 0x3dd   : > { %v1555_v14 = vrot.slane %v1529_v25, %v3241_v27  ;;  %v1559_v21 = vrot.slane %v1532_v55, %v3241_v27 }
 0x3df   : > { %v1580_v54 = vsel %vm1181_vm4, %v1555_v14, %v1551_v19 }
 0x3e0   : > { %v1538_v15 = vpop.permute.xlu0 %1537  ;;  %v1919_v16 = vpop.permute.xlu1 %1918  ;;  %v1581_v28 = vsel %vm1183_vm6, %v1559_v21, %v1580_v54 }
 0x3e1   : > { %v1945_v5 = vrot.slane %v1919_v16, %v3241_v27  ;;  %v1567_v53 = vrot.slane %v1538_v15, %v3241_v27 }
 0x3e3   : > { %v1970_v33 = vsel %vm1181_vm4, %v1945_v5, %v1941_v29 }
 0x3e4   : > { %v1922_v49 = vpop.permute.xlu0 %1921 }
 0x3e5   : > { %v1949_v56 = vrot.slane %v1922_v49, %v3241_v27 }
 0x3e7   : > { %v1971_v42 = vsel %vm1183_vm6, %v1949_v56, %v1970_v33 }
 0x3e8   : > { %v1928_v18 = vpop.permute.xlu0 %1927  ;;  %v1535_v35 = vpop.permute.xlu1 %1534 }
 0x3e9   : > { %v1563_v23 = vrot.slane %v1535_v35, %v3241_v27  ;;  %v1957_v61 = vrot.slane %v1928_v18, %v3241_v27 }
 0x3eb   : > { %v1582_v39 = vsel %vm1185_vm7, %v1563_v23, %v1581_v28  ;;  %v3704_v28 = vld [vmem:[#allocation2 + $0x8] sm:$0xff] }
 0x3ec   : > { %v1544_v8 = vpop.permute.xlu0 %1543  ;;  %v1541_v3 = vpop.permute.xlu1 %1540  ;;  %v1583_v36 = vsel %vm1187_vm8, %v1567_v53, %v1582_v39  ;;  %v2025_v39 = vld [vmem:[#allocation2 + $0x10] sm:$0xff] }
 0x3ed   : > { %v1571_v31 = vrot.slane %v1541_v3, %v3241_v27  ;;  %v1575_v34 = vrot.slane %v1544_v8, %v3241_v27 }
 0x3ef   : > { %v1584_v48 = vsel %vm1189_vm9, %v1571_v31, %v1583_v36 }
 0x3f0   : > { %v1925_v10 = vpop.permute.xlu1 %1924  ;;  %v1934_v26 = vpop.permute.xlu0 %1933  ;;  %v1585_v41 = vsel %vm1191_vm10, %v1575_v34, %v1584_v48 }
 0x3f1   : > { %v1953_v32 = vrot.slane %v1925_v10, %v3241_v27  ;;  %v1965_v47 = vrot.slane %v1934_v26, %v3241_v27  ;;  %v1242_v10 = vld [vmem:[#allocation2] sm:$0xff] }
 0x3f3   : > { %v1972_v38 = vsel %vm1185_vm7, %v1953_v32, %v1971_v42 }
 0x3f4   : > { %v1931_v46 = vpop.permute.xlu1 %1930  ;;  %v2306_v45 = vpop.permute.xlu0 %2305  ;;  %v1973_v59 = vsel %vm1187_vm8, %v1957_v61, %v1972_v38 }
 0x3f5   : > { %v1961_v40 = vrot.slane %v1931_v46, %v3241_v27  ;;  %v2331_v9 = vrot.slane %v2306_v45, %v3241_v27  ;;  %v2415_v46 = vld [vmem:[#allocation2 + $0x18] sm:$0xff] }
 0x3f7   : > { %v1974_v22 = vsel %vm1189_vm9, %v1961_v40, %v1973_v59 }
 0x3f8   : > { %v1547_v17 = vpop.permute.xlu1 %1546  ;;  %v2312_v51 = vpop.permute.xlu0 %2311  ;;  %v1975_v57 = vsel %vm1191_vm10, %v1965_v47, %v1974_v22 }
 0x3f9   : > { %v1579_v20 = vrot.slane %v1547_v17, %v3241_v27  ;;  %v2339_v11 = vrot.slane %v2312_v51, %v3241_v27 }
 0x3fb   : > { %v1586_v43 = vsel %vm1193_vm11, %v1579_v20, %v1585_v41 }
 0x3fc   : > { %v1937_v50 = vpop.permute.xlu1 %1936  ;;  %v3671_v37 = vadd.f32 %v3605_v44, %v1586_v43  ;;  %v2318_v63 = vpop.permute.xlu0 %2317 }
 0x3fd   : > { %v1969_v52 = vrot.slane %v1937_v50, %v3241_v27  ;;  %v2347_v25 = vrot.slane %v2318_v63, %v3241_v27 }
 0x3fe   : > { %v1636_v24 = vsel %vm637_vm3, %v3671_v37, -inf }
 0x3ff   : > { %1637 = vmax.xlane.f32.xlu1 %v1636_v24  ;;  %v1976_v58 = vsel %vm1193_vm11, %v1969_v52, %v1975_v57 }
 0x400   : > { %v2309_v60 = vpop.permute.xlu1 %2308  ;;  %v3679_v62 = vadd.f32 %v3624_v4, %v1976_v58  ;;  %v2324_v16 = vpop.permute.xlu0 %2323 }
 0x401   : > { %v2335_v44 = vrot.slane %v2309_v60, %v3241_v27  ;;  %v2355_v14 = vrot.slane %v2324_v16, %v3241_v27 }
 0x402   : > { %v2026_v2 = vsel %vm637_vm3, %v3679_v62, -inf }
 0x403   : > { %v2360_v7 = vsel %vm1181_vm4, %v2335_v44, %v2331_v9  ;;  %2027 = vmax.xlane.f32.xlu0 %v2026_v2 }
 0x404   : > { %v2315_v12 = vpop.permute.xlu1 %2314  ;;  %v2361_v55 = vsel %vm1183_vm6, %v2339_v11, %v2360_v7 }
 0x405   : > { %v2343_v13 = vrot.slane %v2315_v12, %v3241_v27 }
 0x407   : > { %v2362_v4 = vsel %vm1185_vm7, %v2343_v13, %v2361_v55 }
 0x408   : > { %v2321_v15 = vpop.permute.xlu1 %2320  ;;  %v2363_v18 = vsel %vm1187_vm8, %v2347_v25, %v2362_v4 }
 0x409   : > { %v2351_v49 = vrot.slane %v2321_v15, %v3241_v27 }
 0x40b   : > { %v2364_v35 = vsel %vm1189_vm9, %v2351_v49, %v2363_v18 }
 0x40c   : > { %v2327_v8 = vpop.permute.xlu1 %2326  ;;  %v2365_v19 = vsel %vm1191_vm10, %v2355_v14, %v2364_v35  ;;  %v1258_v14 = vld [vmem:[#allocation3] sm:$0xff] }
 0x40d   : > { %v2359_v3 = vrot.slane %v2327_v8, %v3241_v27 }
 0x40f   : > { %v2366_v21 = vsel %vm1193_vm11, %v2359_v3, %v2365_v19 }
 0x410   : > { %v3699_v54 = vadd.f32 %v3635_v0, %v2366_v21 }
 0x412   : > { %v2416_v23 = vsel %vm637_vm3, %v3699_v54, -inf }
 0x413   : > { %2417 = vmax.xlane.f32.xlu0 %v2416_v23  ;;  %v1652_v23 = vld [vmem:[#allocation3 + $0x8] sm:$0xff] }
 0x430   : > { %v1245_v5 = vpop.xlane.xlu0 %1244 }
 0x431   : > { %v1246_v26 = vmax.f32 %v1242_v10, %v1245_v5 }
 0x433   : > { %v1247_v56 = vsub.f32 %v1242_v10, %v1246_v26  ;;  %1266 = vst.msk [vmem:[#allocation2] sm:$0xff] %vm554_vm5, %v1246_v26  ;;  %1252 = vperm.xlu1 %3000, %v1246_v26   ;;  %v2042_v26 = vld [vmem:[#allocation3 + $0x10] sm:$0xff] }
 0x435   : > { %v1248_v24 = vmul.f32 1.442695, %v1247_v56 }
 0x48c   : > { %v1638_v27 = vpop.xlane.xlu1 %1637 }
 0x48d   : > { %v3707_v29 = vmax.f32 %v3704_v28, %v1638_v27 }
 0x48f   : > { %v1640_v0 = vsub.f32 %v3704_v28, %v3707_v29  ;;  %1659 = vst.msk [vmem:[#allocation2 + $0x8] sm:$0xff] %vm554_vm5, %v3707_v29  ;;  %1645 = vperm.xlu0 %3001, %v3707_v29  }
 0x490   : > { %v2028_v31 = vpop.xlane.xlu0 %2027 }
 0x491   : > { %v2029_v32 = vmax.f32 %v2025_v39, %v2028_v31  ;;  %v1641_v18 = vmul.f32 1.442695, %v1640_v0  ;;  %v2432_v0 = vld [vmem:[#allocation3 + $0x18] sm:$0xff] }
 0x493   : > { %v2030_v53 = vsub.f32 %v2025_v39, %v2029_v32  ;;  %2049 = vst.msk [vmem:[#allocation2 + $0x10] sm:$0xff] %vm554_vm5, %v2029_v32  ;;  %2035 = vperm.xlu1 %3000, %v2029_v32  }
 0x495   : > { %v2031_v9 = vmul.f32 1.442695, %v2030_v53 }
 0x497   : > { %1274 = vrot.lane.b32.xlu1 %v3326_v30, %s3070_s17 }
 0x49b   : > { %1666 = vrot.lane.b32.xlu1 %v3326_v30, %s3071_s18 }
 0x49f   : > { %2446 = vrot.lane.b32.xlu1 %v3326_v30, %s3072_s14 }
 0x4a0   : > { %v2418_v33 = vpop.xlane.xlu0 %2417 }
 0x4a1   : > { %v2419_v42 = vmax.f32 %v2415_v46, %v2418_v33 }
 0x4a3   : > { %v2420_v34 = vsub.f32 %v2415_v46, %v2419_v42  ;;  %2439 = vst.msk [vmem:[#allocation2 + $0x18] sm:$0xff] %vm554_vm5, %v2419_v42  ;;  %2425 = vperm.xlu0 %3001, %v2419_v42  }
 0x4a5   : > { %v2421_v11 = vmul.f32 1.442695, %v2420_v34 }
 0x4a7   : > { %2056 = vrot.lane.b32.xlu0 %v3326_v30, %s3073_s20 }
 0x4b2   : > { %v1253_v36 = vpop.permute.xlu1 %1252 }
 0x4b3   : > { %v1255_v48 = vsub.f32 %v3639_v6, %v1253_v36 }
 0x4b5   : > { %v1256_v38 = vmul.f32 1.442695, %v1255_v48 }
 0x4b7   : > { %3012 = vpow2.f32 %v1256_v38 }
 0x4c1   : > { %v3013_v45 = vpop.eup %3012 }
 0x4c2   : > { %v1260_v40 = vsel %vm637_vm3, %v3013_v45, 0.0  ;;  %v1272_v6 = vpack.c.bf16 %v3013_v45, %v3013_v45 }
 0x4c6   : > { %1261 = vadd.xlane.f32.xlu0 %v1260_v40 }
 0x50e   : > { %v1646_v61 = vpop.permute.xlu0 %1645 }
 0x50f   : > { %v1648_v17 = vsub.f32 %v3671_v37, %v1646_v61 }
 0x511   : > { %v1649_v20 = vmul.f32 1.442695, %v1648_v17 }
 0x512   : > { %v2036_v59 = vpop.permute.xlu1 %2035 }
 0x513   : > { %3014 = vpow2.f32 %v1649_v20  ;;  %v2038_v41 = vsub.f32 %v3679_v62, %v2036_v59 }
 0x515   : > { %v2039_v22 = vmul.f32 1.442695, %v2038_v41 }
 0x516   : > { %v1275_v43 = vpop.permute.xlu1 %1274 }
 0x517   : > { %3016 = vpow2.f32 %v2039_v22  ;;  %v1281_v30 = vsel %vm641_vm2, %v1275_v43, 0 }
 0x518   : > { %2912 = vmatpush3.bf16.msra.mxu0 %v1281_v30  ;;  %3018 = vpow2.f32 %v1248_v24  ;;  %v3010_v30 = vld [vmem:[%s3805_s9] sm:$0xff]  }
 0x519   : > { %2923 = vmatprep.subr.bf16.mxu0 %v3062_v1  ;;  %2954 = vmatpush3.bf16.msra.mxu1 %v3010_v30 }
 0x51a   : > { %v1667_v47 = vpop.permute.xlu1 %1666  ;;  %2955 = vmatprep.subr.bf16.mxu1 %v3062_v1 }
 0x51b   : > { %v1672_v50 = vsel %vm641_vm2, %v1667_v47, 0  ;;  %2914 = vmatmul.mubr.msk.bf16.vlgmr.msra.gmra.mrb[12].mxu0 %vm637_vm3, %v1272_v6 }
 0x51c   : > { %2924 = vmatpush3.bf16.msra.mxu0 %v1672_v50  ;;  %2925 = vmatprep.mubr.msk.bf16.mxu0 %vm3063_vm0, %v3062_v1 }
 0x51d   : > { %v3015_v37 = vpop.eup %3014  ;;  %2935 = vmatprep.subr.bf16.mxu0 %v3062_v1 }
 0x51e   : > { %v1654_v51 = vsel %vm637_vm3, %v3015_v37, 0.0  ;;  %v1665_v57 = vpack.c.bf16 %v3015_v37, %v3015_v37  ;;  %v2447_v7 = vpop.permute.xlu1 %2446 }
 0x51f   : > { %1655 = vadd.xlane.f32.xlu1 %v1654_v51  ;;  %v2452_v13 = vsel %vm641_vm2, %v2447_v7, 0 }
 0x521   : > { %v3017_v52 = vpop.eup %3016 }
 0x522   : > { %v2426_v58 = vpop.permute.xlu0 %2425  ;;  %v2044_v60 = vsel %vm637_vm3, %v3017_v52, 0.0  ;;  %v2055_v12 = vpack.c.bf16 %v3017_v52, %v3017_v52  ;;  %v3019_v55 = vpop.eup %3018  ;;  %v3011_v52 = vld [vmem:[%s3805_s9 + $0x8] sm:$0xff]  }
 0x523   : > { %v2428_v62 = vsub.f32 %v3699_v54, %v2426_v58  ;;  %2045 = vadd.xlane.f32.xlu0 %v2044_v60  ;;  %2926 = vmatmul.mubr.msk.bf16.vlgmr.msra.gmra.mrb[16].mxu0 %vm637_vm3, %v1665_v57  ;;  %v1259_v8 = vmul.f32 %v3019_v55, %v1258_v14 }
 0x524   : > { %2937 = vmatprep.mubr.msk.bf16.mxu0 %vm3063_vm0, %v3062_v1  ;;  %2956 = vmatpush3.bf16.msra.mxu1 %v3011_v52 }
 0x525   : > { %v2429_v44 = vmul.f32 1.442695, %v2428_v62 }
 0x526   : > { %v2057_v2 = vpop.permute.xlu0 %2056 }
 0x527   : > { %3020 = vpow2.f32 %v2429_v44  ;;  %v2062_v63 = vsel %vm641_vm2, %v2057_v2, 0 }
 0x528   : > { %2936 = vmatpush3.bf16.msra.mxu0 %v2062_v63  ;;  %3022 = vpow2.f32 %v2031_v9 }
 0x529   : > { %2947 = vmatprep.subr.bf16.mxu0 %v3062_v1  ;;  %3024 = vpow2.f32 %v2421_v11  ;;  %v2499_v11 = vld [vmem:[#allocation4] sm:$0xff] }
 0x52a   : > { %3026 = vpow2.f32 %v1641_v18 }
 0x52b   : > { %2938 = vmatmul.mubr.msk.bf16.vlgmr.msra.gmra.mrb[20].mxu0 %vm637_vm3, %v2055_v12 }
 0x52c   : > { %2948 = vmatpush3.bf16.msra.mxu0 %v2452_v13  ;;  %2949 = vmatprep.mubr.msk.bf16.mxu0 %vm3063_vm0, %v3062_v1 }
 0x530   : > { %1269 = vperm.xlu1 %3000, %v3019_v55  }
 0x531   : > { %v3021_v4 = vpop.eup %3020 }
 0x532   : > { %v2434_v25 = vsel %vm637_vm3, %v3021_v4, 0.0  ;;  %v2445_v15 = vpack.c.bf16 %v3021_v4, %v3021_v4  ;;  %v3023_v16 = vpop.eup %3022 }
 0x533   : > { %2435 = vadd.xlane.f32.xlu0 %v2434_v25  ;;  %v3025_v49 = vpop.eup %3024  ;;  %v2043_v28 = vmul.f32 %v3023_v16, %v2042_v26 }
 0x534   : > { %2052 = vperm.xlu1 %3000, %v3023_v16   ;;  %2950 = vmatmul.mubr.msk.bf16.vlgmr.msra.gmra.mrb[24].mxu0 %vm637_vm3, %v2445_v15  ;;  %v3027_v35 = vpop.eup %3026  ;;  %v2433_v31 = vmul.f32 %v3025_v49, %v2432_v0 }
 0x535   : > { %v1653_v10 = vmul.f32 %v3027_v35, %v1652_v23  ;;  %v2621_v23 = vld [vmem:[%s3189_s19] sm:$0xff] }
 0x538   : > { %2442 = vperm.xlu1 %3000, %v3025_v49  }
 0x549   : > { %1662 = vperm.xlu0 %3001, %v3027_v35  }
 0x553   : > { %v1262_v3 = vpop.xlane.xlu0 %1261 }
 0x554   : > { %v1263_v19 = vadd.f32 %v1262_v3, %v1259_v8 }
 0x556   : > { %1265 = vst.msk [vmem:[#allocation3] sm:$0xff] %vm554_vm5, %v1263_v19 }
 0x55d   : > { %v2521_v21 = vld [vmem:[#allocation3] sm:$0xff] }
 0x55e   : > { %3028 = vrcp.f32 %v2521_v21  ;;  %v2804_v21 = vld [vmem:[%s3806_s10] ss:$0 sm:$0xff] }
 0x568   : > { %v3029_v54 = vpop.eup %3028 }
 0x569   : > { %2525 = vperm.xlu1 %3000, %v3029_v54  }
 0x5ac   : > { %v1656_v5 = vpop.xlane.xlu1 %1655 }
 0x5ad   : > { %v1657_v56 = vadd.f32 %v1656_v5, %v1653_v10 }
 0x5af   : > { %1658 = vst.msk [vmem:[#allocation3 + $0x8] sm:$0xff] %vm554_vm5, %v1657_v56 }
 0x5b0   : > { %v2046_v27 = vpop.xlane.xlu0 %2045  ;;  %v1270_v24 = vpop.permute.xlu1 %1269 }
 0x5b1   : > { %v2047_v29 = vadd.f32 %v2046_v27, %v2043_v28 }
 0x5b3   : > { %2048 = vst.msk [vmem:[#allocation3 + $0x10] sm:$0xff] %vm554_vm5, %v2047_v29 }
 0x5b4   : > { %v2053_v57 = vpop.permute.xlu1 %2052 }
 0x5b6   : > { %v2528_v39 = vld [vmem:[#allocation3 + $0x8] sm:$0xff] }
 0x5b7   : > { %3030 = vrcp.f32 %v2528_v39 }
 0x5b8   : > { %v2443_v60 = vpop.permute.xlu1 %2442 }
 0x5ba   : > { %v2535_v48 = vld [vmem:[#allocation3 + $0x10] sm:$0xff] }
 0x5bb   : > { %3032 = vrcp.f32 %v2535_v48  ;;  %v2809_v48 = vld [vmem:[%s3808_s12] ss:$0 sm:$0xff] }
 0x5c0   : > { %v2436_v32 = vpop.xlane.xlu0 %2435 }
 0x5c1   : > { %v3031_v53 = vpop.eup %3030  ;;  %v2437_v46 = vadd.f32 %v2436_v32, %v2433_v31 }
 0x5c2   : > { %2532 = vperm.xlu0 %3001, %v3031_v53  }
 0x5c3   : > { %2438 = vst.msk [vmem:[#allocation3 + $0x18] sm:$0xff] %vm554_vm5, %v2437_v46 }
 0x5c5   : > { %v3033_v43 = vpop.eup %3032 }
 0x5c8   : > { %v1663_v58 = vpop.permute.xlu0 %1662 }
 0x5c9   : > { %v2494_v1 = vsel %vm637_vm3, %v1270_v24, %v1663_v58 }
 0x5ca   : > { %v2542_v17 = vld [vmem:[#allocation3 + $0x18] sm:$0xff]  ;;  %v2496_v44 = vsel %vm2495_vm12, %v2494_v1, %v2053_v57 }
 0x5cb   : > { %3034 = vrcp.f32 %v2542_v17  ;;  %v2498_v7 = vsel %vm2497_vm13, %v2496_v44, %v2443_v60 }
 0x5cc   : > { %v2500_v55 = vmul.f32 %v2499_v11, %v2498_v7 }
 0x5d5   : > { %v3035_v51 = vpop.eup %3034 }
 0x5e8   : > { %v2526_v9 = vpop.permute.xlu1 %2525 }
 0x5ee   : > { %v1317_v33 = vpop.f32.mrb[12].mxu0 }
 0x5ef   : > { %v2915_v42 = vpop.f32.mrb[13].mxu0 }
 0x5f0   : > { %v1320_v34 = vpop.f32.mrb[14].mxu0 }
 0x5f1   : > { %v2916_v36 = vpop.f32.mrb[15].mxu0  ;;  %v2808_v34 = vld [vmem:[%s3807_s11] ss:$0 sm:$0xff] }
 0x5f6   : > { %v1708_v38 = vpop.f32.mrb[16].mxu0 }
 0x5f7   : > { %2502 = vrot.lane.b32.xlu0 %v1708_v38, %s3074_s21  ;;  %v2927_v45 = vpop.f32.mrb[17].mxu0 }
 0x5f8   : > { %v1711_v40 = vpop.f32.mrb[18].mxu0 }
 0x5f9   : > { %v2928_v61 = vpop.f32.mrb[19].mxu0 }
 0x5fe   : > { %v2098_v20 = vpop.f32.mrb[20].mxu0 }
 0x5ff   : > { %2506 = vrot.lane.b32.xlu1 %v2098_v20, %s3075_s15  ;;  %v2939_v59 = vpop.f32.mrb[21].mxu0 }
 0x600   : > { %v2101_v41 = vpop.f32.mrb[22].mxu0 }
 0x601   : > { %v2940_v22 = vpop.f32.mrb[23].mxu0 }
 0x603   : > { %2539 = vperm.xlu1 %3000, %v3033_v43  }
 0x607   : > { %v2488_v6 = vpop.f32.mrb[24].mxu0 }
 0x608   : > { %2510 = vrot.lane.b32.xlu0 %v2488_v6, %s3076_s24  ;;  %v2951_v47 = vpop.f32.mrb[25].mxu0 }
 0x609   : > { %v2491_v50 = vpop.f32.mrb[26].mxu0 }
 0x60a   : > { %v2952_v37 = vpop.f32.mrb[27].mxu0 }
 0x60c   : > { %2546 = vperm.xlu0 %3001, %v3035_v51  }
 0x641   : > { %v2533_v62 = vpop.permute.xlu0 %2532 }
 0x642   : > { %v2550_v49 = vsel %vm637_vm3, %v2526_v9, %v2533_v62 }
 0x669   : > { %v2503_v2 = vpop.permute.xlu0 %2502 }
 0x66a   : > { %v2513_v12 = vsel %vm637_vm3, %v1317_v33, %v2503_v2 }
 0x671   : > { %v2507_v63 = vpop.permute.xlu1 %2506 }
 0x672   : > { %v2514_v13 = vsel %vm2495_vm12, %v2513_v12, %v2507_v63 }
 0x67a   : > { %v2511_v4 = vpop.permute.xlu0 %2510 }
 0x67b   : > { %v2515_v25 = vsel %vm2497_vm13, %v2514_v13, %v2511_v4 }
 0x67c   : > { %v2516_v15 = vadd.f32 %v2515_v25, %v2500_v55 }
 0x67e   : > { %2517 = vst.msk [vmem:[#allocation4] sm:$0xff] %vm563_vm1, %v2516_v15 }
 0x682   : > { %v2540_v16 = vpop.permute.xlu1 %2539 }
 0x683   : > { %v2551_v18 = vsel %vm2495_vm12, %v2550_v49, %v2540_v16 }
 0x685   : > { %v2549_v14 = vld [vmem:[#allocation4] sm:$0xff] }
 0x68b   : > { %v2547_v35 = vpop.permute.xlu0 %2546 }
 0x68c   : > { %v2552_v8 = vsel %vm2497_vm13, %v2551_v18, %v2547_v35 }
 0x68d   : > { %v2553_v3 = vmul.f32 %v2552_v8, %v2549_v14 }
 0x68f   : > { %v2554_v19 = vpack.c.bf16 %v2553_v3, %v2553_v3 }
 0x691   : > { %2958 = vmatmul.mubr.msk.bf16.vlgmr.msra.gmra.mrb[28].mxu1 %vm563_vm1, %v2554_v19 }
 0x764   : > { %v2615_v54 = vpop.f32.mrb[28].mxu1 }
 0x765   : > { %v2616_v10 = vadd.f32 %v2804_v21, %v2615_v54  ;;  %v2959_v5 = vpop.f32.mrb[29].mxu1 }
 0x766   : > { %v2618_v26 = vpop.f32.mrb[30].mxu1 }
 0x767   : > { %v2622_v56 = vadd.f32 %v2621_v23, %v2616_v10  ;;  %v2960_v28 = vpop.f32.mrb[31].mxu1 }
 0x769   : > { %v2623_v27 = vsel %vm563_vm1, %v2622_v56, 0.0 }
 0x76a   : > { %2624 = vadd.xlane.f32.xlu1 %v2623_v27 }
 0x7f7   : > { %v2625_v29 = vpop.xlane.xlu1 %2624 }
 0x7f8   : > { %v2627_v39 = vmul.f32 0.03125, %v2625_v29 }
 0x7fa   : > { %v2628_v0 = vsub.f32 %v2622_v56, %v2627_v39 }
 0x7fc   : > { %v2629_v31 = vmul.f32 %v2628_v0, %v2628_v0 }
 0x7fe   : > { %v2630_v32 = vsel %vm563_vm1, %v2629_v31, 0.0 }
 0x7ff   : > { %2631 = vadd.xlane.f32.xlu0 %v2630_v32 }
 0x88c   : > { %v2632_v53 = vpop.xlane.xlu0 %2631 }
 0x88d   : > { %v2633_v46 = vmul.f32 0.03125, %v2632_v53 }
 0x88f   : > { %v2634_v33 = vadd.f32 1e-05, %v2633_v46 }
 0x891   : > { %3036 = vrsqrt.f32 %v2634_v33 }
 0x89b   : > { %v3037_v42 = vpop.eup %3036 }
 0x89c   : > { %v2636_v36 = vmul.f32 %v3037_v42, %v2628_v0 }
 0x89e   : > { %v2644_v38 = vmul.f32 %v2808_v34, %v2636_v36 }
 0x8a0   : > { %v2652_v45 = vadd.f32 %v2809_v48, %v2644_v38 }
 0x8a2   : > { %2653 = vst.msk [vmem:[%s548_s22] sm:$0xff] %vm563_vm1, %v2652_v45 }
 0x8a3 PF: > { %s23_s27 = sadd.s32 1, %s3060_s27   ;;  %s3813_s25 = smov %s3056_s26 }
 0x8a4   : > { %p20_p5 = scmp.ge.s32.totalorder %s23_s27, 6   ;;  %s3814_s26 = smov %s3816_s28 }
 0x8a6   :  { %22 = sbr.rel (!%p20_p5) target bundleno = 2 (0x2), region = 131 }

</bundles_post_ra>
